<compile_context>
chip_gen: v6e
topology: v6e:2x2x1
jax: 0.10.0
libtpu: 0.0.40
codegen_flags: <defaults>
</compile_context>

<pallas_src>
import functools

import jax
import jax.numpy as jnp
from jax import lax
from jax.experimental import pallas as pl
from jax.experimental.pallas import tpu as pltpu

EPS = 1e-5  # nn.InstanceNorm2d default eps (affine=False, biased variance)


# ---------------------------------------------------------------------------
# Fused Pallas kernel: conv3x3 -> IN -> ReLU -> conv3x3 -> IN -> (+x), one batch element
# ---------------------------------------------------------------------------
def resblock_kernel(x_ref, w1_ref, w2_ref, o_ref, *, H, W):
    """x_ref/o_ref: (1, H*W, C) NHWC-flattened activation; w?_ref: (9, C_in, C_out)."""
    HW, C = x_ref.shape[1], x_ref.shape[2]
    x = x_ref[0]  # (HW, C) f32

    def reflect_pad(t):  # (H, W, C) -> (H+2, W+2, C), 1-pixel reflect, all in VMEM
        t = jnp.concatenate([t[1:2], t, t[H - 2:H - 1]], axis=0)
        t = jnp.concatenate([t[:, 1:2], t, t[:, W - 2:W - 1]], axis=1)
        return t

    def conv3x3(t_flat, w_ref):
        # t_flat: (HW, C_in). 9 MXU matmuls (one per tap), contraction over C_in,
        # f32 accumulation. Reshapes only merge/split leading dims (lane dim = C fixed).
        tp = reflect_pad(t_flat.reshape(H, W, C))
        acc = jnp.zeros((HW, C), jnp.float32)
        for k in range(9):  # static 9-tap unroll (independent of C)
            kh, kw = divmod(k, 3)
            shifted = tp[kh:kh + H, kw:kw + W, :].reshape(HW, C)
            acc = acc + jnp.dot(shifted, w_ref[k],
                                preferred_element_type=jnp.float32)
        return acc

    def inorm(t):  # per-channel InstanceNorm over the spatial axis (biased var, eps=1e-5)
        m = jnp.mean(t, axis=0, keepdims=True)
        c = t - m
        v = jnp.mean(c * c, axis=0, keepdims=True)
        return c * lax.rsqrt(v + EPS)

    h = jnp.maximum(inorm(conv3x3(x, w1_ref)), 0.0)
    h = inorm(conv3x3(h, w2_ref))
    o_ref[0] = x + h


# ---------------------------------------------------------------------------
# Wrapper: layout plumbing only (NCHW <-> NHWC-flat, weight tap-major reorder)
# ---------------------------------------------------------------------------
def resblock_forward(x, w1, b1, w2, b2):
    """x: (B, C, H, W) NCHW (PyTorch layout); w: (C, C, 3, 3) OIHW. Returns NCHW."""
    del b1, b2  # bias before InstanceNorm is a mathematical no-op (mean cancels it)
    B, C, H, W = x.shape

    # NCHW -> NHWC flattened to (B, H*W, C): channel axis maps to vreg lanes and the
    # conv becomes a clean channel-contraction matmul inside the kernel.
    x_f = jnp.transpose(x, (0, 2, 3, 1)).reshape(B, H * W, C).astype(jnp.float32)

    # Weights (co, ci, kh, kw) -> (k, ci, co), k = kh*3 + kw: each tap is a (C_in, C_out)
    # matrix fed straight to the MXU. (Could be bf16 on v6e/v7x; keep f32 accumulation
    # and f32 InstanceNorm math. f32 kept here for v5e and tolerance.)
    wk1 = jnp.transpose(w1, (2, 3, 1, 0)).reshape(9, C, C).astype(jnp.float32)
    wk2 = jnp.transpose(w2, (2, 3, 1, 0)).reshape(9, C, C).astype(jnp.float32)

    kernel = functools.partial(resblock_kernel, H=H, W=W)

    act_spec = pl.BlockSpec((1, H * W, C), lambda b: (b, 0, 0))
    w_spec = pl.BlockSpec((9, C, C), lambda b: (0, 0, 0))  # same block every step -> resident

    # TODO(synk): for production sizes (C >= 128, large H*W) add a parallel spatial-strip
    # grid axis (with 1-row halo) and set vmem_limit_bytes explicitly so double-buffered
    # blocks fit v7x's 64 MiB VMEM and both TensorCores get work even at B=1.
    out_f = pl.pallas_call(
        kernel,
        out_shape=jax.ShapeDtypeStruct((B, H * W, C), jnp.float32),
        grid=(B,),
        in_specs=[act_spec, w_spec, w_spec],
        out_specs=act_spec,
        compiler_params=pltpu.CompilerParams(dimension_semantics=("parallel",)),
    )(x_f, wk1, wk2)

    return jnp.transpose(out_f.reshape(B, H, W, C), (0, 3, 1, 2)).astype(x.dtype)


# ---------------------------------------------------------------------------
# Pure-JAX reference (for correctness check only; keeps the bias)
# ---------------------------------------------------------------------------
def ref_resblock(x, w1, b1, w2, b2):
    def conv(t, w, b):
        tp = jnp.pad(t, ((0, 0), (0, 0), (1, 1), (1, 1)), mode="reflect")
        y = lax.conv_general_dilated(
            tp, w, window_strides=(1, 1), padding="VALID",
            dimension_numbers=("NCHW", "OIHW", "NCHW"))
        return y + b[None, :, None, None]

    def inorm(t):
        m = jnp.mean(t, axis=(2, 3), keepdims=True)
        v = jnp.mean((t - m) ** 2, axis=(2, 3), keepdims=True)
        return (t - m) * lax.rsqrt(v + EPS)

    h = jnp.maximum(inorm(conv(x, w1, b1)), 0.0)
    h = inorm(conv(h, w2, b2))
    return x + h


if __name__ == "__main__":
    key = jax.random.PRNGKey(0)
    B, C, H, W = 2, 4, 16, 16
    kx, k1, kb1, k2, kb2 = jax.random.split(key, 5)

    x = jax.random.normal(kx, (B, C, H, W), jnp.float32)

    # Conv2d-style uniform(-1/sqrt(fan_in), 1/sqrt(fan_in)) init
    fan_in = C * 3 * 3
    bound = 1.0 / (fan_in ** 0.5)
    w1 = jax.random.uniform(k1, (C, C, 3, 3), jnp.float32, -bound, bound)
    b1 = jax.random.uniform(kb1, (C,), jnp.float32, -bound, bound)
    w2 = jax.random.uniform(k2, (C, C, 3, 3), jnp.float32, -bound, bound)
    b2 = jax.random.uniform(kb2, (C,), jnp.float32, -bound, bound)

    out = jax.jit(resblock_forward)(x, w1, b1, w2, b2)
    out = jax.block_until_ready(out)

    ref = ref_resblock(x, w1, b1, w2, b2)
    assert out.shape == x.shape and out.dtype == x.dtype
    max_err = float(jnp.max(jnp.abs(out - ref)))
    assert jnp.allclose(out, ref, atol=1e-4, rtol=1e-4), f"max abs err {max_err}"

    print("KERNEL_OK")
</pallas_src>

<mosaic_0001>
module attributes {stable_mosaic.version = 11 : i64} {
  func.func @resblock_kernel(%arg0: i32, %arg1: memref<1x256x4xf32, #tpu.memory_space<vmem>>, %arg2: memref<9x4x4xf32, #tpu.memory_space<vmem>>, %arg3: memref<9x4x4xf32, #tpu.memory_space<vmem>>, %arg4: memref<1x256x4xf32, #tpu.memory_space<vmem>>) attributes {dimension_semantics = [#tpu.dimension_semantics<parallel>], iteration_bounds = array<i64: 2>, scalar_prefetch = 0 : i64, scratch_operands = 0 : i64, tpu.core_type = #tpu.core_type<tc>, window_params = [{transform_indices = @transform_0, window_bounds = array<i64: 1, 256, 4>}, {pipeline_mode = #tpu.pipeline_mode<synchronous>, transform_indices = @transform_1, window_bounds = array<i64: 9, 4, 4>}, {pipeline_mode = #tpu.pipeline_mode<synchronous>, transform_indices = @transform_2, window_bounds = array<i64: 9, 4, 4>}, {transform_indices = @transform_3, window_bounds = array<i64: 1, 256, 4>}]} {
    %c0 = arith.constant 0 : index
    %c0_0 = arith.constant 0 : index
    %c0_1 = arith.constant 0 : index
    %0 = vector.load %arg1[%c0, %c0_0, %c0_1] : memref<1x256x4xf32, #tpu.memory_space<vmem>>, vector<1x256x4xf32>
    %1 = vector.shape_cast %0 : vector<1x256x4xf32> to vector<256x4xf32>
    %2 = vector.shape_cast %1 : vector<256x4xf32> to vector<16x16x4xf32>
    %3 = vector.extract_strided_slice %2 {offsets = [1, 0, 0], sizes = [1, 16, 4], strides = [1, 1, 1]} : vector<16x16x4xf32> to vector<1x16x4xf32>
    %4 = vector.extract_strided_slice %2 {offsets = [14, 0, 0], sizes = [1, 16, 4], strides = [1, 1, 1]} : vector<16x16x4xf32> to vector<1x16x4xf32>
    %5 = tpu.concatenate %3, %2, %4 in 0 : vector<1x16x4xf32>, vector<16x16x4xf32>, vector<1x16x4xf32> -> vector<18x16x4xf32>
    %6 = vector.extract_strided_slice %5 {offsets = [0, 1, 0], sizes = [18, 1, 4], strides = [1, 1, 1]} : vector<18x16x4xf32> to vector<18x1x4xf32>
    %7 = vector.extract_strided_slice %5 {offsets = [0, 14, 0], sizes = [18, 1, 4], strides = [1, 1, 1]} : vector<18x16x4xf32> to vector<18x1x4xf32>
    %8 = tpu.concatenate %6, %5, %7 in 1 : vector<18x1x4xf32>, vector<18x16x4xf32>, vector<18x1x4xf32> -> vector<18x18x4xf32>
    %cst = arith.constant 0.000000e+00 : f32
    %9 = vector.broadcast %cst : f32 to vector<256x4xf32>
    %10 = vector.extract_strided_slice %8 {offsets = [0, 0, 0], sizes = [16, 16, 4], strides = [1, 1, 1]} : vector<18x18x4xf32> to vector<16x16x4xf32>
    %11 = vector.shape_cast %10 : vector<16x16x4xf32> to vector<256x4xf32>
    %c0_2 = arith.constant 0 : index
    %c0_3 = arith.constant 0 : index
    %c0_4 = arith.constant 0 : index
    %12 = vector.load %arg2[%c0_2, %c0_3, %c0_4] : memref<9x4x4xf32, #tpu.memory_space<vmem>>, vector<1x4x4xf32>
    %13 = vector.shape_cast %12 : vector<1x4x4xf32> to vector<4x4xf32>
    %cst_5 = arith.constant dense<0.000000e+00> : vector<256x4xf32>
    %14 = tpu.matmul %11, %13, %cst_5 {dimension_numbers = #tpu.dot_dimension_numbers<[1], [0], [0], [1], [0, 0, 1, 1], [], []>} : vector<256x4xf32>, vector<4x4xf32>, vector<256x4xf32> -> vector<256x4xf32>
    %15 = arith.addf %9, %14 : vector<256x4xf32>
    %16 = vector.extract_strided_slice %8 {offsets = [0, 1, 0], sizes = [16, 16, 4], strides = [1, 1, 1]} : vector<18x18x4xf32> to vector<16x16x4xf32>
    %17 = vector.shape_cast %16 : vector<16x16x4xf32> to vector<256x4xf32>
    %c1 = arith.constant 1 : index
    %c0_6 = arith.constant 0 : index
    %c0_7 = arith.constant 0 : index
    %18 = vector.load %arg2[%c1, %c0_6, %c0_7] : memref<9x4x4xf32, #tpu.memory_space<vmem>>, vector<1x4x4xf32>
    %19 = vector.shape_cast %18 : vector<1x4x4xf32> to vector<4x4xf32>
    %cst_8 = arith.constant dense<0.000000e+00> : vector<256x4xf32>
    %20 = tpu.matmul %17, %19, %cst_8 {dimension_numbers = #tpu.dot_dimension_numbers<[1], [0], [0], [1], [0, 0, 1, 1], [], []>} : vector<256x4xf32>, vector<4x4xf32>, vector<256x4xf32> -> vector<256x4xf32>
    %21 = arith.addf %15, %20 : vector<256x4xf32>
    %22 = vector.extract_strided_slice %8 {offsets = [0, 2, 0], sizes = [16, 16, 4], strides = [1, 1, 1]} : vector<18x18x4xf32> to vector<16x16x4xf32>
    %23 = vector.shape_cast %22 : vector<16x16x4xf32> to vector<256x4xf32>
    %c2 = arith.constant 2 : index
    %c0_9 = arith.constant 0 : index
    %c0_10 = arith.constant 0 : index
    %24 = vector.load %arg2[%c2, %c0_9, %c0_10] : memref<9x4x4xf32, #tpu.memory_space<vmem>>, vector<1x4x4xf32>
    %25 = vector.shape_cast %24 : vector<1x4x4xf32> to vector<4x4xf32>
    %cst_11 = arith.constant dense<0.000000e+00> : vector<256x4xf32>
    %26 = tpu.matmul %23, %25, %cst_11 {dimension_numbers = #tpu.dot_dimension_numbers<[1], [0], [0], [1], [0, 0, 1, 1], [], []>} : vector<256x4xf32>, vector<4x4xf32>, vector<256x4xf32> -> vector<256x4xf32>
    %27 = arith.addf %21, %26 : vector<256x4xf32>
    %28 = vector.extract_strided_slice %8 {offsets = [1, 0, 0], sizes = [16, 16, 4], strides = [1, 1, 1]} : vector<18x18x4xf32> to vector<16x16x4xf32>
    %29 = vector.shape_cast %28 : vector<16x16x4xf32> to vector<256x4xf32>
    %c3 = arith.constant 3 : index
    %c0_12 = arith.constant 0 : index
    %c0_13 = arith.constant 0 : index
    %30 = vector.load %arg2[%c3, %c0_12, %c0_13] : memref<9x4x4xf32, #tpu.memory_space<vmem>>, vector<1x4x4xf32>
    %31 = vector.shape_cast %30 : vector<1x4x4xf32> to vector<4x4xf32>
    %cst_14 = arith.constant dense<0.000000e+00> : vector<256x4xf32>
    %32 = tpu.matmul %29, %31, %cst_14 {dimension_numbers = #tpu.dot_dimension_numbers<[1], [0], [0], [1], [0, 0, 1, 1], [], []>} : vector<256x4xf32>, vector<4x4xf32>, vector<256x4xf32> -> vector<256x4xf32>
    %33 = arith.addf %27, %32 : vector<256x4xf32>
    %34 = vector.extract_strided_slice %8 {offsets = [1, 1, 0], sizes = [16, 16, 4], strides = [1, 1, 1]} : vector<18x18x4xf32> to vector<16x16x4xf32>
    %35 = vector.shape_cast %34 : vector<16x16x4xf32> to vector<256x4xf32>
    %c4 = arith.constant 4 : index
    %c0_15 = arith.constant 0 : index
    %c0_16 = arith.constant 0 : index
    %36 = vector.load %arg2[%c4, %c0_15, %c0_16] : memref<9x4x4xf32, #tpu.memory_space<vmem>>, vector<1x4x4xf32>
    %37 = vector.shape_cast %36 : vector<1x4x4xf32> to vector<4x4xf32>
    %cst_17 = arith.constant dense<0.000000e+00> : vector<256x4xf32>
    %38 = tpu.matmul %35, %37, %cst_17 {dimension_numbers = #tpu.dot_dimension_numbers<[1], [0], [0], [1], [0, 0, 1, 1], [], []>} : vector<256x4xf32>, vector<4x4xf32>, vector<256x4xf32> -> vector<256x4xf32>
    %39 = arith.addf %33, %38 : vector<256x4xf32>
    %40 = vector.extract_strided_slice %8 {offsets = [1, 2, 0], sizes = [16, 16, 4], strides = [1, 1, 1]} : vector<18x18x4xf32> to vector<16x16x4xf32>
    %41 = vector.shape_cast %40 : vector<16x16x4xf32> to vector<256x4xf32>
    %c5 = arith.constant 5 : index
    %c0_18 = arith.constant 0 : index
    %c0_19 = arith.constant 0 : index
    %42 = vector.load %arg2[%c5, %c0_18, %c0_19] : memref<9x4x4xf32, #tpu.memory_space<vmem>>, vector<1x4x4xf32>
    %43 = vector.shape_cast %42 : vector<1x4x4xf32> to vector<4x4xf32>
    %cst_20 = arith.constant dense<0.000000e+00> : vector<256x4xf32>
    %44 = tpu.matmul %41, %43, %cst_20 {dimension_numbers = #tpu.dot_dimension_numbers<[1], [0], [0], [1], [0, 0, 1, 1], [], []>} : vector<256x4xf32>, vector<4x4xf32>, vector<256x4xf32> -> vector<256x4xf32>
    %45 = arith.addf %39, %44 : vector<256x4xf32>
    %46 = vector.extract_strided_slice %8 {offsets = [2, 0, 0], sizes = [16, 16, 4], strides = [1, 1, 1]} : vector<18x18x4xf32> to vector<16x16x4xf32>
    %47 = vector.shape_cast %46 : vector<16x16x4xf32> to vector<256x4xf32>
    %c6 = arith.constant 6 : index
    %c0_21 = arith.constant 0 : index
    %c0_22 = arith.constant 0 : index
    %48 = vector.load %arg2[%c6, %c0_21, %c0_22] : memref<9x4x4xf32, #tpu.memory_space<vmem>>, vector<1x4x4xf32>
    %49 = vector.shape_cast %48 : vector<1x4x4xf32> to vector<4x4xf32>
    %cst_23 = arith.constant dense<0.000000e+00> : vector<256x4xf32>
    %50 = tpu.matmul %47, %49, %cst_23 {dimension_numbers = #tpu.dot_dimension_numbers<[1], [0], [0], [1], [0, 0, 1, 1], [], []>} : vector<256x4xf32>, vector<4x4xf32>, vector<256x4xf32> -> vector<256x4xf32>
    %51 = arith.addf %45, %50 : vector<256x4xf32>
    %52 = vector.extract_strided_slice %8 {offsets = [2, 1, 0], sizes = [16, 16, 4], strides = [1, 1, 1]} : vector<18x18x4xf32> to vector<16x16x4xf32>
    %53 = vector.shape_cast %52 : vector<16x16x4xf32> to vector<256x4xf32>
    %c7 = arith.constant 7 : index
    %c0_24 = arith.constant 0 : index
    %c0_25 = arith.constant 0 : index
    %54 = vector.load %arg2[%c7, %c0_24, %c0_25] : memref<9x4x4xf32, #tpu.memory_space<vmem>>, vector<1x4x4xf32>
    %55 = vector.shape_cast %54 : vector<1x4x4xf32> to vector<4x4xf32>
    %cst_26 = arith.constant dense<0.000000e+00> : vector<256x4xf32>
    %56 = tpu.matmul %53, %55, %cst_26 {dimension_numbers = #tpu.dot_dimension_numbers<[1], [0], [0], [1], [0, 0, 1, 1], [], []>} : vector<256x4xf32>, vector<4x4xf32>, vector<256x4xf32> -> vector<256x4xf32>
    %57 = arith.addf %51, %56 : vector<256x4xf32>
    %58 = vector.extract_strided_slice %8 {offsets = [2, 2, 0], sizes = [16, 16, 4], strides = [1, 1, 1]} : vector<18x18x4xf32> to vector<16x16x4xf32>
    %59 = vector.shape_cast %58 : vector<16x16x4xf32> to vector<256x4xf32>
    %c8 = arith.constant 8 : index
    %c0_27 = arith.constant 0 : index
    %c0_28 = arith.constant 0 : index
    %60 = vector.load %arg2[%c8, %c0_27, %c0_28] : memref<9x4x4xf32, #tpu.memory_space<vmem>>, vector<1x4x4xf32>
    %61 = vector.shape_cast %60 : vector<1x4x4xf32> to vector<4x4xf32>
    %cst_29 = arith.constant dense<0.000000e+00> : vector<256x4xf32>
    %62 = tpu.matmul %59, %61, %cst_29 {dimension_numbers = #tpu.dot_dimension_numbers<[1], [0], [0], [1], [0, 0, 1, 1], [], []>} : vector<256x4xf32>, vector<4x4xf32>, vector<256x4xf32> -> vector<256x4xf32>
    %63 = arith.addf %57, %62 : vector<256x4xf32>
    %cst_30 = arith.constant dense<0.000000e+00> : vector<4xf32>
    %64 = vector.multi_reduction <add>, %63, %cst_30 [0] : vector<256x4xf32> to vector<4xf32>
    %65 = vector.shape_cast %64 : vector<4xf32> to vector<1x4xf32>
    %cst_31 = arith.constant 2.560000e+02 : f32
    %66 = vector.broadcast %cst_31 : f32 to vector<1x4xf32>
    %67 = arith.divf %65, %66 : vector<1x4xf32>
    %68 = vector.broadcast %67 : vector<1x4xf32> to vector<256x4xf32>
    %69 = arith.subf %63, %68 : vector<256x4xf32>
    %70 = arith.mulf %69, %69 : vector<256x4xf32>
    %cst_32 = arith.constant dense<0.000000e+00> : vector<4xf32>
    %71 = vector.multi_reduction <add>, %70, %cst_32 [0] : vector<256x4xf32> to vector<4xf32>
    %72 = vector.shape_cast %71 : vector<4xf32> to vector<1x4xf32>
    %cst_33 = arith.constant 2.560000e+02 : f32
    %73 = vector.broadcast %cst_33 : f32 to vector<1x4xf32>
    %74 = arith.divf %72, %73 : vector<1x4xf32>
    %cst_34 = arith.constant 9.99999974E-6 : f32
    %75 = vector.broadcast %cst_34 : f32 to vector<1x4xf32>
    %76 = arith.addf %74, %75 : vector<1x4xf32>
    %77 = math.rsqrt %76 : vector<1x4xf32>
    %78 = vector.broadcast %77 : vector<1x4xf32> to vector<256x4xf32>
    %79 = arith.mulf %69, %78 : vector<256x4xf32>
    %cst_35 = arith.constant 0.000000e+00 : f32
    %80 = vector.broadcast %cst_35 : f32 to vector<256x4xf32>
    %81 = arith.maximumf %79, %80 : vector<256x4xf32>
    %82 = vector.shape_cast %81 : vector<256x4xf32> to vector<16x16x4xf32>
    %83 = vector.extract_strided_slice %82 {offsets = [1, 0, 0], sizes = [1, 16, 4], strides = [1, 1, 1]} : vector<16x16x4xf32> to vector<1x16x4xf32>
    %84 = vector.extract_strided_slice %82 {offsets = [14, 0, 0], sizes = [1, 16, 4], strides = [1, 1, 1]} : vector<16x16x4xf32> to vector<1x16x4xf32>
    %85 = tpu.concatenate %83, %82, %84 in 0 : vector<1x16x4xf32>, vector<16x16x4xf32>, vector<1x16x4xf32> -> vector<18x16x4xf32>
    %86 = vector.extract_strided_slice %85 {offsets = [0, 1, 0], sizes = [18, 1, 4], strides = [1, 1, 1]} : vector<18x16x4xf32> to vector<18x1x4xf32>
    %87 = vector.extract_strided_slice %85 {offsets = [0, 14, 0], sizes = [18, 1, 4], strides = [1, 1, 1]} : vector<18x16x4xf32> to vector<18x1x4xf32>
    %88 = tpu.concatenate %86, %85, %87 in 1 : vector<18x1x4xf32>, vector<18x16x4xf32>, vector<18x1x4xf32> -> vector<18x18x4xf32>
    %cst_36 = arith.constant 0.000000e+00 : f32
    %89 = vector.broadcast %cst_36 : f32 to vector<256x4xf32>
    %90 = vector.extract_strided_slice %88 {offsets = [0, 0, 0], sizes = [16, 16, 4], strides = [1, 1, 1]} : vector<18x18x4xf32> to vector<16x16x4xf32>
    %91 = vector.shape_cast %90 : vector<16x16x4xf32> to vector<256x4xf32>
    %c0_37 = arith.constant 0 : index
    %c0_38 = arith.constant 0 : index
    %c0_39 = arith.constant 0 : index
    %92 = vector.load %arg3[%c0_37, %c0_38, %c0_39] : memref<9x4x4xf32, #tpu.memory_space<vmem>>, vector<1x4x4xf32>
    %93 = vector.shape_cast %92 : vector<1x4x4xf32> to vector<4x4xf32>
    %cst_40 = arith.constant dense<0.000000e+00> : vector<256x4xf32>
    %94 = tpu.matmul %91, %93, %cst_40 {dimension_numbers = #tpu.dot_dimension_numbers<[1], [0], [0], [1], [0, 0, 1, 1], [], []>} : vector<256x4xf32>, vector<4x4xf32>, vector<256x4xf32> -> vector<256x4xf32>
    %95 = arith.addf %89, %94 : vector<256x4xf32>
    %96 = vector.extract_strided_slice %88 {offsets = [0, 1, 0], sizes = [16, 16, 4], strides = [1, 1, 1]} : vector<18x18x4xf32> to vector<16x16x4xf32>
    %97 = vector.shape_cast %96 : vector<16x16x4xf32> to vector<256x4xf32>
    %c1_41 = arith.constant 1 : index
    %c0_42 = arith.constant 0 : index
    %c0_43 = arith.constant 0 : index
    %98 = vector.load %arg3[%c1_41, %c0_42, %c0_43] : memref<9x4x4xf32, #tpu.memory_space<vmem>>, vector<1x4x4xf32>
    %99 = vector.shape_cast %98 : vector<1x4x4xf32> to vector<4x4xf32>
    %cst_44 = arith.constant dense<0.000000e+00> : vector<256x4xf32>
    %100 = tpu.matmul %97, %99, %cst_44 {dimension_numbers = #tpu.dot_dimension_numbers<[1], [0], [0], [1], [0, 0, 1, 1], [], []>} : vector<256x4xf32>, vector<4x4xf32>, vector<256x4xf32> -> vector<256x4xf32>
    %101 = arith.addf %95, %100 : vector<256x4xf32>
    %102 = vector.extract_strided_slice %88 {offsets = [0, 2, 0], sizes = [16, 16, 4], strides = [1, 1, 1]} : vector<18x18x4xf32> to vector<16x16x4xf32>
    %103 = vector.shape_cast %102 : vector<16x16x4xf32> to vector<256x4xf32>
    %c2_45 = arith.constant 2 : index
    %c0_46 = arith.constant 0 : index
    %c0_47 = arith.constant 0 : index
    %104 = vector.load %arg3[%c2_45, %c0_46, %c0_47] : memref<9x4x4xf32, #tpu.memory_space<vmem>>, vector<1x4x4xf32>
    %105 = vector.shape_cast %104 : vector<1x4x4xf32> to vector<4x4xf32>
    %cst_48 = arith.constant dense<0.000000e+00> : vector<256x4xf32>
    %106 = tpu.matmul %103, %105, %cst_48 {dimension_numbers = #tpu.dot_dimension_numbers<[1], [0], [0], [1], [0, 0, 1, 1], [], []>} : vector<256x4xf32>, vector<4x4xf32>, vector<256x4xf32> -> vector<256x4xf32>
    %107 = arith.addf %101, %106 : vector<256x4xf32>
    %108 = vector.extract_strided_slice %88 {offsets = [1, 0, 0], sizes = [16, 16, 4], strides = [1, 1, 1]} : vector<18x18x4xf32> to vector<16x16x4xf32>
    %109 = vector.shape_cast %108 : vector<16x16x4xf32> to vector<256x4xf32>
    %c3_49 = arith.constant 3 : index
    %c0_50 = arith.constant 0 : index
    %c0_51 = arith.constant 0 : index
    %110 = vector.load %arg3[%c3_49, %c0_50, %c0_51] : memref<9x4x4xf32, #tpu.memory_space<vmem>>, vector<1x4x4xf32>
    %111 = vector.shape_cast %110 : vector<1x4x4xf32> to vector<4x4xf32>
    %cst_52 = arith.constant dense<0.000000e+00> : vector<256x4xf32>
    %112 = tpu.matmul %109, %111, %cst_52 {dimension_numbers = #tpu.dot_dimension_numbers<[1], [0], [0], [1], [0, 0, 1, 1], [], []>} : vector<256x4xf32>, vector<4x4xf32>, vector<256x4xf32> -> vector<256x4xf32>
    %113 = arith.addf %107, %112 : vector<256x4xf32>
    %114 = vector.extract_strided_slice %88 {offsets = [1, 1, 0], sizes = [16, 16, 4], strides = [1, 1, 1]} : vector<18x18x4xf32> to vector<16x16x4xf32>
    %115 = vector.shape_cast %114 : vector<16x16x4xf32> to vector<256x4xf32>
    %c4_53 = arith.constant 4 : index
    %c0_54 = arith.constant 0 : index
    %c0_55 = arith.constant 0 : index
    %116 = vector.load %arg3[%c4_53, %c0_54, %c0_55] : memref<9x4x4xf32, #tpu.memory_space<vmem>>, vector<1x4x4xf32>
    %117 = vector.shape_cast %116 : vector<1x4x4xf32> to vector<4x4xf32>
    %cst_56 = arith.constant dense<0.000000e+00> : vector<256x4xf32>
    %118 = tpu.matmul %115, %117, %cst_56 {dimension_numbers = #tpu.dot_dimension_numbers<[1], [0], [0], [1], [0, 0, 1, 1], [], []>} : vector<256x4xf32>, vector<4x4xf32>, vector<256x4xf32> -> vector<256x4xf32>
    %119 = arith.addf %113, %118 : vector<256x4xf32>
    %120 = vector.extract_strided_slice %88 {offsets = [1, 2, 0], sizes = [16, 16, 4], strides = [1, 1, 1]} : vector<18x18x4xf32> to vector<16x16x4xf32>
    %121 = vector.shape_cast %120 : vector<16x16x4xf32> to vector<256x4xf32>
    %c5_57 = arith.constant 5 : index
    %c0_58 = arith.constant 0 : index
    %c0_59 = arith.constant 0 : index
    %122 = vector.load %arg3[%c5_57, %c0_58, %c0_59] : memref<9x4x4xf32, #tpu.memory_space<vmem>>, vector<1x4x4xf32>
    %123 = vector.shape_cast %122 : vector<1x4x4xf32> to vector<4x4xf32>
    %cst_60 = arith.constant dense<0.000000e+00> : vector<256x4xf32>
    %124 = tpu.matmul %121, %123, %cst_60 {dimension_numbers = #tpu.dot_dimension_numbers<[1], [0], [0], [1], [0, 0, 1, 1], [], []>} : vector<256x4xf32>, vector<4x4xf32>, vector<256x4xf32> -> vector<256x4xf32>
    %125 = arith.addf %119, %124 : vector<256x4xf32>
    %126 = vector.extract_strided_slice %88 {offsets = [2, 0, 0], sizes = [16, 16, 4], strides = [1, 1, 1]} : vector<18x18x4xf32> to vector<16x16x4xf32>
    %127 = vector.shape_cast %126 : vector<16x16x4xf32> to vector<256x4xf32>
    %c6_61 = arith.constant 6 : index
    %c0_62 = arith.constant 0 : index
    %c0_63 = arith.constant 0 : index
    %128 = vector.load %arg3[%c6_61, %c0_62, %c0_63] : memref<9x4x4xf32, #tpu.memory_space<vmem>>, vector<1x4x4xf32>
    %129 = vector.shape_cast %128 : vector<1x4x4xf32> to vector<4x4xf32>
    %cst_64 = arith.constant dense<0.000000e+00> : vector<256x4xf32>
    %130 = tpu.matmul %127, %129, %cst_64 {dimension_numbers = #tpu.dot_dimension_numbers<[1], [0], [0], [1], [0, 0, 1, 1], [], []>} : vector<256x4xf32>, vector<4x4xf32>, vector<256x4xf32> -> vector<256x4xf32>
    %131 = arith.addf %125, %130 : vector<256x4xf32>
    %132 = vector.extract_strided_slice %88 {offsets = [2, 1, 0], sizes = [16, 16, 4], strides = [1, 1, 1]} : vector<18x18x4xf32> to vector<16x16x4xf32>
    %133 = vector.shape_cast %132 : vector<16x16x4xf32> to vector<256x4xf32>
    %c7_65 = arith.constant 7 : index
    %c0_66 = arith.constant 0 : index
    %c0_67 = arith.constant 0 : index
    %134 = vector.load %arg3[%c7_65, %c0_66, %c0_67] : memref<9x4x4xf32, #tpu.memory_space<vmem>>, vector<1x4x4xf32>
    %135 = vector.shape_cast %134 : vector<1x4x4xf32> to vector<4x4xf32>
    %cst_68 = arith.constant dense<0.000000e+00> : vector<256x4xf32>
    %136 = tpu.matmul %133, %135, %cst_68 {dimension_numbers = #tpu.dot_dimension_numbers<[1], [0], [0], [1], [0, 0, 1, 1], [], []>} : vector<256x4xf32>, vector<4x4xf32>, vector<256x4xf32> -> vector<256x4xf32>
    %137 = arith.addf %131, %136 : vector<256x4xf32>
    %138 = vector.extract_strided_slice %88 {offsets = [2, 2, 0], sizes = [16, 16, 4], strides = [1, 1, 1]} : vector<18x18x4xf32> to vector<16x16x4xf32>
    %139 = vector.shape_cast %138 : vector<16x16x4xf32> to vector<256x4xf32>
    %c8_69 = arith.constant 8 : index
    %c0_70 = arith.constant 0 : index
    %c0_71 = arith.constant 0 : index
    %140 = vector.load %arg3[%c8_69, %c0_70, %c0_71] : memref<9x4x4xf32, #tpu.memory_space<vmem>>, vector<1x4x4xf32>
    %141 = vector.shape_cast %140 : vector<1x4x4xf32> to vector<4x4xf32>
    %cst_72 = arith.constant dense<0.000000e+00> : vector<256x4xf32>
    %142 = tpu.matmul %139, %141, %cst_72 {dimension_numbers = #tpu.dot_dimension_numbers<[1], [0], [0], [1], [0, 0, 1, 1], [], []>} : vector<256x4xf32>, vector<4x4xf32>, vector<256x4xf32> -> vector<256x4xf32>
    %143 = arith.addf %137, %142 : vector<256x4xf32>
    %cst_73 = arith.constant dense<0.000000e+00> : vector<4xf32>
    %144 = vector.multi_reduction <add>, %143, %cst_73 [0] : vector<256x4xf32> to vector<4xf32>
    %145 = vector.shape_cast %144 : vector<4xf32> to vector<1x4xf32>
    %cst_74 = arith.constant 2.560000e+02 : f32
    %146 = vector.broadcast %cst_74 : f32 to vector<1x4xf32>
    %147 = arith.divf %145, %146 : vector<1x4xf32>
    %148 = vector.broadcast %147 : vector<1x4xf32> to vector<256x4xf32>
    %149 = arith.subf %143, %148 : vector<256x4xf32>
    %150 = arith.mulf %149, %149 : vector<256x4xf32>
    %cst_75 = arith.constant dense<0.000000e+00> : vector<4xf32>
    %151 = vector.multi_reduction <add>, %150, %cst_75 [0] : vector<256x4xf32> to vector<4xf32>
    %152 = vector.shape_cast %151 : vector<4xf32> to vector<1x4xf32>
    %cst_76 = arith.constant 2.560000e+02 : f32
    %153 = vector.broadcast %cst_76 : f32 to vector<1x4xf32>
    %154 = arith.divf %152, %153 : vector<1x4xf32>
    %cst_77 = arith.constant 9.99999974E-6 : f32
    %155 = vector.broadcast %cst_77 : f32 to vector<1x4xf32>
    %156 = arith.addf %154, %155 : vector<1x4xf32>
    %157 = math.rsqrt %156 : vector<1x4xf32>
    %158 = vector.broadcast %157 : vector<1x4xf32> to vector<256x4xf32>
    %159 = arith.mulf %149, %158 : vector<256x4xf32>
    %160 = arith.addf %1, %159 : vector<256x4xf32>
    %c0_78 = arith.constant 0 : index
    %c0_79 = arith.constant 0 : index
    %c0_80 = arith.constant 0 : index
    %161 = vector.load %arg4[%c0_78, %c0_79, %c0_80] : memref<1x256x4xf32, #tpu.memory_space<vmem>>, vector<1x256x4xf32>
    %162 = vector.shape_cast %161 : vector<1x256x4xf32> to vector<256x4xf32>
    %163 = vector.shape_cast %160 : vector<256x4xf32> to vector<1x256x4xf32>
    tpu.vector_store %arg4[%c0_78, %c0_79, %c0_80], %163 {strides = array<i32>} : memref<1x256x4xf32, #tpu.memory_space<vmem>>, vector<1x256x4xf32>,
    return
  }
  func.func @transform_0(%arg0: i32) -> (i32, i32, i32) {
    %c0_i32 = arith.constant 0 : i32
    %c0_i32_0 = arith.constant 0 : i32
    %c0_i32_1 = arith.constant 0 : i32
    return %arg0, %c0_i32, %c0_i32_0 : i32, i32, i32
  }
  func.func @transform_1(%arg0: i32) -> (i32, i32, i32) {
    %c0_i32 = arith.constant 0 : i32
    %c0_i32_0 = arith.constant 0 : i32
    %c0_i32_1 = arith.constant 0 : i32
    %c0_i32_2 = arith.constant 0 : i32
    return %c0_i32, %c0_i32_0, %c0_i32_1 : i32, i32, i32
  }
  func.func @transform_2(%arg0: i32) -> (i32, i32, i32) {
    %c0_i32 = arith.constant 0 : i32
    %c0_i32_0 = arith.constant 0 : i32
    %c0_i32_1 = arith.constant 0 : i32
    %c0_i32_2 = arith.constant 0 : i32
    return %c0_i32, %c0_i32_0, %c0_i32_1 : i32, i32, i32
  }
  func.func @transform_3(%arg0: i32) -> (i32, i32, i32) {
    %c0_i32 = arith.constant 0 : i32
    %c0_i32_0 = arith.constant 0 : i32
    %c0_i32_1 = arith.constant 0 : i32
    return %arg0, %c0_i32, %c0_i32_0 : i32, i32, i32
  }
}

</mosaic_0001>

<bundles_post_ra>
// kernel: resblock_forward.1
= control target key start
LH: loop header
LB: loop body
LE: loop exit
PB: predicated region body
PF: predicated region fallthrough
CT: control target
= control target key end

     0   :  { %s8795_s12 = smov 0   ;;  %s12932_s0 = inlined_call_operand.vmem [shape: f32[2,256,4], index: 0, kind: input, shape index: {}]   ;;  %s12933_s1 = inlined_call_operand.vmem [shape: f32[9,4,4], index: 1, kind: input, shape index: {}]   ;;  %s12934_s2 = inlined_call_operand.vmem [shape: f32[9,4,4], index: 2, kind: input, shape index: {}]   ;;  %s12935_s3 = inlined_call_operand.vmem [shape: f32[2,256,4], index: 3, kind: output, shape index: {}]  }
   0x1 LB: > { %s6606_s13 = sadd.s32 4294967295, %s8773_s12   ;;  %p6610_p0 = scmp.ge.s32.totalorder %s8773_s12, 1  ;;  %s8773_s12 = sphi %s8795_s12, %s13_s12  }
   0x2   : > { %p137_p1 = scmp.lt.s32.totalorder %s8773_s12, 3 }
   0x4   : > { %p138_p2 = pnand %p6610_p0, %p137_p1 }
   0x6   : > { %141 = sbr.rel (%p138_p2) target bundleno = 1331 (0x533), region = 32 }
   0xb   : > { %v6615_v0 = vld [vmem:[%s12933_s1 + $0x4] sm:$0xf]  ;;  %vm582_vm0 = vcmask 1043456   ;;  %v412_v1 = vld [vmem:[%s12933_s1] sm:$0xf]  ;;  %p161_p3 = scmp.lt.s32.totalorder %s6606_s13, 1 }
   0xc   : > { %7823 = vmatprep.subr.msk.mxu0 %vm582_vm0, %v6615_v0  ;;  %7873 = vmatprep.subr.msk.mxu1 %vm582_vm0, %v412_v1  ;;  %v6682_v2 = vld [vmem:[%s12933_s1 + $0x8] sm:$0xf]  ;;  %v6716_v3 = vld [vmem:[%s12933_s1 + $0xc] sm:$0xf]  ;;  %vm267_vm1 = vcmask 1040384   ;;  %vm443_vm2 = vcmask 1046528  }
   0xd   : > { %7824 = vmatpush3.msk.msra.mxu0 %vm582_vm0, %v6615_v0  ;;  %s13508_s13 = smov (!%p161_p3, %s6606_s13), 1  ;;  %7874 = vmatpush3.msk.msra.mxu1 %vm582_vm0, %v412_v1  ;;  %vm521_vm3 = vcmask 31744   ;;  %v8884_v39 = vld [vmem:[%s12933_s1 + $0x10] sm:$0xf]  ;;  %v8923_v57 = vld [vmem:[%s12933_s1 + $0x14] sm:$0xf] }
   0xe   : > { %7923 = vmatprep.subr.msk.mxu0 %vm582_vm0, %v6682_v2  ;;  %7973 = vmatprep.subr.msk.mxu1 %vm582_vm0, %v6716_v3  ;;  %s7227_s22 = sshll.u32 %s13508_s13, 8  ;;  %vm1099_vm4 = vcmask 1045504  }
   0xf   : > { %s8829_s25 = scalar_lea.vmem %s12932_s0, %s7227_s22  ;;  %s12807_s6 = scalar_lea.vmem %s12935_s3, %s7227_s22 }
  0x10   : > { %v173_v4 = vld [vmem:[%s8829_s25 + $0x10] sm:$0xff]  ;;  %v174_v5 = vld [vmem:[%s8829_s25 + $0x18] sm:$0xff]  ;;  %v171_v6 = vld [vmem:[%s8829_s25] sm:$0xff] }
  0x11   : > { %v219_v7 = vrot.slane %v173_v4, 1  ;;  %v268_v8 = vrot.slane %v173_v4, 7  ;;  %v269_v9 = vrot.slane %v174_v5, 7  ;;  %v348_v10 = vrot.slane %v174_v5, 5  ;;  %v172_v11 = vld [vmem:[%s8829_s25 + $0x8] sm:$0xff]  ;;  %v175_v12 = vld [vmem:[%s8829_s25 + $0x20] sm:$0xff] }
  0x12   : > { %v220_v13 = vrot.slane %v171_v6, 1  ;;  %v271_v14 = vrot.slane %v171_v6, 7  ;;  %v272_v15 = vrot.slane %v172_v11, 7  ;;  %v349_v16 = vrot.slane %v172_v11, 5  ;;  %v176_v24 = vld [vmem:[%s8829_s25 + $0x28] sm:$0xff]  ;;  %v177_v29 = vld [vmem:[%s8829_s25 + $0x30] sm:$0xff] }
  0x13   : > { %v8837_v17 = vsel %vm267_vm1, %v268_v8, %v269_v9  ;;  %v8840_v18 = vsel %vm267_vm1, %v219_v7, %v268_v8  ;;  %v8843_v19 = vsel %vm267_vm1, %v269_v9, %v348_v10  ;;  %v221_v20 = vrot.slane %v175_v12, 1  ;;  %v178_v34 = vld [vmem:[%s8829_s25 + $0x38] sm:$0xff]  ;;  %v179_v43 = vld [vmem:[%s8829_s25 + $0x40] sm:$0xff]  ;;  %v180_v52 = vld [vmem:[%s8829_s25 + $0x48] sm:$0xff] }
  0x14   : > { %v444_v21 = vrot.slane %v8840_v18, 1  ;;  %v445_v22 = vrot.slane %v8837_v17, 1  ;;  %7875 = vmatprep.mubr.msk.f32.mxu1 %vm521_vm3, %v8840_v18  ;;  %v447_v23 = vrot.slane %v8843_v19, 1  ;;  %v8854_v25 = vsel %vm267_vm1, %v271_v14, %v272_v15  ;;  %v181_v56 = vld [vmem:[%s8829_s25 + $0x50] sm:$0xff]  ;;  %v182_v59 = vld [vmem:[%s8829_s25 + $0x58] sm:$0xff]  ;;  %v183_v8 = vld [vmem:[%s8829_s25 + $0x60] sm:$0xff] }
  0x15   : > { %7876 = vmatmul.mubr.msk.f32.vlgmr.msra.gmra.mxu1 %vm521_vm3, %v8837_v17  ;;  %v8857_v26 = vsel %vm267_vm1, %v220_v13, %v271_v14  ;;  %v8860_v27 = vsel %vm267_vm1, %v272_v15, %v349_v16  ;;  %v274_v28 = vrot.slane %v175_v12, 7  ;;  %v450_v33 = vrot.slane %v8854_v25, 1  ;;  %v184_v9 = vld [vmem:[%s8829_s25 + $0x68] sm:$0xff] }
  0x16   : > { %v8864_v30 = vsel %vm443_vm2, %v444_v21, %v445_v22  ;;  %v8867_v31 = vsel %vm443_vm2, %v445_v22, %v447_v23  ;;  %v449_v32 = vrot.slane %v8857_v26, 1  ;;  %7878 = vmatprep.mubr.msk.f32.mxu1 %vm521_vm3, %v8857_v26  ;;  %7974 = vmatpush3.msk.msra.mxu1 %vm582_vm0, %v6716_v3  ;;  %v452_v35 = vrot.slane %v8860_v27, 1 }
  0x17   : > { %13092 = vst [vmem:[#allocation2_spill] sm:$0xff] %v8864_v30  ;;  %13093 = vst [vmem:[#allocation3_spill] sm:$0xff] %v8867_v31  ;;  %7825 = vmatprep.mubr.msk.f32.mxu0 %vm521_vm3, %v8864_v30  ;;  %v275_v36 = vrot.slane %v176_v24, 7  ;;  %v8879_v37 = vsel %vm267_vm1, %v221_v20, %v274_v28  ;;  %v350_v38 = vrot.slane %v176_v24, 5  ;;  %v222_v41 = vrot.slane %v177_v29, 1  ;;  %8073 = vmatprep.subr.msk.mxu1 %vm582_vm0, %v8923_v57  ;;  %v185_v24 = vld [vmem:[%s8829_s25 + $0x70] sm:$0xff] }
  0x18   : > { %7826 = vmatmul.mubr.msk.f32.vlgmr.msra.gmra.mxu0 %vm521_vm3, %v8867_v31  ;;  %v8889_v40 = vsel %vm443_vm2, %v449_v32, %v450_v33  ;;  %v277_v42 = vrot.slane %v177_v29, 7  ;;  %v8896_v44 = vsel %vm443_vm2, %v450_v33, %v452_v35  ;;  %v278_v47 = vrot.slane %v178_v34, 7  ;;  %v186_v29 = vld [vmem:[%s8829_s25 + $0x78] sm:$0xff] }
  0x19   : > { %7924 = vmatpush3.msk.msra.mxu0 %vm582_vm0, %v6682_v2  ;;  %7828 = vmatprep.mubr.msk.f32.mxu0 %vm521_vm3, %v8889_v40  ;;  %v8899_v45 = vsel %vm267_vm1, %v274_v28, %v275_v36  ;;  %v8902_v46 = vsel %vm267_vm1, %v275_v36, %v350_v38  ;;  %v454_v48 = vrot.slane %v8879_v37, 1  ;;  %v351_v51 = vrot.slane %v178_v34, 5 }
  0x1a   : > { %13094 = vst [vmem:[#allocation4_spill] sm:$0xff] %v8899_v45  ;;  %7879 = vmatmul.mubr.msk.f32.gmra.mxu1 %vm521_vm3, %v8854_v25  ;;  %v455_v49 = vrot.slane %v8899_v45, 1  ;;  %v8909_v50 = vsel %vm267_vm1, %v222_v41, %v277_v42  ;;  %8023 = vmatprep.subr.msk.mxu0 %vm582_vm0, %v8884_v39  ;;  %v8917_v53 = vsel %vm267_vm1, %v277_v42, %v278_v47  ;;  %v223_v54 = vrot.slane %v179_v43, 1 }
  0x1b   : > { %13095 = vst [vmem:[#allocation5_spill] sm:$0xff] %v8909_v50  ;;  %7881 = vmatprep.mubr.msk.f32.mxu1 %vm521_vm3, %v8840_v18  ;;  %v280_v55 = vrot.slane %v179_v43, 7  ;;  %v457_v58 = vrot.slane %v8902_v46, 1  ;;  %v459_v60 = vrot.slane %v8909_v50, 1  ;;  %v460_v61 = vrot.slane %v8917_v53, 1 }
  0x1c   : > { %7829 = vmatmul.mubr.msk.f32.gmra.mxu0 %vm521_vm3, %v8896_v44  ;;  %v8936_v62 = vsel %vm267_vm1, %v278_v47, %v351_v51  ;;  %v281_v63 = vrot.slane %v180_v52, 7  ;;  %v8941_v0 = vsel %vm443_vm2, %v454_v48, %v455_v49  ;;  %v352_v1 = vrot.slane %v180_v52, 5  ;;  %v187_v51 = vld [vmem:[%s8829_s25 + $0x80] sm:$0xff]  ;;  %v188_v52 = vld [vmem:[%s8829_s25 + $0x88] sm:$0xff] }
  0x1d   : > { %7831 = vmatprep.mubr.msk.f32.mxu0 %vm521_vm3, %v8864_v30  ;;  %13096 = vst [vmem:[#allocation6_spill] sm:$0xff] %v8941_v0  ;;  %v224_v2 = vrot.slane %v181_v56, 1  ;;  %v283_v3 = vrot.slane %v181_v56, 7  ;;  %v8949_v5 = vsel %vm267_vm1, %v223_v54, %v280_v55  ;;  %v284_v6 = vrot.slane %v182_v59, 7 }
  0x1e   : > { %7882 = vmatmul.mubr.msk.f32.gmra.mxu1 %vm521_vm3, %v8837_v17  ;;  %v8946_v4 = vsel %vm267_vm1, %v280_v55, %v281_v63  ;;  %13097 = vst [vmem:[#allocation7_spill] sm:$0xff] %v8949_v5  ;;  %v462_v7 = vrot.slane %v8936_v62, 1  ;;  %v8959_v10 = vsel %vm443_vm2, %v455_v49, %v457_v58  ;;  %v8962_v11 = vsel %vm443_vm2, %v459_v60, %v460_v61 }
  0x1f   : > { %7884 = vmatprep.mubr.msk.f32.mxu1 %vm521_vm3, %v8879_v37  ;;  %13098 = vst [vmem:[#allocation8_spill] sm:$0xff] %v8959_v10  ;;  %13099 = vst [vmem:[#allocation9_spill] sm:$0xff] %v8962_v11  ;;  %v353_v12 = vrot.slane %v182_v59, 5  ;;  %v464_v13 = vrot.slane %v8949_v5, 1  ;;  %v465_v14 = vrot.slane %v8946_v4, 1  ;;  %v8969_v15 = vsel %vm267_vm1, %v281_v63, %v352_v1  ;;  %v189_v63 = vld [vmem:[%s8829_s25 + $0x90] sm:$0xff] }
  0x20   : > { %7832 = vmatmul.mubr.msk.f32.gmra.mxu0 %vm521_vm3, %v8867_v31  ;;  %v8972_v16 = vsel %vm267_vm1, %v224_v2, %v283_v3  ;;  %v8977_v20 = vsel %vm267_vm1, %v283_v3, %v284_v6  ;;  %v225_v21 = vrot.slane %v183_v8, 1  ;;  %v286_v22 = vrot.slane %v183_v8, 7 }
  0x21   : > { %7834 = vmatprep.mubr.msk.f32.mxu0 %vm521_vm3, %v8941_v0  ;;  %13100 = vst [vmem:[#allocation10_spill] sm:$0xff] %v8972_v16  ;;  %v287_v23 = vrot.slane %v184_v9, 7  ;;  %v8983_v28 = vsel %vm443_vm2, %v460_v61, %v462_v7  ;;  %v467_v32 = vrot.slane %v8969_v15, 1  ;;  %v469_v33 = vrot.slane %v8972_v16, 1  ;;  %v200_v0 = vld [vmem:[%s8829_s25 + $0xe8] sm:$0xff] }
  0x22   : > { %7885 = vmatmul.mubr.msk.f32.gmra.mxu1 %vm521_vm3, %v8899_v45  ;;  %13101 = vst [vmem:[#allocation11_spill] sm:$0xff] %v8983_v28  ;;  %v8991_v34 = vsel %vm267_vm1, %v284_v6, %v353_v12  ;;  %v354_v35 = vrot.slane %v184_v9, 5  ;;  %v8996_v36 = vsel %vm443_vm2, %v464_v13, %v465_v14  ;;  %v470_v38 = vrot.slane %v8977_v20, 1  ;;  %v190_v9 = vld [vmem:[%s8829_s25 + $0x98] sm:$0xff] }
  0x23   : > { %7887 = vmatprep.mubr.msk.f32.mxu1 %vm521_vm3, %v8909_v50  ;;  %13102 = vst [vmem:[#allocation12_spill] sm:$0xff] %v8996_v36  ;;  %v226_v41 = vrot.slane %v185_v24, 1  ;;  %v289_v42 = vrot.slane %v185_v24, 7  ;;  %v9002_v43 = vsel %vm267_vm1, %v286_v22, %v287_v23  ;;  %v9005_v47 = vsel %vm267_vm1, %v225_v21, %v286_v22 }
  0x24   : > { %7835 = vmatmul.mubr.msk.f32.gmra.mxu0 %vm521_vm3, %v8959_v10  ;;  %13103 = vst [vmem:[#allocation13_spill] sm:$0xff] %v9005_v47  ;;  %v290_v48 = vrot.slane %v186_v29, 7  ;;  %v472_v49 = vrot.slane %v8991_v34, 1  ;;  %v9015_v54 = vsel %vm443_vm2, %v465_v14, %v467_v32  ;;  %v9018_v55 = vsel %vm267_vm1, %v287_v23, %v354_v35 }
  0x25   : > { %7837 = vmatprep.mubr.msk.f32.mxu0 %vm521_vm3, %v8962_v11  ;;  %13104 = vst [vmem:[#allocation14_spill] sm:$0xff] %v9015_v54  ;;  %v355_v56 = vrot.slane %v186_v29, 5  ;;  %v9023_v58 = vsel %vm443_vm2, %v469_v33, %v470_v38  ;;  %v474_v59 = vrot.slane %v9005_v47, 1  ;;  %v475_v60 = vrot.slane %v9002_v43, 1  ;;  %v191_v29 = vld [vmem:[%s8829_s25 + $0xa0] sm:$0xff] }
  0x26   : > { %7888 = vmatmul.mubr.msk.f32.gmra.mxu1 %vm521_vm3, %v8917_v53  ;;  %13105 = vst [vmem:[#allocation15_spill] sm:$0xff] %v9023_v58  ;;  %v9028_v61 = vsel %vm267_vm1, %v226_v41, %v289_v42  ;;  %v9034_v1 = vsel %vm267_vm1, %v289_v42, %v290_v48  ;;  %v227_v2 = vrot.slane %v187_v51, 1  ;;  %v292_v3 = vrot.slane %v187_v51, 7 }
  0x27   : > { %7890 = vmatprep.mubr.msk.f32.mxu1 %vm521_vm3, %v8949_v5  ;;  %13106 = vst [vmem:[#allocation16_spill] sm:$0xff] %v9028_v61  ;;  %v293_v6 = vrot.slane %v188_v52, 7  ;;  %v9039_v7 = vsel %vm443_vm2, %v470_v38, %v472_v49  ;;  %v477_v8 = vrot.slane %v9018_v55, 1  ;;  %v9046_v12 = vsel %vm267_vm1, %v290_v48, %v355_v56  ;;  %v192_v38 = vld [vmem:[%s8829_s25 + $0xa8] sm:$0xff] }
  0x28   : > { %7838 = vmatmul.mubr.msk.f32.gmra.mxu0 %vm521_vm3, %v8983_v28  ;;  %13107 = vst [vmem:[#allocation17_spill] sm:$0xff] %v9039_v7  ;;  %v356_v13 = vrot.slane %v188_v52, 5  ;;  %v228_v14 = vrot.slane %v189_v63, 1  ;;  %v295_v21 = vrot.slane %v189_v63, 7  ;;  %v9051_v22 = vsel %vm443_vm2, %v474_v59, %v475_v60 }
  0x29   : > { %7840 = vmatprep.mubr.msk.f32.mxu0 %vm521_vm3, %v8996_v36  ;;  %13108 = vst [vmem:[#allocation18_spill] sm:$0xff] %v9051_v22  ;;  %v479_v23 = vrot.slane %v9028_v61, 1  ;;  %v480_v24 = vrot.slane %v9034_v1, 1  ;;  %v9059_v32 = vsel %vm267_vm1, %v292_v3, %v293_v6  ;;  %v9062_v33 = vsel %vm267_vm1, %v227_v2, %v292_v3  ;;  %v193_v3 = vld [vmem:[%s8829_s25 + $0xb0] sm:$0xff]  ;;  %v198_v36 = vld [vmem:[%s8829_s25 + $0xd8] sm:$0xff] }
  0x2a   : > { %7891 = vmatmul.mubr.msk.f32.gmra.mxu1 %vm521_vm3, %v8946_v4  ;;  %13109 = vst [vmem:[#allocation19_spill] sm:$0xff] %v9062_v33  ;;  %v296_v35 = vrot.slane %v190_v9, 7  ;;  %v9068_v41 = vsel %vm443_vm2, %v475_v60, %v477_v8  ;;  %v482_v42 = vrot.slane %v9046_v12, 1  ;;  %v357_v48 = vrot.slane %v190_v9, 5  ;;  %v194_v8 = vld [vmem:[%s8829_s25 + $0xb8] sm:$0xff] }
  0x2b   : > { %7893 = vmatprep.mubr.msk.f32.mxu1 %vm521_vm3, %v8972_v16  ;;  %13110 = vst [vmem:[#allocation20_spill] sm:$0xff] %v9068_v41  ;;  %v9074_v49 = vsel %vm267_vm1, %v293_v6, %v356_v13  ;;  %v9077_v51 = vsel %vm267_vm1, %v228_v14, %v295_v21  ;;  %v229_v52 = vrot.slane %v191_v29, 1  ;;  %v298_v56 = vrot.slane %v191_v29, 7 }
  0x2c   : > { %7841 = vmatmul.mubr.msk.f32.gmra.mxu0 %vm521_vm3, %v9015_v54  ;;  %13111 = vst [vmem:[#allocation21_spill] sm:$0xff] %v9077_v51  ;;  %v9082_v59 = vsel %vm443_vm2, %v479_v23, %v480_v24  ;;  %v484_v60 = vrot.slane %v9062_v33, 1  ;;  %v485_v63 = vrot.slane %v9059_v32, 1  ;;  %v299_v2 = vrot.slane %v192_v38, 7 }
  0x2d   : > { %7843 = vmatprep.mubr.msk.f32.mxu0 %vm521_vm3, %v9023_v58  ;;  %13112 = vst [vmem:[#allocation22_spill] sm:$0xff] %v9082_v59  ;;  %v9090_v6 = vsel %vm267_vm1, %v295_v21, %v296_v35  ;;  %v9096_v9 = vsel %vm443_vm2, %v480_v24, %v482_v42  ;;  %v487_v13 = vrot.slane %v9074_v49, 1  ;;  %v489_v14 = vrot.slane %v9077_v51, 1 }
  0x2e   : > { %7894 = vmatmul.mubr.msk.f32.gmra.mxu1 %vm521_vm3, %v8977_v20  ;;  %13113 = vst [vmem:[#allocation23_spill] sm:$0xff] %v9090_v6  ;;  %13114 = vst [vmem:[#allocation24_spill] sm:$0xff] %v9096_v9  ;;  %v9101_v23 = vsel %vm267_vm1, %v296_v35, %v357_v48  ;;  %v9106_v21 = vsel %vm267_vm1, %v229_v52, %v298_v56  ;;  %v358_v29 = vrot.slane %v192_v38, 5  ;;  %v490_v42 = vrot.slane %v9090_v6, 1  ;;  %v195_v52 = vld [vmem:[%s8829_s25 + $0xc0] sm:$0xff] }
  0x2f   : > { %7896 = vmatprep.mubr.msk.f32.mxu1 %vm521_vm3, %v9005_v47  ;;  %13115 = vst [vmem:[#allocation25_spill] sm:$0xff] %v9106_v21  ;;  %v9111_v24 = vsel %vm443_vm2, %v484_v60, %v485_v63  ;;  %v9115_v35 = vsel %vm267_vm1, %v298_v56, %v299_v2  ;;  %v302_v48 = vrot.slane %v194_v8, 7  ;;  %v9123_v38 = vsel %vm443_vm2, %v485_v63, %v487_v13 }
  0x30   : > { %7844 = vmatmul.mubr.msk.f32.gmra.mxu0 %vm521_vm3, %v9039_v7  ;;  %13116 = vst [vmem:[#allocation26_spill] sm:$0xff] %v9111_v24  ;;  %13117 = vst [vmem:[#allocation27_spill] sm:$0xff] %v9115_v35  ;;  %v492_v60 = vrot.slane %v9101_v23, 1  ;;  %v495_v56 = vrot.slane %v9115_v35, 1  ;;  %v9132_v7 = vsel %vm267_vm1, %v299_v2, %v358_v29  ;;  %v359_v63 = vrot.slane %v194_v8, 5  ;;  %v197_v29 = vld [vmem:[%s8829_s25 + $0xd0] sm:$0xff] }
  0x31   : > { %7846 = vmatprep.mubr.msk.f32.mxu0 %vm521_vm3, %v9051_v22  ;;  %v301_v22 = vrot.slane %v193_v3, 7  ;;  %13118 = vst [vmem:[#allocation28_spill] sm:$0xff] %v9123_v38  ;;  %v9140_v13 = vsel %vm443_vm2, %v489_v14, %v490_v42  ;;  %v304_v54 = vrot.slane %v195_v52, 7  ;;  %v497_v8 = vrot.slane %v9132_v7, 1 }
  0x32   : > { %7897 = vmatmul.mubr.msk.f32.gmra.mxu1 %vm521_vm3, %v9002_v43  ;;  %13120 = vst [vmem:[#allocation30_spill] sm:$0xff] %v9140_v13  ;;  %v9163_v28 = vsel %vm267_vm1, %v302_v48, %v359_v63  ;;  %v307_v11 = vrot.slane %v197_v29, 7  ;;  %v1106_v63 = vrot.slane %v8854_v25, 2  ;;  %v1108_v10 = vrot.slane %v8860_v27, 2 }
  0x33   : > { %7899 = vmatprep.mubr.msk.f32.mxu1 %vm521_vm3, %v9028_v61  ;;  %v9143_v58 = vsel %vm267_vm1, %v301_v22, %v302_v48  ;;  %v308_v48 = vrot.slane %v198_v36, 7  ;;  %v311_v30 = vrot.slane %v200_v0, 7 }
  0x34   : > { %7847 = vmatmul.mubr.msk.f32.gmra.mxu0 %vm521_vm3, %v9068_v41  ;;  %v230_v41 = vrot.slane %v193_v3, 1  ;;  %v494_v3 = vrot.slane %v9106_v21, 1  ;;  %13121 = vst [vmem:[#allocation31_spill] sm:$0xff] %v9143_v58 }
  0x35   : > { %7849 = vmatprep.mubr.msk.f32.mxu0 %vm521_vm3, %v9082_v59  ;;  %v196_v59 = vld [vmem:[%s8829_s25 + $0xc8] sm:$0xff] }
  0x36   : > { %7900 = vmatmul.mubr.msk.f32.gmra.mxu1 %vm521_vm3, %v9034_v1  ;;  %v305_v2 = vrot.slane %v196_v59, 7 }
  0x37   : > { %7902 = vmatprep.mubr.msk.f32.mxu1 %vm521_vm3, %v9062_v33 }
  0x38   : > { %7850 = vmatmul.mubr.msk.f32.gmra.mxu0 %vm521_vm3, %v9096_v9  ;;  %v9135_v9 = vsel %vm267_vm1, %v230_v41, %v301_v22  ;;  %v9151_v41 = vsel %vm443_vm2, %v490_v42, %v492_v60  ;;  %v9159_v22 = vsel %vm443_vm2, %v494_v3, %v495_v56  ;;  %v1105_v42 = vrot.slane %v8857_v26, 2 }
  0x39   : > { %7852 = vmatprep.mubr.msk.f32.mxu0 %vm521_vm3, %v9111_v24  ;;  %13119 = vst [vmem:[#allocation29_spill] sm:$0xff] %v9135_v9  ;;  %v231_v24 = vrot.slane %v195_v52, 1  ;;  %13122 = vst [vmem:[#allocation32_spill] sm:$0xff] %v9151_v41  ;;  %v499_v14 = vrot.slane %v9135_v9, 1  ;;  %v500_v52 = vrot.slane %v9143_v58, 1  ;;  %v9174_v3 = vsel %vm267_vm1, %v304_v54, %v305_v2 }
  0x3a   : > { %7903 = vmatmul.mubr.msk.f32.gmra.mxu1 %vm521_vm3, %v9059_v32  ;;  %13123 = vst [vmem:[#allocation33_spill] sm:$0xff] %v9159_v22  ;;  %13125 = vst [vmem:[#allocation35_spill] sm:$0xff] %v9174_v3  ;;  %v9193_v27 = vsel %vm1099_vm4, %v1105_v42, %v1106_v63  ;;  %v9210_v42 = vsel %vm267_vm1, %v307_v11, %v308_v48 }
  0x3b   : > { %7905 = vmatprep.mubr.msk.f32.mxu1 %vm521_vm3, %v9077_v51  ;;  %v9169_v60 = vsel %vm267_vm1, %v231_v24, %v304_v54  ;;  %v9181_v24 = vsel %vm443_vm2, %v495_v56, %v497_v8  ;;  %v9189_v54 = vsel %vm443_vm2, %v499_v14, %v500_v52  ;;  %v505_v56 = vrot.slane %v9174_v3, 1 }
  0x3c   : > { %7853 = vmatmul.mubr.msk.f32.gmra.mxu0 %vm521_vm3, %v9123_v38  ;;  %13124 = vst [vmem:[#allocation34_spill] sm:$0xff] %v9169_v60  ;;  %v360_v38 = vrot.slane %v196_v59, 5  ;;  %13126 = vst [vmem:[#allocation36_spill] sm:$0xff] %v9181_v24  ;;  %v502_v59 = vrot.slane %v9163_v28, 1  ;;  %v504_v31 = vrot.slane %v9169_v60, 1  ;;  %v361_v14 = vrot.slane %v198_v36, 5 }
  0x3d   : > { %7855 = vmatprep.mubr.msk.f32.mxu0 %vm521_vm3, %v9140_v13  ;;  %v232_v13 = vrot.slane %v197_v29, 1  ;;  %v199_v29 = vld [vmem:[%s8829_s25 + $0xe0] sm:$0xff] }
  0x3e   : > { %7906 = vmatmul.mubr.msk.f32.gmra.mxu1 %vm521_vm3, %v9090_v6  ;;  %v9202_v8 = vsel %vm267_vm1, %v305_v2, %v360_v38  ;;  %v9217_v38 = vsel %vm443_vm2, %v500_v52, %v502_v59  ;;  %v510_v2 = vrot.slane %v9210_v42, 1 }
  0x3f   : > { %7908 = vmatprep.mubr.msk.f32.mxu1 %vm521_vm3, %v9106_v21  ;;  %v507_v36 = vrot.slane %v9202_v8, 1 }
  0x40   : > { %7856 = vmatmul.mubr.msk.f32.gmra.mxu0 %vm521_vm3, %v9151_v41  ;;  %v9196_v41 = vsel %vm1099_vm4, %v1106_v63, %v1108_v10  ;;  %v233_v10 = vrot.slane %v199_v29, 1  ;;  %v310_v63 = vrot.slane %v199_v29, 7  ;;  %v9228_v29 = vsel %vm267_vm1, %v308_v48, %v361_v14 }
  0x41   : > { %7858 = vmatprep.mubr.msk.f32.mxu0 %vm521_vm3, %v9159_v22  ;;  %v9205_v22 = vsel %vm267_vm1, %v232_v13, %v307_v11  ;;  %v9224_v11 = vsel %vm443_vm2, %v504_v31, %v505_v56  ;;  %v9243_v31 = vsel %vm443_vm2, %v505_v56, %v507_v36 }
  0x42   : > { %7909 = vmatmul.mubr.msk.f32.gmra.mxu1 %vm521_vm3, %v9115_v35  ;;  %13127 = vst [vmem:[#allocation37_spill] sm:$0xff] %v9205_v22  ;;  %v509_v13 = vrot.slane %v9205_v22, 1  ;;  %v9233_v52 = vsel %vm267_vm1, %v310_v63, %v311_v30  ;;  %v9236_v59 = vsel %vm267_vm1, %v233_v10, %v310_v63 }
  0x43   : > { %7911 = vmatprep.mubr.msk.f32.mxu1 %vm521_vm3, %v9135_v9  ;;  %v514_v14 = vrot.slane %v9236_v59, 1  ;;  %v515_v10 = vrot.slane %v9233_v52, 1 }
  0x44   : > { %7859 = vmatmul.mubr.msk.f32.gmra.mxu0 %vm521_vm3, %v9181_v24  ;;  %v362_v24 = vrot.slane %v200_v0, 5  ;;  %v512_v0 = vrot.slane %v9228_v29, 1  ;;  %v9249_v48 = vsel %vm443_vm2, %v509_v13, %v510_v2  ;;  %v1101_v13 = vrot.slane %v8837_v17, 2 }
  0x45   : > { %7861 = vmatprep.mubr.msk.f32.mxu0 %vm521_vm3, %v9189_v54 }
  0x46   : > { %7912 = vmatmul.mubr.msk.f32.gmra.mxu1 %vm521_vm3, %v9143_v58  ;;  %v9254_v63 = vsel %vm267_vm1, %v311_v30, %v362_v24  ;;  %v9263_v56 = vsel %vm443_vm2, %v510_v2, %v512_v0  ;;  %v9269_v30 = vsel %vm443_vm2, %v514_v14, %v515_v10  ;;  %v1100_v24 = vrot.slane %v8840_v18, 2 }
  0x47   : > { %7914 = vmatprep.mubr.msk.f32.mxu1 %vm521_vm3, %v9169_v60  ;;  %v517_v36 = vrot.slane %v9254_v63, 1  ;;  %v1103_v2 = vrot.slane %v8843_v19, 2 }
  0x48   : > { %7862 = vmatmul.mubr.msk.f32.gmra.mxu0 %vm521_vm3, %v9217_v38  ;;  %v9286_v14 = vsel %vm1099_vm4, %v1100_v24, %v1101_v13  ;;  %v1115_v24 = vrot.slane %v8909_v50, 2 }
  0x49   : > { %7864 = vmatprep.mubr.msk.f32.mxu0 %vm521_vm3, %v9224_v11  ;;  %v9281_v0 = vsel %vm443_vm2, %v515_v10, %v517_v36  ;;  %v9295_v19 = vsel %vm1099_vm4, %v1101_v13, %v1103_v2  ;;  %v9300_v10 = vld [vmem:[%s12933_s1 + $0x1c] sm:$0xf]  ;;  %v1116_v13 = vrot.slane %v8917_v53, 2  ;;  %v1118_v2 = vrot.slane %v8936_v62, 2 }
  0x4a   : > { %7915 = vmatmul.mubr.msk.f32.gmra.mxu1 %vm521_vm3, %v9174_v3 }
  0x4b   : > { %7917 = vmatprep.mubr.msk.f32.mxu1 %vm521_vm3, %v9205_v22  ;;  %v9365_v62 = vsel %vm1099_vm4, %v1116_v13, %v1118_v2  ;;  %v1130_v2 = vrot.slane %v9005_v47, 2 }
  0x4c   : > { %7865 = vmatmul.mubr.msk.f32.gmra.mxu0 %vm521_vm3, %v9243_v31 }
  0x4d   : > { %7867 = vmatprep.mubr.msk.f32.mxu0 %vm521_vm3, %v9249_v48 }
  0x4e   : > { %7918 = vmatmul.mubr.msk.f32.gmra.mxu1 %vm521_vm3, %v9210_v42 }
  0x4f   : > { %7920 = vmatprep.mubr.msk.f32.mxu1 %vm521_vm3, %v9236_v59 }
  0x50   : > { %7868 = vmatmul.mubr.msk.f32.gmra.mxu0 %vm521_vm3, %v9263_v56 }
  0x51   : > { %7870 = vmatprep.mubr.msk.f32.mxu0 %vm521_vm3, %v9269_v30 }
  0x52   : > { %7921 = vmatmul.mubr.msk.f32.gmra.mxu1 %vm521_vm3, %v9233_v52 }
  0x53   : > { %7975 = vmatprep.mubr.msk.f32.mxu1 %vm521_vm3, %v8857_v26  ;;  %v9311_v26 = vld [vmem:[%s12933_s1 + $0x18] sm:$0xf] }
  0x54   : > { %7871 = vmatmul.mubr.msk.f32.gmra.mxu0 %vm521_vm3, %v9281_v0 }
  0x55   : > { %7925 = vmatprep.mubr.msk.f32.mxu0 %vm521_vm3, %v9286_v14 }
  0x56   : > { %7976 = vmatmul.mubr.msk.f32.vlgmr.msra.gmra.mxu1 %vm521_vm3, %v8854_v25  ;;  %v1110_v25 = vrot.slane %v8879_v37, 2 }
  0x57   : > { %7978 = vmatprep.mubr.msk.f32.mxu1 %vm521_vm3, %v8840_v18  ;;  %8074 = vmatpush3.msk.msra.mxu1 %vm582_vm0, %v8923_v57  ;;  %v1111_v57 = vrot.slane %v8899_v45, 2 }
  0x58   : > { %7926 = vmatmul.mubr.msk.f32.vlgmr.msra.gmra.mxu0 %vm521_vm3, %v9295_v19  ;;  %8173 = vmatprep.subr.msk.mxu1 %vm582_vm0, %v9300_v10 }
  0x59   : > { %8024 = vmatpush3.msk.msra.mxu0 %vm582_vm0, %v8884_v39  ;;  %7928 = vmatprep.mubr.msk.f32.mxu0 %vm521_vm3, %v9193_v27  ;;  %v1113_v39 = vrot.slane %v8902_v46, 2  ;;  %v9337_v36 = vsel %vm1099_vm4, %v1110_v25, %v1111_v57  ;;  %v9354_v25 = vsel %vm1099_vm4, %v1115_v24, %v1116_v13  ;;  %v1125_v24 = vrot.slane %v8972_v16, 2 }
  0x5a   : > { %7979 = vmatmul.mubr.msk.f32.gmra.mxu1 %vm521_vm3, %v8837_v17  ;;  %8123 = vmatprep.subr.msk.mxu0 %vm582_vm0, %v9311_v26  ;;  %v1128_v13 = vrot.slane %v8991_v34, 2  ;;  %v1133_v34 = vrot.slane %v9018_v55, 2  ;;  %v1138_v55 = vrot.slane %v9046_v12, 2  ;;  %v1143_v12 = vrot.slane %v9074_v49, 2 }
  0x5b   : > { %7981 = vmatprep.mubr.msk.f32.mxu1 %vm521_vm3, %v8879_v37  ;;  %v9348_v46 = vsel %vm1099_vm4, %v1111_v57, %v1113_v39  ;;  %v1123_v57 = vrot.slane %v8969_v15, 2  ;;  %v1148_v49 = vrot.slane %v9101_v23, 2  ;;  %v1153_v23 = vrot.slane %v9132_v7, 2 }
  0x5c   : > { %7929 = vmatmul.mubr.msk.f32.gmra.mxu0 %vm521_vm3, %v9196_v41 }
  0x5d   : > { %7931 = vmatprep.mubr.msk.f32.mxu0 %vm521_vm3, %v9286_v14 }
  0x5e   : > { %7982 = vmatmul.mubr.msk.f32.gmra.mxu1 %vm521_vm3, %v8899_v45  ;;  %v1120_v45 = vrot.slane %v8949_v5, 2 }
  0x5f   : > { %7984 = vmatprep.mubr.msk.f32.mxu1 %vm521_vm3, %v8909_v50  ;;  %v1121_v50 = vrot.slane %v8946_v4, 2 }
  0x60   : > { %7932 = vmatmul.mubr.msk.f32.gmra.mxu0 %vm521_vm3, %v9295_v19 }
  0x61   : > { %7934 = vmatprep.mubr.msk.f32.mxu0 %vm521_vm3, %v9337_v36  ;;  %v9371_v39 = vsel %vm1099_vm4, %v1120_v45, %v1121_v50  ;;  %v9382_v15 = vsel %vm1099_vm4, %v1121_v50, %v1123_v57 }
  0x62   : > { %7985 = vmatmul.mubr.msk.f32.gmra.mxu1 %vm521_vm3, %v8917_v53  ;;  %13128 = vst [vmem:[#allocation38_spill] sm:$0xff] %v9382_v15 }
  0x63   : > { %7987 = vmatprep.mubr.msk.f32.mxu1 %vm521_vm3, %v8949_v5  ;;  %v1126_v5 = vrot.slane %v8977_v20, 2 }
  0x64   : > { %7935 = vmatmul.mubr.msk.f32.gmra.mxu0 %vm521_vm3, %v9348_v46 }
  0x65   : > { %7937 = vmatprep.mubr.msk.f32.mxu0 %vm521_vm3, %v9354_v25  ;;  %v9388_v45 = vsel %vm1099_vm4, %v1125_v24, %v1126_v5  ;;  %v9399_v50 = vsel %vm1099_vm4, %v1126_v5, %v1128_v13  ;;  %v1135_v24 = vrot.slane %v9028_v61, 2 }
  0x66   : > { %7988 = vmatmul.mubr.msk.f32.gmra.mxu1 %vm521_vm3, %v8946_v4  ;;  %13129 = vst [vmem:[#allocation39_spill] sm:$0xff] %v9388_v45  ;;  %13130 = vst [vmem:[#allocation40_spill] sm:$0xff] %v9399_v50 }
  0x67   : > { %7990 = vmatprep.mubr.msk.f32.mxu1 %vm521_vm3, %v8972_v16  ;;  %v1131_v16 = vrot.slane %v9002_v43, 2 }
  0x68   : > { %7938 = vmatmul.mubr.msk.f32.gmra.mxu0 %vm521_vm3, %v9365_v62 }
  0x69   : > { %7940 = vmatprep.mubr.msk.f32.mxu0 %vm521_vm3, %v9371_v39  ;;  %v9405_v57 = vsel %vm1099_vm4, %v1130_v2, %v1131_v16  ;;  %v9416_v5 = vsel %vm1099_vm4, %v1131_v16, %v1133_v34  ;;  %v1140_v2 = vrot.slane %v9062_v33, 2 }
  0x6a   : > { %7991 = vmatmul.mubr.msk.f32.gmra.mxu1 %vm521_vm3, %v8977_v20  ;;  %13131 = vst [vmem:[#allocation41_spill] sm:$0xff] %v9405_v57  ;;  %13132 = vst [vmem:[#allocation42_spill] sm:$0xff] %v9416_v5 }
  0x6b   : > { %7993 = vmatprep.mubr.msk.f32.mxu1 %vm521_vm3, %v9005_v47  ;;  %v1136_v47 = vrot.slane %v9034_v1, 2 }
  0x6c   : > { %7941 = vmatmul.mubr.msk.f32.gmra.mxu0 %vm521_vm3, %v9382_v15 }
  0x6d   : > { %7943 = vmatprep.mubr.msk.f32.mxu0 %vm521_vm3, %v9388_v45  ;;  %v9422_v13 = vsel %vm1099_vm4, %v1135_v24, %v1136_v47  ;;  %v9433_v16 = vsel %vm1099_vm4, %v1136_v47, %v1138_v55  ;;  %v1145_v24 = vrot.slane %v9077_v51, 2 }
  0x6e   : > { %7994 = vmatmul.mubr.msk.f32.gmra.mxu1 %vm521_vm3, %v9002_v43  ;;  %13133 = vst [vmem:[#allocation43_spill] sm:$0xff] %v9422_v13  ;;  %13134 = vst [vmem:[#allocation44_spill] sm:$0xff] %v9433_v16 }
  0x6f   : > { %7996 = vmatprep.mubr.msk.f32.mxu1 %vm521_vm3, %v9028_v61  ;;  %v1141_v61 = vrot.slane %v9059_v32, 2 }
  0x70   : > { %7944 = vmatmul.mubr.msk.f32.gmra.mxu0 %vm521_vm3, %v9399_v50 }
  0x71   : > { %7946 = vmatprep.mubr.msk.f32.mxu0 %vm521_vm3, %v9405_v57  ;;  %v9439_v34 = vsel %vm1099_vm4, %v1140_v2, %v1141_v61  ;;  %v9450_v47 = vsel %vm1099_vm4, %v1141_v61, %v1143_v12  ;;  %v1150_v2 = vrot.slane %v9106_v21, 2 }
  0x72   : > { %7997 = vmatmul.mubr.msk.f32.gmra.mxu1 %vm521_vm3, %v9034_v1  ;;  %13135 = vst [vmem:[#allocation45_spill] sm:$0xff] %v9439_v34  ;;  %13136 = vst [vmem:[#allocation46_spill] sm:$0xff] %v9450_v47 }
  0x73   : > { %7999 = vmatprep.mubr.msk.f32.mxu1 %vm521_vm3, %v9062_v33  ;;  %v1146_v33 = vrot.slane %v9090_v6, 2 }
  0x74   : > { %7947 = vmatmul.mubr.msk.f32.gmra.mxu0 %vm521_vm3, %v9416_v5 }
  0x75   : > { %7949 = vmatprep.mubr.msk.f32.mxu0 %vm521_vm3, %v9422_v13  ;;  %v9456_v55 = vsel %vm1099_vm4, %v1145_v24, %v1146_v33  ;;  %v9467_v61 = vsel %vm1099_vm4, %v1146_v33, %v1148_v49  ;;  %v1155_v24 = vrot.slane %v9135_v9, 2  ;;  %v1158_v33 = vrot.slane %v9163_v28, 2 }
  0x76   : > { %8000 = vmatmul.mubr.msk.f32.gmra.mxu1 %vm521_vm3, %v9059_v32  ;;  %13137 = vst [vmem:[#allocation47_spill] sm:$0xff] %v9456_v55  ;;  %13138 = vst [vmem:[#allocation48_spill] sm:$0xff] %v9467_v61 }
  0x77   : > { %8002 = vmatprep.mubr.msk.f32.mxu1 %vm521_vm3, %v9077_v51  ;;  %v1151_v51 = vrot.slane %v9115_v35, 2 }
  0x78   : > { %7950 = vmatmul.mubr.msk.f32.gmra.mxu0 %vm521_vm3, %v9433_v16 }
  0x79   : > { %7952 = vmatprep.mubr.msk.f32.mxu0 %vm521_vm3, %v9439_v34  ;;  %v9473_v12 = vsel %vm1099_vm4, %v1150_v2, %v1151_v51  ;;  %v9484_v7 = vsel %vm1099_vm4, %v1151_v51, %v1153_v23  ;;  %v1160_v2 = vrot.slane %v9169_v60, 2  ;;  %v1163_v51 = vrot.slane %v9202_v8, 2  ;;  %v201_v23 = vld [vmem:[%s8829_s25 + $0xf0] sm:$0xff]  ;;  %v9517_v8 = vld [vmem:[%s8829_s25 + $0xf8] sm:$0xff] }
  0x7a   : > { %8003 = vmatmul.mubr.msk.f32.gmra.mxu1 %vm521_vm3, %v9090_v6  ;;  %13139 = vst [vmem:[#allocation49_spill] sm:$0xff] %v9473_v12  ;;  %13140 = vst [vmem:[#allocation50_spill] sm:$0xff] %v9484_v7  ;;  %v12992_v6 = vrot.slane %v9517_v8, 7 }
  0x7b   : > { %8005 = vmatprep.mubr.msk.f32.mxu1 %vm521_vm3, %v9106_v21  ;;  %v1156_v21 = vrot.slane %v9143_v58, 2 }
  0x7c   : > { %7953 = vmatmul.mubr.msk.f32.gmra.mxu0 %vm521_vm3, %v9450_v47 }
  0x7d   : > { %7955 = vmatprep.mubr.msk.f32.mxu0 %vm521_vm3, %v9456_v55  ;;  %v9490_v49 = vsel %vm1099_vm4, %v1155_v24, %v1156_v21  ;;  %v9501_v28 = vsel %vm1099_vm4, %v1156_v21, %v1158_v33  ;;  %v234_v21 = vrot.slane %v201_v23, 1  ;;  %v313_v33 = vrot.slane %v201_v23, 7 }
  0x7e   : > { %8006 = vmatmul.mubr.msk.f32.gmra.mxu1 %vm521_vm3, %v9115_v35  ;;  %13141 = vst [vmem:[#allocation51_spill] sm:$0xff] %v9490_v49  ;;  %13142 = vst [vmem:[#allocation52_spill] sm:$0xff] %v9501_v28  ;;  %v1170_v35 = vrot.slane %v9236_v59, 2  ;;  %v1171_v23 = vrot.slane %v9233_v52, 2 }
  0x7f   : > { %8008 = vmatprep.mubr.msk.f32.mxu1 %vm521_vm3, %v9135_v9  ;;  %v1161_v9 = vrot.slane %v9174_v3, 2 }
  0x80   : > { %7956 = vmatmul.mubr.msk.f32.gmra.mxu0 %vm521_vm3, %v9467_v61 }
  0x81   : > { %7958 = vmatprep.mubr.msk.f32.mxu0 %vm521_vm3, %v9473_v12  ;;  %v9508_v24 = vsel %vm1099_vm4, %v1160_v2, %v1161_v9  ;;  %v9522_v2 = vsel %vm1099_vm4, %v1161_v9, %v1163_v51  ;;  %v9538_v9 = vsel %vm267_vm1, %v234_v21, %v313_v33  ;;  %v9549_v51 = vsel %vm1099_vm4, %v1170_v35, %v1171_v23  ;;  %v9582_v35 = vld [vmem:[%s12933_s1 + $0x20] sm:$0xf] }
  0x82   : > { %8009 = vmatmul.mubr.msk.f32.gmra.mxu1 %vm521_vm3, %v9143_v58  ;;  %13143 = vst [vmem:[#allocation53_spill] sm:$0xff] %v9508_v24  ;;  %v1166_v58 = vrot.slane %v9210_v42, 2  ;;  %13144 = vst [vmem:[#allocation54_spill] sm:$0xff] %v9522_v2  ;;  %v9556_v21 = vsel %vm267_vm1, %v313_v33, %v12992_v6  ;;  %v13154_v33 = vld [vmem:[#allocation15_spill] sm:$0xff]  ;;  %v13157_v6 = vld [vmem:[#allocation20_spill] sm:$0xff] }
  0x83   : > { %8011 = vmatprep.mubr.msk.f32.mxu1 %vm521_vm3, %v9169_v60  ;;  %v1165_v60 = vrot.slane %v9205_v22, 2 }
  0x84   : > { %7959 = vmatmul.mubr.msk.f32.gmra.mxu0 %vm521_vm3, %v9484_v7 }
  0x85   : > { %7961 = vmatprep.mubr.msk.f32.mxu0 %vm521_vm3, %v9490_v49 }
  0x86   : > { %8012 = vmatmul.mubr.msk.f32.gmra.mxu1 %vm521_vm3, %v9174_v3  ;;  %v1168_v3 = vrot.slane %v9228_v29, 2  ;;  %v1173_v29 = vrot.slane %v9254_v63, 2  ;;  %v13151_v63 = vld [vmem:[#allocation11_spill] sm:$0xff] }
  0x87   : > { %8014 = vmatprep.mubr.msk.f32.mxu1 %vm521_vm3, %v9205_v22  ;;  %v9528_v22 = vsel %vm1099_vm4, %v1165_v60, %v1166_v58 }
  0x88   : > { %7962 = vmatmul.mubr.msk.f32.gmra.mxu0 %vm521_vm3, %v9501_v28  ;;  %13145 = vst [vmem:[#allocation55_spill] sm:$0xff] %v9528_v22  ;;  %v9543_v60 = vsel %vm1099_vm4, %v1166_v58, %v1168_v3  ;;  %v9563_v58 = vsel %vm1099_vm4, %v1171_v23, %v1173_v29  ;;  %v13148_v3 = vld [vmem:[#allocation6_spill] sm:$0xff]  ;;  %v13155_v23 = vld [vmem:[#allocation17_spill] sm:$0xff] }
  0x89   : > { %7964 = vmatprep.mubr.msk.f32.mxu0 %vm521_vm3, %v9508_v24  ;;  %v13156_v29 = vld [vmem:[#allocation18_spill] sm:$0xff] }
  0x8a   : > { %8015 = vmatmul.mubr.msk.f32.gmra.mxu1 %vm521_vm3, %v9210_v42 }
  0x8b   : > { %8017 = vmatprep.mubr.msk.f32.mxu1 %vm521_vm3, %v9236_v59 }
  0x8c   : > { %7965 = vmatmul.mubr.msk.f32.gmra.mxu0 %vm521_vm3, %v9522_v2 }
  0x8d   : > { %7967 = vmatprep.mubr.msk.f32.mxu0 %vm521_vm3, %v9528_v22 }
  0x8e   : > { %8018 = vmatmul.mubr.msk.f32.gmra.mxu1 %vm521_vm3, %v9233_v52 }
  0x8f   : > { %8020 = vmatprep.mubr.msk.f32.mxu1 %vm521_vm3, %v9538_v9 }
  0x90   : > { %7968 = vmatmul.mubr.msk.f32.gmra.mxu0 %vm521_vm3, %v9543_v60 }
  0x91   : > { %7970 = vmatprep.mubr.msk.f32.mxu0 %vm521_vm3, %v9549_v51 }
  0x92   : > { %8021 = vmatmul.mubr.msk.f32.gmra.mxu1 %vm521_vm3, %v9556_v21 }
  0x93   : > { %8075 = vmatprep.mubr.msk.f32.mxu1 %vm521_vm3, %v9193_v27  ;;  %v13150_v27 = vld [vmem:[#allocation9_spill] sm:$0xff] }
  0x94   : > { %7971 = vmatmul.mubr.msk.f32.gmra.mxu0 %vm521_vm3, %v9563_v58 }
  0x95   : > { %8025 = vmatprep.mubr.msk.f32.mxu0 %vm521_vm3, %v8889_v40  ;;  %v13146_v40 = vld [vmem:[#allocation2_spill] sm:$0xff] }
  0x96   : > { %8076 = vmatmul.mubr.msk.f32.vlgmr.msra.gmra.mxu1 %vm521_vm3, %v9196_v41  ;;  %v13147_v41 = vld [vmem:[#allocation3_spill] sm:$0xff] }
  0x97   : > { %8078 = vmatprep.mubr.msk.f32.mxu1 %vm521_vm3, %v9286_v14  ;;  %8174 = vmatpush3.msk.msra.mxu1 %vm582_vm0, %v9300_v10  ;;  %v13152_v10 = vld [vmem:[#allocation12_spill] sm:$0xff] }
  0x98   : > { %8026 = vmatmul.mubr.msk.f32.vlgmr.msra.gmra.mxu0 %vm521_vm3, %v8896_v44  ;;  %v13149_v44 = vld [vmem:[#allocation8_spill] sm:$0xff] }
  0x99   : > { %8124 = vmatpush3.msk.msra.mxu0 %vm582_vm0, %v9311_v26  ;;  %8028 = vmatprep.mubr.msk.f32.mxu0 %vm521_vm3, %v13146_v40  ;;  %v13153_v26 = vld [vmem:[#allocation14_spill] sm:$0xff] }
  0x9a   : > { %8079 = vmatmul.mubr.msk.f32.gmra.mxu1 %vm521_vm3, %v9295_v19  ;;  %8223 = vmatprep.subr.msk.mxu0 %vm582_vm0, %v9582_v35 }
  0x9b   : > { %8081 = vmatprep.mubr.msk.f32.mxu1 %vm521_vm3, %v9337_v36 }
  0x9c   : > { %8029 = vmatmul.mubr.msk.f32.gmra.mxu0 %vm521_vm3, %v13147_v41 }
  0x9d   : > { %8031 = vmatprep.mubr.msk.f32.mxu0 %vm521_vm3, %v13148_v3 }
  0x9e   : > { %8082 = vmatmul.mubr.msk.f32.gmra.mxu1 %vm521_vm3, %v9348_v46 }
  0x9f   : > { %8084 = vmatprep.mubr.msk.f32.mxu1 %vm521_vm3, %v9354_v25 }
  0xa0   : > { %8032 = vmatmul.mubr.msk.f32.gmra.mxu0 %vm521_vm3, %v13149_v44 }
  0xa1   : > { %8034 = vmatprep.mubr.msk.f32.mxu0 %vm521_vm3, %v13150_v27 }
  0xa2   : > { %8085 = vmatmul.mubr.msk.f32.gmra.mxu1 %vm521_vm3, %v9365_v62 }
  0xa3   : > { %8087 = vmatprep.mubr.msk.f32.mxu1 %vm521_vm3, %v9371_v39 }
  0xa4   : > { %8035 = vmatmul.mubr.msk.f32.gmra.mxu0 %vm521_vm3, %v13151_v63 }
  0xa5   : > { %8037 = vmatprep.mubr.msk.f32.mxu0 %vm521_vm3, %v13152_v10 }
  0xa6   : > { %8088 = vmatmul.mubr.msk.f32.gmra.mxu1 %vm521_vm3, %v9382_v15 }
  0xa7   : > { %8090 = vmatprep.mubr.msk.f32.mxu1 %vm521_vm3, %v9388_v45  ;;  %v13158_v45 = vld [vmem:[#allocation22_spill] sm:$0xff] }
  0xa8   : > { %8038 = vmatmul.mubr.msk.f32.gmra.mxu0 %vm521_vm3, %v13153_v26 }
  0xa9   : > { %8040 = vmatprep.mubr.msk.f32.mxu0 %vm521_vm3, %v13154_v33 }
  0xaa   : > { %8091 = vmatmul.mubr.msk.f32.gmra.mxu1 %vm521_vm3, %v9399_v50  ;;  %v13160_v50 = vld [vmem:[#allocation26_spill] sm:$0xff] }
  0xab   : > { %8093 = vmatprep.mubr.msk.f32.mxu1 %vm521_vm3, %v9405_v57  ;;  %v13159_v57 = vld [vmem:[#allocation24_spill] sm:$0xff] }
  0xac   : > { %8041 = vmatmul.mubr.msk.f32.gmra.mxu0 %vm521_vm3, %v13155_v23 }
  0xad   : > { %8043 = vmatprep.mubr.msk.f32.mxu0 %vm521_vm3, %v13156_v29 }
  0xae   : > { %8094 = vmatmul.mubr.msk.f32.gmra.mxu1 %vm521_vm3, %v9416_v5  ;;  %v13162_v5 = vld [vmem:[#allocation30_spill] sm:$0xff] }
  0xaf   : > { %8096 = vmatprep.mubr.msk.f32.mxu1 %vm521_vm3, %v9422_v13  ;;  %v13161_v13 = vld [vmem:[#allocation28_spill] sm:$0xff] }
  0xb0   : > { %8044 = vmatmul.mubr.msk.f32.gmra.mxu0 %vm521_vm3, %v13157_v6 }
  0xb1   : > { %8046 = vmatprep.mubr.msk.f32.mxu0 %vm521_vm3, %v13158_v45 }
  0xb2   : > { %8097 = vmatmul.mubr.msk.f32.gmra.mxu1 %vm521_vm3, %v9433_v16  ;;  %v13164_v16 = vld [vmem:[#allocation33_spill] sm:$0xff] }
  0xb3   : > { %8099 = vmatprep.mubr.msk.f32.mxu1 %vm521_vm3, %v9439_v34  ;;  %v13163_v34 = vld [vmem:[#allocation32_spill] sm:$0xff] }
  0xb4   : > { %8047 = vmatmul.mubr.msk.f32.gmra.mxu0 %vm521_vm3, %v13159_v57 }
  0xb5   : > { %8049 = vmatprep.mubr.msk.f32.mxu0 %vm521_vm3, %v13160_v50 }
  0xb6   : > { %8100 = vmatmul.mubr.msk.f32.gmra.mxu1 %vm521_vm3, %v9450_v47 }
  0xb7   : > { %8102 = vmatprep.mubr.msk.f32.mxu1 %vm521_vm3, %v9456_v55  ;;  %v13165_v55 = vld [vmem:[#allocation36_spill] sm:$0xff] }
  0xb8   : > { %8050 = vmatmul.mubr.msk.f32.gmra.mxu0 %vm521_vm3, %v13161_v13 }
  0xb9   : > { %8052 = vmatprep.mubr.msk.f32.mxu0 %vm521_vm3, %v13162_v5 }
  0xba   : > { %8103 = vmatmul.mubr.msk.f32.gmra.mxu1 %vm521_vm3, %v9467_v61 }
  0xbb   : > { %8105 = vmatprep.mubr.msk.f32.mxu1 %vm521_vm3, %v9473_v12  ;;  %v1766_v12 = vrot.slane %v9556_v21, 1 }
  0xbc   : > { %8053 = vmatmul.mubr.msk.f32.gmra.mxu0 %vm521_vm3, %v13163_v34 }
  0xbd   : > { %8055 = vmatprep.mubr.msk.f32.mxu0 %vm521_vm3, %v13164_v16 }
  0xbe   : > { %8106 = vmatmul.mubr.msk.f32.gmra.mxu1 %vm521_vm3, %v9484_v7  ;;  %v2036_v7 = vrot.slane %v9538_v9, 2 }
  0xbf   : > { %8108 = vmatprep.mubr.msk.f32.mxu1 %vm521_vm3, %v9490_v49  ;;  %v363_v49 = vrot.slane %v9517_v8, 5 }
  0xc0   : > { %8056 = vmatmul.mubr.msk.f32.gmra.mxu0 %vm521_vm3, %v13165_v55 }
  0xc1   : > { %8058 = vmatprep.mubr.msk.f32.mxu0 %vm521_vm3, %v9189_v54 }
  0xc2   : > { %8109 = vmatmul.mubr.msk.f32.gmra.mxu1 %vm521_vm3, %v9501_v28  ;;  %v2037_v28 = vrot.slane %v9556_v21, 2 }
  0xc3   : > { %8111 = vmatprep.mubr.msk.f32.mxu1 %vm521_vm3, %v9508_v24  ;;  %v1765_v24 = vrot.slane %v9538_v9, 1 }
  0xc4   : > { %8059 = vmatmul.mubr.msk.f32.gmra.mxu0 %vm521_vm3, %v9217_v38  ;;  %v9703_v47 = vsel %vm1099_vm4, %v2036_v7, %v2037_v28 }
  0xc5   : > { %8061 = vmatprep.mubr.msk.f32.mxu0 %vm521_vm3, %v9224_v11 }
  0xc6   : > { %8112 = vmatmul.mubr.msk.f32.gmra.mxu1 %vm521_vm3, %v9522_v2  ;;  %v13166_v2 = vrot.slane %v9517_v8, 7  ;;  %v9710_v8 = vsel %vm443_vm2, %v1765_v24, %v1766_v12 }
  0xc7   : > { %8114 = vmatprep.mubr.msk.f32.mxu1 %vm521_vm3, %v9528_v22 }
  0xc8   : > { %8062 = vmatmul.mubr.msk.f32.gmra.mxu0 %vm521_vm3, %v9243_v31  ;;  %v411_v22 = vsel %vm267_vm1, %v13166_v2, %v363_v49 }
  0xc9   : > { %8064 = vmatprep.mubr.msk.f32.mxu0 %vm521_vm3, %v9249_v48  ;;  %v2039_v61 = vrot.slane %v411_v22, 2  ;;  %v1768_v15 = vrot.slane %v411_v22, 1 }
  0xca   : > { %8115 = vmatmul.mubr.msk.f32.gmra.mxu1 %vm521_vm3, %v9543_v60 }
  0xcb   : > { %8117 = vmatprep.mubr.msk.f32.mxu1 %vm521_vm3, %v9549_v51  ;;  %v9715_v49 = vsel %vm1099_vm4, %v2037_v28, %v2039_v61  ;;  %v9722_v22 = vsel %vm443_vm2, %v1766_v12, %v1768_v15 }
  0xcc   : > { %8065 = vmatmul.mubr.msk.f32.gmra.mxu0 %vm521_vm3, %v9263_v56 }
  0xcd   : > { %8067 = vmatprep.mubr.msk.f32.mxu0 %vm521_vm3, %v9269_v30 }
  0xce   : > { %8118 = vmatmul.mubr.msk.f32.gmra.mxu1 %vm521_vm3, %v9563_v58 }
  0xcf   : > { %8120 = vmatprep.mubr.msk.f32.mxu1 %vm521_vm3, %v9703_v47 }
  0xd0   : > { %8068 = vmatmul.mubr.msk.f32.gmra.mxu0 %vm521_vm3, %v9281_v0 }
  0xd1   : > { %8070 = vmatprep.mubr.msk.f32.mxu0 %vm521_vm3, %v9710_v8 }
  0xd2   : > { %8121 = vmatmul.mubr.msk.f32.gmra.mxu1 %vm521_vm3, %v9715_v49 }
  0xd3   : > { %8175 = vmatprep.mubr.msk.f32.mxu1 %vm521_vm3, %v13146_v40 }
  0xd4   : > { %8071 = vmatmul.mubr.msk.f32.gmra.mxu0 %vm521_vm3, %v9722_v22 }
  0xd5   : > { %8125 = vmatprep.mubr.msk.f32.mxu0 %vm521_vm3, %v8840_v18  ;;  %v7877_v61 = vpop.f32.mrf.mxu1 }
  0xd6   : > { %8176 = vmatmul.mubr.msk.f32.vlgmr.msra.gmra.mxu1 %vm521_vm3, %v13147_v41 }
  0xd7   : > { %v940_v7 = vpop.f32.mrf.mxu1  ;;  %8178 = vmatprep.mubr.msk.f32.mxu1 %vm521_vm3, %v13148_v3 }
  0xd8   : > { %v7827_v15 = vpop.f32.mrf.mxu0  ;;  %8126 = vmatmul.mubr.msk.f32.vlgmr.msra.gmra.mxu0 %vm521_vm3, %v8837_v17  ;;  %v13167_v17 = vld [vmem:[#allocation4_spill] sm:$0xff] }
  0xd9   : > { %v9738_v12 = vadd.f32 %v7877_v61, %v7827_v15  ;;  %8224 = vmatpush3.msk.msra.mxu0 %vm582_vm0, %v9582_v35  ;;  %8128 = vmatprep.mubr.msk.f32.mxu0 %vm521_vm3, %v8879_v37  ;;  %v13168_v35 = vld [vmem:[#allocation5_spill] sm:$0xff]  ;;  %v13169_v15 = vld [vmem:[#allocation7_spill] sm:$0xff] }
  0xda   : > { %v652_v18 = vpop.f32.mrf.mxu0  ;;  %v7880_v28 = vpop.f32.mrf.mxu1  ;;  %8179 = vmatmul.mubr.msk.f32.gmra.mxu1 %vm521_vm3, %v13149_v44 }
  0xdb   : > { %v9746_v24 = vadd.f32 %v940_v7, %v652_v18  ;;  %8181 = vmatprep.mubr.msk.f32.mxu1 %vm521_vm3, %v13150_v27 }
  0xdc   : > { %v7830_v2 = vpop.f32.mrf.mxu0  ;;  %8129 = vmatmul.mubr.msk.f32.gmra.mxu0 %vm521_vm3, %v13167_v17  ;;  %v950_v40 = vpop.f32.mrf.mxu1  ;;  %v13170_v17 = vld [vmem:[#allocation10_spill] sm:$0xff] }
  0xdd   : > { %v9752_v41 = vadd.f32 %v7880_v28, %v7830_v2  ;;  %8131 = vmatprep.mubr.msk.f32.mxu0 %vm521_vm3, %v13168_v35 }
  0xde   : > { %v662_v37 = vpop.f32.mrf.mxu0  ;;  %v7883_v3 = vpop.f32.mrf.mxu1  ;;  %8182 = vmatmul.mubr.msk.f32.gmra.mxu1 %vm521_vm3, %v13151_v63 }
  0xdf   : > { %v9758_v44 = vadd.f32 %v950_v40, %v662_v37  ;;  %8184 = vmatprep.mubr.msk.f32.mxu1 %vm521_vm3, %v13152_v10 }
  0xe0   : > { %v7833_v27 = vpop.f32.mrf.mxu0  ;;  %8132 = vmatmul.mubr.msk.f32.gmra.mxu0 %vm521_vm3, %v8917_v53  ;;  %v960_v61 = vpop.f32.mrf.mxu1 }
  0xe1   : > { %v9764_v7 = vadd.f32 %v7883_v3, %v7833_v27  ;;  %8134 = vmatprep.mubr.msk.f32.mxu0 %vm521_vm3, %v13169_v15  ;;  %v13171_v3 = vld [vmem:[#allocation13_spill] sm:$0xff] }
  0xe2   : > { %v672_v18 = vpop.f32.mrf.mxu0  ;;  %v7886_v28 = vpop.f32.mrf.mxu1  ;;  %8185 = vmatmul.mubr.msk.f32.gmra.mxu1 %vm521_vm3, %v13153_v26 }
  0xe3   : > { %v9770_v63 = vadd.f32 %v960_v61, %v672_v18  ;;  %8187 = vmatprep.mubr.msk.f32.mxu1 %vm521_vm3, %v13154_v33  ;;  %v13172_v18 = vld [vmem:[#allocation16_spill] sm:$0xff] }
  0xe4   : > { %v7836_v10 = vpop.f32.mrf.mxu0  ;;  %8135 = vmatmul.mubr.msk.f32.gmra.mxu0 %vm521_vm3, %v8946_v4  ;;  %v970_v53 = vpop.f32.mrf.mxu1 }
  0xe5   : > { %v9776_v2 = vadd.f32 %v7886_v28, %v7836_v10  ;;  %8137 = vmatprep.mubr.msk.f32.mxu0 %vm521_vm3, %v13170_v17  ;;  %v13173_v17 = vld [vmem:[#allocation19_spill] sm:$0xff] }
  0xe6   : > { %v682_v40 = vpop.f32.mrf.mxu0  ;;  %v7889_v35 = vpop.f32.mrf.mxu1  ;;  %8188 = vmatmul.mubr.msk.f32.gmra.mxu1 %vm521_vm3, %v13155_v23 }
  0xe7   : > { %v9782_v26 = vadd.f32 %v970_v53, %v682_v40  ;;  %8190 = vmatprep.mubr.msk.f32.mxu1 %vm521_vm3, %v13156_v29 }
  0xe8   : > { %v7839_v33 = vpop.f32.mrf.mxu0  ;;  %8138 = vmatmul.mubr.msk.f32.gmra.mxu0 %vm521_vm3, %v8977_v20  ;;  %v980_v4 = vpop.f32.mrf.mxu1 }
  0xe9   : > { %v9788_v37 = vadd.f32 %v7889_v35, %v7839_v33  ;;  %8140 = vmatprep.mubr.msk.f32.mxu0 %vm521_vm3, %v13171_v3 }
  0xea   : > { %v692_v27 = vpop.f32.mrf.mxu0  ;;  %v7892_v61 = vpop.f32.mrf.mxu1  ;;  %8191 = vmatmul.mubr.msk.f32.gmra.mxu1 %vm521_vm3, %v13157_v6 }
  0xeb   : > { %v9794_v23 = vadd.f32 %v980_v4, %v692_v27  ;;  %8193 = vmatprep.mubr.msk.f32.mxu1 %vm521_vm3, %v13158_v45  ;;  %v13174_v4 = vld [vmem:[#allocation21_spill] sm:$0xff] }
  0xec   : > { %v7842_v29 = vpop.f32.mrf.mxu0  ;;  %8141 = vmatmul.mubr.msk.f32.gmra.mxu0 %vm521_vm3, %v9002_v43  ;;  %v990_v20 = vpop.f32.mrf.mxu1 }
  0xed   : > { %v9800_v15 = vadd.f32 %v7892_v61, %v7842_v29  ;;  %8143 = vmatprep.mubr.msk.f32.mxu0 %vm521_vm3, %v13172_v18  ;;  %v13175_v61 = vld [vmem:[#allocation23_spill] sm:$0xff] }
  0xee   : > { %v702_v28 = vpop.f32.mrf.mxu0  ;;  %v7895_v10 = vpop.f32.mrf.mxu1  ;;  %8194 = vmatmul.mubr.msk.f32.gmra.mxu1 %vm521_vm3, %v13159_v57 }
  0xef   : > { %v9806_v6 = vadd.f32 %v990_v20, %v702_v28  ;;  %8196 = vmatprep.mubr.msk.f32.mxu1 %vm521_vm3, %v13160_v50  ;;  %v13176_v20 = vld [vmem:[#allocation25_spill] sm:$0xff] }
  0xf0   : > { %v7845_v45 = vpop.f32.mrf.mxu0  ;;  %8144 = vmatmul.mubr.msk.f32.gmra.mxu0 %vm521_vm3, %v9034_v1  ;;  %v1000_v43 = vpop.f32.mrf.mxu1 }
  0xf1   : > { %v9812_v53 = vadd.f32 %v7895_v10, %v7845_v45  ;;  %8146 = vmatprep.mubr.msk.f32.mxu0 %vm521_vm3, %v13173_v17 }
  0xf2   : > { %v712_v40 = vpop.f32.mrf.mxu0  ;;  %v7898_v35 = vpop.f32.mrf.mxu1  ;;  %8197 = vmatmul.mubr.msk.f32.gmra.mxu1 %vm521_vm3, %v13161_v13 }
  0xf3   : > { %v9818_v57 = vadd.f32 %v1000_v43, %v712_v40  ;;  %8199 = vmatprep.mubr.msk.f32.mxu1 %vm521_vm3, %v13162_v5  ;;  %v13179_v43 = vld [vmem:[#allocation29_spill] sm:$0xff] }
  0xf4   : > { %v7848_v50 = vpop.f32.mrf.mxu0  ;;  %8147 = vmatmul.mubr.msk.f32.gmra.mxu0 %vm521_vm3, %v9059_v32  ;;  %v1010_v1 = vpop.f32.mrf.mxu1 }
  0xf5   : > { %v9824_v33 = vadd.f32 %v7898_v35, %v7848_v50  ;;  %8149 = vmatprep.mubr.msk.f32.mxu0 %vm521_vm3, %v13174_v4 }
  0xf6   : > { %v722_v3 = vpop.f32.mrf.mxu0  ;;  %v7901_v27 = vpop.f32.mrf.mxu1  ;;  %8200 = vmatmul.mubr.msk.f32.gmra.mxu1 %vm521_vm3, %v13163_v34  ;;  %v13177_v34 = vld [vmem:[#allocation27_spill] sm:$0xff] }
  0xf7   : > { %v9830_v13 = vadd.f32 %v1010_v1, %v722_v3  ;;  %8202 = vmatprep.mubr.msk.f32.mxu1 %vm521_vm3, %v13164_v16  ;;  %v13183_v1 = vld [vmem:[#allocation34_spill] sm:$0xff] }
  0xf8   : > { %v7851_v5 = vpop.f32.mrf.mxu0  ;;  %8150 = vmatmul.mubr.msk.f32.gmra.mxu0 %vm521_vm3, %v13175_v61  ;;  %v9836_v32 = vpop.f32.mrf.mxu1  ;;  %v13187_v61 = vld [vmem:[#allocation37_spill] sm:$0xff] }
  0xf9   : > { %v9838_v29 = vadd.f32 %v7901_v27, %v7851_v5  ;;  %8152 = vmatprep.mubr.msk.f32.mxu0 %vm521_vm3, %v13176_v20 }
  0xfa   : > { %v9842_v18 = vpop.f32.mrf.mxu0  ;;  %v7904_v28 = vpop.f32.mrf.mxu1  ;;  %8203 = vmatmul.mubr.msk.f32.gmra.mxu1 %vm521_vm3, %v13165_v55  ;;  %v13181_v55 = vld [vmem:[#allocation31_spill] sm:$0xff] }
  0xfb   : > { %8205 = vmatprep.mubr.msk.f32.mxu1 %vm521_vm3, %v9189_v54 }
  0xfc   : > { %v7854_v16 = vpop.f32.mrf.mxu0  ;;  %8153 = vmatmul.mubr.msk.f32.gmra.mxu0 %vm521_vm3, %v13177_v34  ;;  %v9850_v10 = vpop.f32.mrf.mxu1 }
  0xfd   : > { %13178 = vst [vmem:[#allocation2_spill] sm:$0xff] %v9850_v10  ;;  %v9852_v45 = vadd.f32 %v7904_v28, %v7854_v16  ;;  %8155 = vmatprep.mubr.msk.f32.mxu0 %vm521_vm3, %v13179_v43 }
  0xfe   : > { %v9856_v17 = vpop.f32.mrf.mxu0  ;;  %v7907_v40 = vpop.f32.mrf.mxu1  ;;  %8206 = vmatmul.mubr.msk.f32.gmra.mxu1 %vm521_vm3, %v9217_v38 }
  0xff   : > { %13180 = vst [vmem:[#allocation3_spill] sm:$0xff] %v9856_v17  ;;  %8208 = vmatprep.mubr.msk.f32.mxu1 %vm521_vm3, %v9224_v11  ;;  %v13185_v11 = vld [vmem:[#allocation35_spill] sm:$0xff] }
 0x100   : > { %v7857_v54 = vpop.f32.mrf.mxu0  ;;  %8156 = vmatmul.mubr.msk.f32.gmra.mxu0 %vm521_vm3, %v13181_v55  ;;  %v9864_v35 = vpop.f32.mrf.mxu1 }
 0x101   : > { %13182 = vst [vmem:[#allocation6_spill] sm:$0xff] %v9864_v35  ;;  %v9866_v50 = vadd.f32 %v7907_v40, %v7857_v54  ;;  %8158 = vmatprep.mubr.msk.f32.mxu0 %vm521_vm3, %v13183_v1 }
 0x102   : > { %v9870_v4 = vpop.f32.mrf.mxu0  ;;  %v7910_v3 = vpop.f32.mrf.mxu1  ;;  %8209 = vmatmul.mubr.msk.f32.gmra.mxu1 %vm521_vm3, %v9243_v31 }
 0x103   : > { %13184 = vst [vmem:[#allocation8_spill] sm:$0xff] %v9870_v4  ;;  %8211 = vmatprep.mubr.msk.f32.mxu1 %vm521_vm3, %v9249_v48 }
 0x104   : > { %v7860_v38 = vpop.f32.mrf.mxu0  ;;  %8159 = vmatmul.mubr.msk.f32.gmra.mxu0 %vm521_vm3, %v13185_v11  ;;  %v9878_v27 = vpop.f32.mrf.mxu1 }
 0x105   : > { %13186 = vst [vmem:[#allocation9_spill] sm:$0xff] %v9878_v27  ;;  %v9880_v5 = vadd.f32 %v7910_v3, %v7860_v38  ;;  %8161 = vmatprep.mubr.msk.f32.mxu0 %vm521_vm3, %v13187_v61 }
 0x106   : > { %v9884_v20 = vpop.f32.mrf.mxu0  ;;  %v7913_v28 = vpop.f32.mrf.mxu1  ;;  %8212 = vmatmul.mubr.msk.f32.gmra.mxu1 %vm521_vm3, %v9263_v56 }
 0x107   : > { %13188 = vst [vmem:[#allocation11_spill] sm:$0xff] %v9884_v20  ;;  %8214 = vmatprep.mubr.msk.f32.mxu1 %vm521_vm3, %v9269_v30 }
 0x108   : > { %v7863_v31 = vpop.f32.mrf.mxu0  ;;  %8162 = vmatmul.mubr.msk.f32.gmra.mxu0 %vm521_vm3, %v9210_v42  ;;  %v9892_v48 = vpop.f32.mrf.mxu1 }
 0x109   : > { %13189 = vst [vmem:[#allocation12_spill] sm:$0xff] %v9892_v48  ;;  %v9894_v16 = vadd.f32 %v7913_v28, %v7863_v31  ;;  %8164 = vmatprep.mubr.msk.f32.mxu0 %vm521_vm3, %v9236_v59 }
 0x10a   : > { %v9898_v34 = vpop.f32.mrf.mxu0  ;;  %v7916_v43 = vpop.f32.mrf.mxu1  ;;  %8215 = vmatmul.mubr.msk.f32.gmra.mxu1 %vm521_vm3, %v9281_v0 }
 0x10b   : > { %13190 = vst [vmem:[#allocation14_spill] sm:$0xff] %v9898_v34  ;;  %8217 = vmatprep.mubr.msk.f32.mxu1 %vm521_vm3, %v9710_v8 }
 0x10c   : > { %v7866_v56 = vpop.f32.mrf.mxu0  ;;  %8165 = vmatmul.mubr.msk.f32.gmra.mxu0 %vm521_vm3, %v9233_v52  ;;  %v9906_v42 = vpop.f32.mrf.mxu1 }
 0x10d   : > { %13191 = vst [vmem:[#allocation15_spill] sm:$0xff] %v9906_v42  ;;  %v9908_v40 = vadd.f32 %v7916_v43, %v7866_v56  ;;  %8167 = vmatprep.mubr.msk.f32.mxu0 %vm521_vm3, %v9538_v9 }
 0x10e   : > { %v9912_v54 = vpop.f32.mrf.mxu0  ;;  %v7919_v55 = vpop.f32.mrf.mxu1  ;;  %8218 = vmatmul.mubr.msk.f32.gmra.mxu1 %vm521_vm3, %v9722_v22 }
 0x10f   : > { %13192 = vst [vmem:[#allocation17_spill] sm:$0xff] %v9912_v54  ;;  %8220 = vmatprep.mubr.msk.f32.mxu1 %vm521_vm3, %v9269_v30  ;;  %v13221_v54 = vld [vmem:[#allocation54_spill] sm:$0xff] }
 0x110   : > { %v7869_v8 = vpop.f32.mrf.mxu0  ;;  %8168 = vmatmul.mubr.msk.f32.gmra.mxu0 %vm521_vm3, %v9556_v21  ;;  %v9920_v1 = vpop.f32.mrf.mxu1 }
 0x111   : > { %13193 = vst [vmem:[#allocation18_spill] sm:$0xff] %v9920_v1  ;;  %v9922_v3 = vadd.f32 %v7919_v55, %v7869_v8  ;;  %8170 = vmatprep.mubr.msk.f32.mxu0 %vm521_vm3, %v9236_v59 }
 0x112   : > { %v9926_v9 = vpop.f32.mrf.mxu0  ;;  %v7922_v38 = vpop.f32.mrf.mxu1  ;;  %8221 = vmatmul.mubr.msk.f32.gmra.mxu1 %vm521_vm3, %v9281_v0 }
 0x113   : > { %13194 = vst [vmem:[#allocation20_spill] sm:$0xff] %v9926_v9  ;;  %v13217_v9 = vld [vmem:[#allocation52_spill] sm:$0xff] }
 0x114   : > { %v7872_v22 = vpop.f32.mrf.mxu0  ;;  %8171 = vmatmul.mubr.msk.f32.gmra.mxu0 %vm521_vm3, %v9233_v52  ;;  %v9932_v30 = vpop.f32.mrf.mxu1 }
 0x115   : > { %13195 = vst [vmem:[#allocation22_spill] sm:$0xff] %v9932_v30  ;;  %v9934_v21 = vadd.f32 %v7922_v38, %v7872_v22  ;;  %8225 = vmatprep.mubr.msk.f32.mxu0 %vm521_vm3, %v9286_v14  ;;  %v13207_v30 = vld [vmem:[#allocation47_spill] sm:$0xff] }
 0x116   : > { %v9938_v11 = vpop.f32.mrf.mxu0  ;;  %v7977_v59 = vpop.f32.mrf.mxu1 }
 0x117   : > { %13196 = vst [vmem:[#allocation24_spill] sm:$0xff] %v9938_v11  ;;  %v13211_v11 = vld [vmem:[#allocation49_spill] sm:$0xff] }
 0x118   : > { %v7927_v61 = vpop.f32.mrf.mxu0  ;;  %8226 = vmatmul.mubr.msk.f32.vlgmr.msra.gmra.mxu0 %vm521_vm3, %v9295_v19  ;;  %v9942_v28 = vpop.f32.mrf.mxu1 }
 0x119   : > { %v1466_v0 = vadd.f32 %v7927_v61, %v9738_v12  ;;  %8228 = vmatprep.mubr.msk.f32.mxu0 %vm521_vm3, %v9337_v36 }
 0x11a   : > { %v1306_v52 = vpop.f32.mrf.mxu0  ;;  %v7980_v31 = vpop.f32.mrf.mxu1 }
 0x11b   : > { %v9948_v43 = vadd.f32 %v1306_v52, %v9746_v24  ;;  %v9950_v14 = vadd.f32 %v7977_v59, %v1466_v0  ;;  %v13197_v0 = vld [vmem:[#allocation38_spill] sm:$0xff] }
 0x11c   : > { %v7930_v56 = vpop.f32.mrf.mxu0  ;;  %8229 = vmatmul.mubr.msk.f32.gmra.mxu0 %vm521_vm3, %v9348_v46  ;;  %v9954_v55 = vpop.f32.mrf.mxu1 }
 0x11d   : > { %v1468_v19 = vadd.f32 %v7930_v56, %v9752_v41  ;;  %8231 = vmatprep.mubr.msk.f32.mxu0 %vm521_vm3, %v9354_v25 }
 0x11e   : > { %v1316_v12 = vpop.f32.mrf.mxu0  ;;  %v7983_v36 = vpop.f32.mrf.mxu1 }
 0x11f   : > { %v9960_v8 = vadd.f32 %v1316_v12, %v9758_v44  ;;  %v9962_v24 = vadd.f32 %v7980_v31, %v1468_v19  ;;  %v13198_v31 = vld [vmem:[#allocation39_spill] sm:$0xff]  ;;  %v13199_v12 = vld [vmem:[#allocation40_spill] sm:$0xff] }
 0x120   : > { %v7933_v38 = vpop.f32.mrf.mxu0  ;;  %8232 = vmatmul.mubr.msk.f32.gmra.mxu0 %vm521_vm3, %v9365_v62  ;;  %v9966_v22 = vpop.f32.mrf.mxu1 }
 0x121   : > { %v1470_v46 = vadd.f32 %v7933_v38, %v9764_v7  ;;  %8234 = vmatprep.mubr.msk.f32.mxu0 %vm521_vm3, %v9371_v39 }
 0x122   : > { %v1326_v41 = vpop.f32.mrf.mxu0  ;;  %v7986_v25 = vpop.f32.mrf.mxu1 }
 0x123   : > { %v9972_v59 = vadd.f32 %v1326_v41, %v9770_v63  ;;  %v9974_v44 = vadd.f32 %v7983_v36, %v1470_v46  ;;  %v13200_v46 = vld [vmem:[#allocation41_spill] sm:$0xff] }
 0x124   : > { %v7936_v61 = vpop.f32.mrf.mxu0  ;;  %8235 = vmatmul.mubr.msk.f32.gmra.mxu0 %vm521_vm3, %v13197_v0  ;;  %v9978_v52 = vpop.f32.mrf.mxu1  ;;  %v13201_v0 = vld [vmem:[#allocation42_spill] sm:$0xff] }
 0x125   : > { %v1472_v62 = vadd.f32 %v7936_v61, %v9776_v2  ;;  %8237 = vmatprep.mubr.msk.f32.mxu0 %vm521_vm3, %v13198_v31 }
 0x126   : > { %v1336_v7 = vpop.f32.mrf.mxu0  ;;  %v7989_v39 = vpop.f32.mrf.mxu1 }
 0x127   : > { %v9984_v56 = vadd.f32 %v1336_v7, %v9782_v26  ;;  %v9986_v63 = vadd.f32 %v7986_v25, %v1472_v62  ;;  %v13202_v7 = vld [vmem:[#allocation43_spill] sm:$0xff] }
 0x128   : > { %v7939_v19 = vpop.f32.mrf.mxu0  ;;  %8238 = vmatmul.mubr.msk.f32.gmra.mxu0 %vm521_vm3, %v13199_v12  ;;  %v9990_v36 = vpop.f32.mrf.mxu1 }
 0x129   : > { %v1474_v38 = vadd.f32 %v7939_v19, %v9788_v37  ;;  %8240 = vmatprep.mubr.msk.f32.mxu0 %vm521_vm3, %v13200_v46 }
 0x12a   : > { %v1346_v2 = vpop.f32.mrf.mxu0  ;;  %v7992_v41 = vpop.f32.mrf.mxu1 }
 0x12b   : > { %v9996_v61 = vadd.f32 %v1346_v2, %v9794_v23  ;;  %v9998_v26 = vadd.f32 %v7989_v39, %v1474_v38  ;;  %v13203_v38 = vld [vmem:[#allocation44_spill] sm:$0xff] }
 0x12c   : > { %v7942_v25 = vpop.f32.mrf.mxu0  ;;  %8241 = vmatmul.mubr.msk.f32.gmra.mxu0 %vm521_vm3, %v13201_v0  ;;  %v10002_v62 = vpop.f32.mrf.mxu1  ;;  %v13204_v0 = vld [vmem:[#allocation45_spill] sm:$0xff] }
 0x12d   : > { %v1476_v31 = vadd.f32 %v7942_v25, %v9800_v15  ;;  %8243 = vmatprep.mubr.msk.f32.mxu0 %vm521_vm3, %v13202_v7 }
 0x12e   : > { %v1356_v37 = vpop.f32.mrf.mxu0  ;;  %v7995_v19 = vpop.f32.mrf.mxu1 }
 0x12f   : > { %v10008_v12 = vadd.f32 %v1356_v37, %v9806_v6  ;;  %v10010_v23 = vadd.f32 %v7992_v41, %v1476_v31  ;;  %v13205_v31 = vld [vmem:[#allocation46_spill] sm:$0xff] }
 0x130   : > { %v7945_v39 = vpop.f32.mrf.mxu0  ;;  %8244 = vmatmul.mubr.msk.f32.gmra.mxu0 %vm521_vm3, %v13203_v38  ;;  %v10014_v46 = vpop.f32.mrf.mxu1 }
 0x131   : > { %v1478_v2 = vadd.f32 %v7945_v39, %v9812_v53  ;;  %8246 = vmatprep.mubr.msk.f32.mxu0 %vm521_vm3, %v13204_v0 }
 0x132   : > { %v1366_v15 = vpop.f32.mrf.mxu0  ;;  %v7998_v25 = vpop.f32.mrf.mxu1 }
 0x133   : > { %v10020_v7 = vadd.f32 %v1366_v15, %v9818_v57  ;;  %v10022_v6 = vadd.f32 %v7995_v19, %v1478_v2  ;;  %v13209_v2 = vld [vmem:[#allocation48_spill] sm:$0xff] }
 0x134   : > { %v7948_v41 = vpop.f32.mrf.mxu0  ;;  %8247 = vmatmul.mubr.msk.f32.gmra.mxu0 %vm521_vm3, %v13205_v31  ;;  %v10026_v37 = vpop.f32.mrf.mxu1 }
 0x135   : > { %13206 = vst [vmem:[#allocation26_spill] sm:$0xff] %v10026_v37  ;;  %v1480_v38 = vadd.f32 %v7948_v41, %v9824_v33  ;;  %8249 = vmatprep.mubr.msk.f32.mxu0 %vm521_vm3, %v13207_v30 }
 0x136   : > { %v1376_v53 = vpop.f32.mrf.mxu0  ;;  %v8001_v39 = vpop.f32.mrf.mxu1 }
 0x137   : > { %v10032_v0 = vadd.f32 %v1376_v53, %v9830_v13  ;;  %v10034_v57 = vadd.f32 %v7998_v25, %v1480_v38  ;;  %v13213_v53 = vld [vmem:[#allocation50_spill] sm:$0xff] }
 0x138   : > { %v7951_v19 = vpop.f32.mrf.mxu0  ;;  %8250 = vmatmul.mubr.msk.f32.gmra.mxu0 %vm521_vm3, %v13209_v2  ;;  %v10038_v15 = vpop.f32.mrf.mxu1  ;;  %v13215_v2 = vld [vmem:[#allocation51_spill] sm:$0xff] }
 0x139   : > { %13208 = vst [vmem:[#allocation28_spill] sm:$0xff] %v10032_v0  ;;  %13210 = vst [vmem:[#allocation30_spill] sm:$0xff] %v10038_v15  ;;  %v1482_v31 = vadd.f32 %v7951_v19, %v9838_v29  ;;  %8252 = vmatprep.mubr.msk.f32.mxu0 %vm521_vm3, %v13211_v11 }
 0x13a   : > { %v10043_v33 = vpop.f32.mrf.mxu0  ;;  %v8004_v30 = vpop.f32.mrf.mxu1 }
 0x13b   : > { %13212 = vst [vmem:[#allocation32_spill] sm:$0xff] %v10043_v33  ;;  %v10045_v41 = vadd.f32 %v8001_v39, %v1482_v31 }
 0x13c   : > { %v7954_v13 = vpop.f32.mrf.mxu0  ;;  %8253 = vmatmul.mubr.msk.f32.gmra.mxu0 %vm521_vm3, %v13213_v53  ;;  %v10049_v25 = vpop.f32.mrf.mxu1  ;;  %v13219_v53 = vld [vmem:[#allocation53_spill] sm:$0xff] }
 0x13d   : > { %13214 = vst [vmem:[#allocation33_spill] sm:$0xff] %v10049_v25  ;;  %v1484_v38 = vadd.f32 %v7954_v13, %v9852_v45  ;;  %8255 = vmatprep.mubr.msk.f32.mxu0 %vm521_vm3, %v13215_v2 }
 0x13e   : > { %v10054_v29 = vpop.f32.mrf.mxu0  ;;  %v8007_v19 = vpop.f32.mrf.mxu1 }
 0x13f   : > { %13216 = vst [vmem:[#allocation36_spill] sm:$0xff] %v10054_v29  ;;  %v10056_v11 = vadd.f32 %v8004_v30, %v1484_v38  ;;  %v13223_v38 = vld [vmem:[#allocation55_spill] sm:$0xff] }
 0x140   : > { %v7957_v1 = vpop.f32.mrf.mxu0  ;;  %8256 = vmatmul.mubr.msk.f32.gmra.mxu0 %vm521_vm3, %v13217_v9  ;;  %v10060_v39 = vpop.f32.mrf.mxu1 }
 0x141   : > { %13218 = vst [vmem:[#allocation4_spill] sm:$0xff] %v10060_v39  ;;  %v1486_v31 = vadd.f32 %v7957_v1, %v9866_v50  ;;  %8258 = vmatprep.mubr.msk.f32.mxu0 %vm521_vm3, %v13219_v53 }
 0x142   : > { %v10065_v45 = vpop.f32.mrf.mxu0  ;;  %v8010_v13 = vpop.f32.mrf.mxu1 }
 0x143   : > { %13220 = vst [vmem:[#allocation5_spill] sm:$0xff] %v10065_v45  ;;  %v10067_v2 = vadd.f32 %v8007_v19, %v1486_v31 }
 0x144   : > { %v7960_v42 = vpop.f32.mrf.mxu0  ;;  %8259 = vmatmul.mubr.msk.f32.gmra.mxu0 %vm521_vm3, %v13221_v54  ;;  %v10071_v30 = vpop.f32.mrf.mxu1 }
 0x145   : > { %13222 = vst [vmem:[#allocation7_spill] sm:$0xff] %v10071_v30  ;;  %v1488_v9 = vadd.f32 %v7960_v42, %v9880_v5  ;;  %8261 = vmatprep.mubr.msk.f32.mxu0 %vm521_vm3, %v13223_v38 }
 0x146   : > { %v10076_v50 = vpop.f32.mrf.mxu0  ;;  %v8013_v1 = vpop.f32.mrf.mxu1 }
 0x147   : > { %13224 = vst [vmem:[#allocation10_spill] sm:$0xff] %v10076_v50  ;;  %v10078_v53 = vadd.f32 %v8010_v13, %v1488_v9 }
 0x148   : > { %v7963_v48 = vpop.f32.mrf.mxu0  ;;  %8262 = vmatmul.mubr.msk.f32.gmra.mxu0 %vm521_vm3, %v9543_v60  ;;  %v10082_v19 = vpop.f32.mrf.mxu1 }
 0x149   : > { %13225 = vst [vmem:[#allocation13_spill] sm:$0xff] %v10082_v19  ;;  %v1490_v54 = vadd.f32 %v7963_v48, %v9894_v16  ;;  %8264 = vmatprep.mubr.msk.f32.mxu0 %vm521_vm3, %v9549_v51 }
 0x14a   : > { %v10087_v5 = vpop.f32.mrf.mxu0  ;;  %v8016_v42 = vpop.f32.mrf.mxu1 }
 0x14b   : > { %13226 = vst [vmem:[#allocation16_spill] sm:$0xff] %v10087_v5  ;;  %v10089_v31 = vadd.f32 %v8013_v1, %v1490_v54 }
 0x14c   : > { %v7966_v38 = vpop.f32.mrf.mxu0  ;;  %8265 = vmatmul.mubr.msk.f32.gmra.mxu0 %vm521_vm3, %v9563_v58  ;;  %v10093_v13 = vpop.f32.mrf.mxu1 }
 0x14d   : > { %13227 = vst [vmem:[#allocation19_spill] sm:$0xff] %v10093_v13  ;;  %v1492_v60 = vadd.f32 %v7966_v38, %v9908_v40  ;;  %8267 = vmatprep.mubr.msk.f32.mxu0 %vm521_vm3, %v9703_v47 }
 0x14e   : > { %v10098_v48 = vpop.f32.mrf.mxu0  ;;  %v8019_v16 = vpop.f32.mrf.mxu1 }
 0x14f   : > { %13228 = vst [vmem:[#allocation21_spill] sm:$0xff] %v10098_v48  ;;  %v10100_v9 = vadd.f32 %v8016_v42, %v1492_v60 }
 0x150   : > { %v7969_v19 = vpop.f32.mrf.mxu0  ;;  %8268 = vmatmul.mubr.msk.f32.gmra.mxu0 %vm521_vm3, %v9715_v49  ;;  %v10104_v1 = vpop.f32.mrf.mxu1 }
 0x151   : > { %13229 = vst [vmem:[#allocation23_spill] sm:$0xff] %v10104_v1  ;;  %v1494_v54 = vadd.f32 %v7969_v19, %v9922_v3  ;;  %8270 = vmatprep.mubr.msk.f32.mxu0 %vm521_vm3, %v9549_v51 }
 0x152   : > { %v10109_v40 = vpop.f32.mrf.mxu0  ;;  %v8022_v38 = vpop.f32.mrf.mxu1 }
 0x153   : > { %13230 = vst [vmem:[#allocation25_spill] sm:$0xff] %v10109_v40  ;;  %v10111_v47 = vadd.f32 %v8019_v16, %v1494_v54 }
 0x154   : > { %v7972_v13 = vpop.f32.mrf.mxu0  ;;  %8271 = vmatmul.mubr.msk.f32.gmra.mxu0 %vm521_vm3, %v9563_v58  ;;  %v10115_v42 = vpop.f32.mrf.mxu1 }
 0x155   : > { %13231 = vst [vmem:[#allocation27_spill] sm:$0xff] %v10115_v42  ;;  %v1496_v49 = vadd.f32 %v7972_v13, %v9934_v21 }
 0x156   : > { %v10118_v60 = vpop.f32.mrf.mxu0  ;;  %v8077_v1 = vpop.f32.mrf.mxu1 }
 0x157   : > { %13232 = vst [vmem:[#allocation29_spill] sm:$0xff] %v10118_v60  ;;  %v10120_v3 = vadd.f32 %v8022_v38, %v1496_v49 }
 0x158   : > { %v8027_v19 = vpop.f32.mrf.mxu0  ;;  %v10122_v51 = vpop.f32.mrf.mxu1 }
 0x159   : > { %v2005_v40 = vadd.f32 %v8027_v19, %v9950_v14 }
 0x15a   : > { %v10125_v16 = vpop.f32.mrf.mxu0  ;;  %v8080_v54 = vpop.f32.mrf.mxu1 }
 0x15b   : > { %v10127_v48 = vadd.f32 %v8077_v1, %v2005_v40 }
 0x15c   : > { %v8030_v58 = vpop.f32.mrf.mxu0  ;;  %v10129_v5 = vpop.f32.mrf.mxu1 }
 0x15d   : > { %v2007_v21 = vadd.f32 %v8030_v58, %v9962_v24 }
 0x15e   : > { %v10132_v13 = vpop.f32.mrf.mxu0  ;;  %v8083_v42 = vpop.f32.mrf.mxu1 }
 0x15f   : > { %v10134_v38 = vadd.f32 %v8080_v54, %v2007_v21 }
 0x160   : > { %v8033_v49 = vpop.f32.mrf.mxu0  ;;  %v10136_v60 = vpop.f32.mrf.mxu1 }
 0x161   : > { %v2009_v14 = vadd.f32 %v8033_v49, %v9974_v44 }
 0x162   : > { %v10139_v19 = vpop.f32.mrf.mxu0  ;;  %v8086_v30 = vpop.f32.mrf.mxu1 }
 0x163   : > { %v10141_v1 = vadd.f32 %v8083_v42, %v2009_v14 }
 0x164   : > { %v8036_v40 = vpop.f32.mrf.mxu0  ;;  %v10143_v34 = vpop.f32.mrf.mxu1 }
 0x165   : > { %v2011_v24 = vadd.f32 %v8036_v40, %v9986_v63 }
 0x166   : > { %v10146_v58 = vpop.f32.mrf.mxu0  ;;  %v8089_v50 = vpop.f32.mrf.mxu1 }
 0x167   : > { %v10148_v54 = vadd.f32 %v8086_v30, %v2011_v24 }
 0x168   : > { %v8039_v21 = vpop.f32.mrf.mxu0  ;;  %v10150_v39 = vpop.f32.mrf.mxu1 }
 0x169   : > { %v2013_v44 = vadd.f32 %v8039_v21, %v9998_v26 }
 0x16a   : > { %v10153_v49 = vpop.f32.mrf.mxu0  ;;  %v8092_v27 = vpop.f32.mrf.mxu1 }
 0x16b   : > { %v10155_v42 = vadd.f32 %v8089_v50, %v2013_v44 }
 0x16c   : > { %v8042_v14 = vpop.f32.mrf.mxu0  ;;  %v10157_v20 = vpop.f32.mrf.mxu1 }
 0x16d   : > { %13233 = vst [vmem:[#allocation31_spill] sm:$0xff] %v10157_v20  ;;  %v2015_v63 = vadd.f32 %v8042_v14, %v10010_v23 }
 0x16e   : > { %v10160_v40 = vpop.f32.mrf.mxu0  ;;  %v8095_v45 = vpop.f32.mrf.mxu1 }
 0x16f   : > { %v10162_v30 = vadd.f32 %v8092_v27, %v2015_v63 }
 0x170   : > { %v8045_v24 = vpop.f32.mrf.mxu0  ;;  %v10164_v25 = vpop.f32.mrf.mxu1 }
 0x171   : > { %13234 = vst [vmem:[#allocation34_spill] sm:$0xff] %v10164_v25  ;;  %v2017_v26 = vadd.f32 %v8045_v24, %v10022_v6 }
 0x172   : > { %v10167_v21 = vpop.f32.mrf.mxu0  ;;  %v8098_v35 = vpop.f32.mrf.mxu1 }
 0x173   : > { %13235 = vst [vmem:[#allocation35_spill] sm:$0xff] %v10167_v21  ;;  %v10169_v50 = vadd.f32 %v8095_v45, %v2017_v26 }
 0x174   : > { %v8048_v44 = vpop.f32.mrf.mxu0  ;;  %v10171_v4 = vpop.f32.mrf.mxu1 }
 0x175   : > { %13236 = vst [vmem:[#allocation37_spill] sm:$0xff] %v10171_v4  ;;  %v2019_v23 = vadd.f32 %v8048_v44, %v10034_v57 }
 0x176   : > { %v10174_v14 = vpop.f32.mrf.mxu0  ;;  %v8101_v29 = vpop.f32.mrf.mxu1 }
 0x177   : > { %13237 = vst [vmem:[#allocation38_spill] sm:$0xff] %v10174_v14  ;;  %v10176_v27 = vadd.f32 %v8098_v35, %v2019_v23 }
 0x178   : > { %v8051_v63 = vpop.f32.mrf.mxu0  ;;  %v10178_v15 = vpop.f32.mrf.mxu1 }
 0x179   : > { %13238 = vst [vmem:[#allocation39_spill] sm:$0xff] %v10178_v15  ;;  %v2021_v6 = vadd.f32 %v8051_v63, %v10045_v41 }
 0x17a   : > { %v10181_v24 = vpop.f32.mrf.mxu0  ;;  %v8104_v25 = vpop.f32.mrf.mxu1 }
 0x17b   : > { %13239 = vst [vmem:[#allocation40_spill] sm:$0xff] %v10181_v24  ;;  %v10183_v45 = vadd.f32 %v8101_v29, %v2021_v6 }
 0x17c   : > { %v8054_v26 = vpop.f32.mrf.mxu0  ;;  %v10185_v10 = vpop.f32.mrf.mxu1 }
 0x17d   : > { %13240 = vst [vmem:[#allocation41_spill] sm:$0xff] %v10185_v10  ;;  %v2023_v57 = vadd.f32 %v8054_v26, %v10056_v11 }
 0x17e   : > { %v10188_v44 = vpop.f32.mrf.mxu0  ;;  %v8107_v4 = vpop.f32.mrf.mxu1 }
 0x17f   : > { %13241 = vst [vmem:[#allocation42_spill] sm:$0xff] %v10188_v44  ;;  %v10190_v35 = vadd.f32 %v8104_v25, %v2023_v57 }
 0x180   : > { %v8057_v23 = vpop.f32.mrf.mxu0  ;;  %v10192_v14 = vpop.f32.mrf.mxu1 }
 0x181   : > { %13242 = vst [vmem:[#allocation43_spill] sm:$0xff] %v10192_v14  ;;  %v2025_v41 = vadd.f32 %v8057_v23, %v10067_v2 }
 0x182   : > { %v10195_v63 = vpop.f32.mrf.mxu0  ;;  %v8110_v15 = vpop.f32.mrf.mxu1 }
 0x183   : > { %13243 = vst [vmem:[#allocation44_spill] sm:$0xff] %v10195_v63  ;;  %v10197_v29 = vadd.f32 %v8107_v4, %v2025_v41 }
 0x184   : > { %v8060_v6 = vpop.f32.mrf.mxu0  ;;  %v10199_v24 = vpop.f32.mrf.mxu1 }
 0x185   : > { %13244 = vst [vmem:[#allocation45_spill] sm:$0xff] %v10199_v24  ;;  %v2027_v11 = vadd.f32 %v8060_v6, %v10078_v53 }
 0x186   : > { %v10202_v26 = vpop.f32.mrf.mxu0  ;;  %v8113_v10 = vpop.f32.mrf.mxu1 }
 0x187   : > { %13245 = vst [vmem:[#allocation46_spill] sm:$0xff] %v10202_v26  ;;  %v10204_v25 = vadd.f32 %v8110_v15, %v2027_v11 }
 0x188   : > { %v8063_v57 = vpop.f32.mrf.mxu0  ;;  %v10206_v44 = vpop.f32.mrf.mxu1 }
 0x189   : > { %13246 = vst [vmem:[#allocation47_spill] sm:$0xff] %v10206_v44  ;;  %v2029_v2 = vadd.f32 %v8063_v57, %v10089_v31 }
 0x18a   : > { %v10209_v23 = vpop.f32.mrf.mxu0  ;;  %v8116_v14 = vpop.f32.mrf.mxu1 }
 0x18b   : > { %13247 = vst [vmem:[#allocation48_spill] sm:$0xff] %v10209_v23  ;;  %v10211_v4 = vadd.f32 %v8113_v10, %v2029_v2 }
 0x18c   : > { %v8066_v41 = vpop.f32.mrf.mxu0  ;;  %v10213_v63 = vpop.f32.mrf.mxu1 }
 0x18d   : > { %13248 = vst [vmem:[#allocation49_spill] sm:$0xff] %v10213_v63  ;;  %v2031_v53 = vadd.f32 %v8066_v41, %v10100_v9 }
 0x18e   : > { %v10216_v6 = vpop.f32.mrf.mxu0  ;;  %v8119_v24 = vpop.f32.mrf.mxu1 }
 0x18f   : > { %13249 = vst [vmem:[#allocation50_spill] sm:$0xff] %v10216_v6  ;;  %v10218_v15 = vadd.f32 %v8116_v14, %v2031_v53 }
 0x190   : > { %v8069_v11 = vpop.f32.mrf.mxu0  ;;  %v10220_v26 = vpop.f32.mrf.mxu1 }
 0x191   : > { %13250 = vst [vmem:[#allocation51_spill] sm:$0xff] %v10220_v26  ;;  %v2033_v31 = vadd.f32 %v8069_v11, %v10111_v47 }
 0x192   : > { %v10223_v57 = vpop.f32.mrf.mxu0  ;;  %v8122_v44 = vpop.f32.mrf.mxu1 }
 0x193   : > { %13251 = vst [vmem:[#allocation52_spill] sm:$0xff] %v10223_v57  ;;  %v10225_v10 = vadd.f32 %v8119_v24, %v2033_v31 }
 0x194   : > { %v8072_v2 = vpop.f32.mrf.mxu0  ;;  %v10227_v23 = vpop.f32.mrf.mxu1 }
 0x195   : > { %13252 = vst [vmem:[#allocation53_spill] sm:$0xff] %v10227_v23  ;;  %v2035_v9 = vadd.f32 %v8072_v2, %v10120_v3 }
 0x196   : > { %v10230_v41 = vpop.f32.mrf.mxu0  ;;  %v10232_v63 = vpop.f32.mrf.mxu1 }
 0x197   : > { %13253 = vst [vmem:[#allocation54_spill] sm:$0xff] %v10230_v41  ;;  %v10234_v14 = vadd.f32 %v8122_v44, %v2035_v9 }
 0x198   : > { %v8127_v53 = vpop.f32.mrf.mxu0  ;;  %v10241_v11 = vpop.f32.mrf.mxu1 }
 0x199   : > { %v10237_v26 = vadd.f32 %v8127_v53, %v10127_v48 }
 0x19a   : > { %v10239_v47 = vpop.f32.mrf.mxu0  ;;  %v10248_v3 = vpop.f32.mrf.mxu1 }
 0x19c   : > { %v8130_v24 = vpop.f32.mrf.mxu0  ;;  %v10253_v9 = vpop.f32.mrf.mxu1 }
 0x19d   : > { %v10244_v31 = vadd.f32 %v8130_v24, %v10134_v38 }
 0x19e   : > { %v10246_v23 = vpop.f32.mrf.mxu0  ;;  %v10260_v57 = vpop.f32.mrf.mxu1 }
 0x1a0   : > { %v8133_v2 = vpop.f32.mrf.mxu0  ;;  %v10267_v17 = vpop.f32.mrf.mxu1 }
 0x1a1   : > { %v10251_v44 = vadd.f32 %v8133_v2, %v10141_v1 }
 0x1a2   : > { %v10255_v48 = vpop.f32.mrf.mxu0  ;;  %v10274_v37 = vpop.f32.mrf.mxu1 }
 0x1a4   : > { %v8136_v53 = vpop.f32.mrf.mxu0  ;;  %v10281_v20 = vpop.f32.mrf.mxu1 }
 0x1a5   : > { %v10258_v41 = vadd.f32 %v8136_v53, %v10148_v54 }
 0x1a6   : > { %v10262_v38 = vpop.f32.mrf.mxu0  ;;  %v10288_v21 = vpop.f32.mrf.mxu1 }
 0x1a8   : > { %v8139_v24 = vpop.f32.mrf.mxu0 }
 0x1a9   : > { %v10265_v6 = vadd.f32 %v8139_v24, %v10155_v42 }
 0x1aa   : > { %v10269_v1 = vpop.f32.mrf.mxu0 }
 0x1ab   : > { %13254 = vst [vmem:[#allocation55_spill] sm:$0xff] %v10265_v6 }
 0x1ac   : > { %v8142_v2 = vpop.f32.mrf.mxu0 }
 0x1ad   : > { %v10272_v33 = vadd.f32 %v8142_v2, %v10162_v30 }
 0x1ae   : > { %v10276_v54 = vpop.f32.mrf.mxu0 }
 0x1af   : > { %13255 = vst [vmem:[#allocation56_spill] sm:$0xff] %v10272_v33  ;;  %13256 = vst [vmem:[#allocation57_spill] sm:$0xff] %v10276_v54  ;;  %v10295_v54 = vpop.f32.mrf.mxu1 }
 0x1b0   : > { %v8145_v53 = vpop.f32.mrf.mxu0 }
 0x1b1   : > { %v10279_v0 = vadd.f32 %v8145_v53, %v10169_v50 }
 0x1b2   : > { %v10283_v42 = vpop.f32.mrf.mxu0 }
 0x1b3   : > { %13257 = vst [vmem:[#allocation58_spill] sm:$0xff] %v10279_v0  ;;  %13258 = vst [vmem:[#allocation59_spill] sm:$0xff] %v10283_v42  ;;  %v10302_v42 = vpop.f32.mrf.mxu1 }
 0x1b4   : > { %v8148_v24 = vpop.f32.mrf.mxu0 }
 0x1b5   : > { %v10286_v6 = vadd.f32 %v8148_v24, %v10176_v27 }
 0x1b6   : > { %v10290_v30 = vpop.f32.mrf.mxu0 }
 0x1b7   : > { %13259 = vst [vmem:[#allocation60_spill] sm:$0xff] %v10286_v6  ;;  %13260 = vst [vmem:[#allocation61_spill] sm:$0xff] %v10290_v30  ;;  %v10309_v30 = vpop.f32.mrf.mxu1 }
 0x1b8   : > { %v8151_v2 = vpop.f32.mrf.mxu0 }
 0x1b9   : > { %v10293_v33 = vadd.f32 %v8151_v2, %v10183_v45 }
 0x1ba   : > { %v10297_v50 = vpop.f32.mrf.mxu0 }
 0x1bb   : > { %13261 = vst [vmem:[#allocation62_spill] sm:$0xff] %v10293_v33  ;;  %13262 = vst [vmem:[#allocation63_spill] sm:$0xff] %v10297_v50  ;;  %v10316_v50 = vpop.f32.mrf.mxu1 }
 0x1bc   : > { %v8154_v53 = vpop.f32.mrf.mxu0 }
 0x1bd   : > { %v10300_v0 = vadd.f32 %v8154_v53, %v10190_v35 }
 0x1be   : > { %v10304_v27 = vpop.f32.mrf.mxu0 }
 0x1bf   : > { %13263 = vst [vmem:[#allocation64_spill] sm:$0xff] %v10300_v0  ;;  %13264 = vst [vmem:[#allocation65_spill] sm:$0xff] %v10304_v27  ;;  %v10323_v27 = vpop.f32.mrf.mxu1 }
 0x1c0   : > { %v8157_v24 = vpop.f32.mrf.mxu0 }
 0x1c1   : > { %v10307_v6 = vadd.f32 %v8157_v24, %v10197_v29 }
 0x1c2   : > { %v10311_v45 = vpop.f32.mrf.mxu0 }
 0x1c3   : > { %13265 = vst [vmem:[#allocation66_spill] sm:$0xff] %v10307_v6  ;;  %13266 = vst [vmem:[#allocation67_spill] sm:$0xff] %v10311_v45  ;;  %v1732_v6 = vadd.f32 %v9942_v28, %v9948_v43 }
 0x1c4   : > { %v8160_v2 = vpop.f32.mrf.mxu0 }
 0x1c5   : > { %v10314_v33 = vadd.f32 %v8160_v2, %v10204_v25  ;;  %v10332_v25 = vpop.f32.mrf.mxu1 }
 0x1c6   : > { %v10318_v35 = vpop.f32.mrf.mxu0 }
 0x1c7   : > { %13267 = vst [vmem:[#allocation68_spill] sm:$0xff] %v10314_v33  ;;  %13268 = vst [vmem:[#allocation69_spill] sm:$0xff] %v10318_v35  ;;  %v2004_v33 = vadd.f32 %v10125_v16, %v1732_v6 }
 0x1c8   : > { %v8163_v53 = vpop.f32.mrf.mxu0 }
 0x1c9   : > { %v10321_v0 = vadd.f32 %v8163_v53, %v10211_v4  ;;  %v1734_v4 = vadd.f32 %v9954_v55, %v9960_v8  ;;  %v2275_v28 = vadd.f32 %v10122_v51, %v2004_v33  ;;  %v1738_v51 = vadd.f32 %v9978_v52, %v9984_v56 }
 0x1ca   : > { %v10325_v29 = vpop.f32.mrf.mxu0  ;;  %v1740_v52 = vadd.f32 %v9990_v36, %v9996_v61 }
 0x1cb   : > { %13269 = vst [vmem:[#allocation70_spill] sm:$0xff] %v10321_v0  ;;  %13270 = vst [vmem:[#allocation71_spill] sm:$0xff] %v10325_v29  ;;  %v10342_v0 = vpop.f32.mrf.mxu1  ;;  %v2006_v43 = vadd.f32 %v10132_v13, %v1734_v4  ;;  %v2537_v16 = vadd.f32 %v10239_v47, %v2275_v28 }
 0x1cc   : > { %v8166_v24 = vpop.f32.mrf.mxu0 }
 0x1cd   : > { %v10330_v45 = vadd.f32 %v8166_v24, %v10218_v15  ;;  %v1736_v24 = vadd.f32 %v9966_v22, %v9972_v59  ;;  %v10354_v55 = vpop.f32.mrf.mxu1  ;;  %v2800_v22 = vadd.f32 %v10232_v63, %v10237_v26  ;;  %v2799_v59 = vadd.f32 %v10241_v11, %v2537_v16 }
 0x1ce   : > { %v10334_v2 = vpop.f32.mrf.mxu0  ;;  %v2802_v63 = vadd.f32 %v10248_v3, %v10244_v31  ;;  %v1742_v3 = vadd.f32 %v10002_v62, %v10008_v12 }
 0x1d0   : > { %v8169_v35 = vpop.f32.mrf.mxu0  ;;  %v2014_v62 = vadd.f32 %v10160_v40, %v1742_v3  ;;  %v13277_v3 = vld [vmem:[#allocation57_spill] sm:$0xff] }
 0x1d1   : > { %v10340_v53 = vadd.f32 %v8169_v35, %v10225_v10  ;;  %v2277_v10 = vadd.f32 %v10129_v5, %v2006_v43  ;;  %v2008_v35 = vadd.f32 %v10139_v19, %v1736_v24  ;;  %v2010_v5 = vadd.f32 %v10146_v58, %v1738_v51 }
 0x1d2   : > { %v10344_v29 = vpop.f32.mrf.mxu0  ;;  %v2012_v58 = vadd.f32 %v10153_v49, %v1740_v52  ;;  %v2804_v49 = vadd.f32 %v10260_v57, %v10251_v44 }
 0x1d3   : > { %v2539_v13 = vadd.f32 %v10246_v23, %v2277_v10  ;;  %v2279_v4 = vadd.f32 %v10136_v60, %v2008_v35 }
 0x1d4   : > { %v8172_v15 = vpop.f32.mrf.mxu0  ;;  %v2283_v10 = vadd.f32 %v10150_v39, %v2012_v58  ;;  %v2806_v39 = vadd.f32 %v10274_v37, %v10258_v41 }
 0x1d5   : > { %v10352_v6 = vadd.f32 %v8172_v15, %v10234_v14  ;;  %v10366_v14 = vpop.f32.mrf.mxu1  ;;  %v2801_v26 = vadd.f32 %v10253_v9, %v2539_v13  ;;  %v2541_v23 = vadd.f32 %v10255_v48, %v2279_v4  ;;  %v2281_v15 = vadd.f32 %v10143_v34, %v2010_v5  ;;  %v13271_v4 = vld [vmem:[#allocation35_spill] sm:$0xff] }
 0x1d6   : > { %v10356_v8 = vpop.f32.mrf.mxu0  ;;  %v2545_v13 = vadd.f32 %v10269_v1, %v2283_v10  ;;  %v13273_v1 = vld [vmem:[#allocation28_spill] sm:$0xff] }
 0x1d7   : > { %v10383_v11 = vpop.f32.mrf.mxu1  ;;  %v2803_v24 = vadd.f32 %v10267_v17, %v2541_v23  ;;  %v2543_v16 = vadd.f32 %v10262_v38, %v2281_v15  ;;  %v1744_v17 = vadd.f32 %v10014_v46, %v10020_v7 }
 0x1d8   : > { %v8227_v33 = vpop.f32.mrf.mxu0 }
 0x1d9   : > { %v10370_v28 = vadd.f32 %v8227_v33, %v2800_v22  ;;  %v10401_v35 = vpop.f32.mrf.mxu1  ;;  %v2016_v5 = vadd.f32 %v13271_v4, %v1744_v17  ;;  %v13284_v4 = vld [vmem:[#allocation56_spill] sm:$0xff] }
 0x1da   : > { %v2902_v47 = vpop.f32.mrf.mxu0 }
 0x1db   : > { %v10372_v19 = vadd.f32 %v2902_v47, %v2799_v59  ;;  %v3094_v36 = vsel %vm521_vm3, %v10370_v28, 0.0  ;;  %v2805_v59 = vadd.f32 %v10281_v20, %v2543_v16  ;;  %v1021_v47 = vadd.f32 %v9836_v32, %v9842_v18  ;;  %v10421_v52 = vpop.f32.mrf.mxu1 }
 0x1dc   : > { %v8230_v56 = vpop.f32.mrf.mxu0 }
 0x1dd   : > { %v3093_v60 = vsel %vm521_vm3, %v10372_v19, 0.0  ;;  %v10388_v61 = vadd.f32 %v8230_v56, %v2802_v63  ;;  %v13272_v56 = vld [vmem:[#allocation31_spill] sm:$0xff] }
 0x1de   : > { %v2912_v43 = vpop.f32.mrf.mxu0  ;;  %v3095_v9 = vadd.f32 %v3094_v36, %v3093_v60  ;;  %v2285_v63 = vadd.f32 %v13272_v56, %v2014_v62  ;;  %v13275_v60 = vld [vmem:[#allocation32_spill] sm:$0xff]  ;;  %v2807_v36 = vadd.f32 %v10295_v54, %v2545_v13 }
 0x1df   : > { %v10390_v31 = vadd.f32 %v2912_v43, %v2801_v26  ;;  %v3098_v12 = vsel %vm521_vm3, %v10388_v61, 0.0  ;;  %v13274_v26 = vld [vmem:[#allocation26_spill] sm:$0xff]  ;;  %v1481_v32 = vadd.f32 %v13275_v60, %v1021_v47  ;;  %v13276_v43 = vld [vmem:[#allocation55_spill] sm:$0xff] }
 0x1e0   : > { %v8233_v48 = vpop.f32.mrf.mxu0  ;;  %v1746_v23 = vadd.f32 %v13274_v26, %v13273_v1  ;;  %v2808_v15 = vadd.f32 %v10288_v21, %v13276_v43  ;;  %v13287_v1 = vld [vmem:[#allocation6_spill] sm:$0xff]  ;;  %v13289_v43 = vld [vmem:[#allocation37_spill] sm:$0xff] }
 0x1e1   : > { %v3096_v34 = vsel %vm521_vm3, %v10390_v31, 0.0  ;;  %v10406_v22 = vadd.f32 %v8233_v48, %v2804_v49  ;;  %v13278_v49 = vld [vmem:[#allocation3_spill] sm:$0xff] }
 0x1e2   : > { %v3097_v33 = vadd.f32 %v3096_v34, %v3095_v9  ;;  %v2922_v51 = vpop.f32.mrf.mxu0  ;;  %v2547_v9 = vadd.f32 %v13277_v3, %v2285_v63  ;;  %v13280_v34 = vld [vmem:[#allocation34_spill] sm:$0xff]  ;;  %v13290_v3 = vld [vmem:[#allocation33_spill] sm:$0xff] }
 0x1e3   : > { %v10408_v57 = vadd.f32 %v2922_v51, %v2803_v24  ;;  %v3102_v37 = vsel %vm521_vm3, %v10406_v22, 0.0  ;;  %v13279_v24 = vld [vmem:[#allocation2_spill] sm:$0xff]  ;;  %v2287_v10 = vadd.f32 %v13280_v34, %v2016_v5  ;;  %v2810_v5 = vadd.f32 %v10302_v42, %v13284_v4 }
 0x1e4   : > { %v3099_v44 = vadd.f32 %v3098_v12, %v3097_v33  ;;  %v8236_v38 = vpop.f32.mrf.mxu0  ;;  %v1031_v16 = vadd.f32 %v13279_v24, %v13278_v49  ;;  %v10442_v33 = vpop.f32.mrf.mxu1  ;;  %v13281_v12 = vld [vmem:[#allocation38_spill] sm:$0xff] }
 0x1e5   : > { %v3100_v40 = vsel %vm521_vm3, %v10408_v57, 0.0  ;;  %v10426_v20 = vadd.f32 %v8236_v38, %v2806_v39  ;;  %v2018_v17 = vadd.f32 %v13281_v12, %v1746_v23  ;;  %v13282_v38 = vld [vmem:[#allocation30_spill] sm:$0xff]  ;;  %v13288_v23 = vld [vmem:[#allocation40_spill] sm:$0xff] }
 0x1e6   : > { %v3101_v46 = vadd.f32 %v3100_v40, %v3099_v44  ;;  %v2932_v7 = vpop.f32.mrf.mxu0  ;;  %v1748_v39 = vadd.f32 %v13282_v38, %v1481_v32  ;;  %v10462_v32 = vpop.f32.mrf.mxu1  ;;  %v13292_v34 = vld [vmem:[#allocation58_spill] sm:$0xff]  ;;  %v13295_v38 = vld [vmem:[#allocation9_spill] sm:$0xff] }
 0x1e7   : > { %v10428_v41 = vadd.f32 %v2932_v7, %v2805_v59  ;;  %v3106_v21 = vsel %vm521_vm3, %v10426_v20, 0.0  ;;  %v13283_v59 = vld [vmem:[#allocation36_spill] sm:$0xff]  ;;  %v13285_v7 = vld [vmem:[#allocation59_spill] sm:$0xff] }
 0x1e8   : > { %v3103_v18 = vadd.f32 %v3102_v37, %v3101_v46  ;;  %v8239_v58 = vpop.f32.mrf.mxu0  ;;  %v1483_v13 = vadd.f32 %v13283_v59, %v1031_v16  ;;  %v2809_v46 = vadd.f32 %v10309_v30, %v2547_v9  ;;  %v2549_v56 = vadd.f32 %v13285_v7, %v2287_v10  ;;  %v13286_v37 = vld [vmem:[#allocation8_spill] sm:$0xff]  ;;  %v13296_v59 = vld [vmem:[#allocation39_spill] sm:$0xff] }
 0x1e9   : > { %v3104_v48 = vsel %vm521_vm3, %v10428_v41, 0.0  ;;  %v10447_v54 = vadd.f32 %v8239_v58, %v2808_v15  ;;  %v1041_v26 = vadd.f32 %v13287_v1, %v13286_v37  ;;  %v2020_v60 = vadd.f32 %v13288_v23, %v1748_v39  ;;  %v13299_v37 = vld [vmem:[#allocation10_spill] sm:$0xff] }
 0x1ea   : > { %v3105_v51 = vadd.f32 %v3104_v48, %v3103_v18  ;;  %v2942_v62 = vpop.f32.mrf.mxu0  ;;  %v2289_v15 = vadd.f32 %v13289_v43, %v2018_v17  ;;  %v1750_v9 = vadd.f32 %v13290_v3, %v1483_v13  ;;  %v13291_v48 = vld [vmem:[#allocation5_spill] sm:$0xff]  ;;  %v2812_v10 = vadd.f32 %v10316_v50, %v13292_v34  ;;  %v10482_v13 = vpop.f32.mrf.mxu1  ;;  %v13301_v43 = vld [vmem:[#allocation63_spill] sm:$0xff]  ;;  %v13302_v3 = vld [vmem:[#allocation14_spill] sm:$0xff] }
 0x1eb   : > { %v10449_v44 = vadd.f32 %v2942_v62, %v2807_v36  ;;  %v3110_v42 = vsel %vm521_vm3, %v10447_v54, 0.0  ;;  %v1485_v49 = vadd.f32 %v13291_v48, %v1041_v26  ;;  %v13293_v62 = vld [vmem:[#allocation61_spill] sm:$0xff] }
 0x1ec   : > { %v3107_v40 = vadd.f32 %v3106_v21, %v3105_v51  ;;  %v8242_v47 = vpop.f32.mrf.mxu0  ;;  %v2811_v51 = vadd.f32 %v10323_v27, %v2549_v56  ;;  %v2551_v12 = vadd.f32 %v13293_v62, %v2289_v15  ;;  %v13294_v21 = vld [vmem:[#allocation11_spill] sm:$0xff]  ;;  %v13298_v56 = vld [vmem:[#allocation4_spill] sm:$0xff] }
 0x1ed   : > { %v3108_v63 = vsel %vm521_vm3, %v10449_v44, 0.0  ;;  %v10467_v30 = vadd.f32 %v8242_v47, %v2810_v5  ;;  %v1051_v39 = vadd.f32 %v13295_v38, %v13294_v21  ;;  %v13297_v5 = vld [vmem:[#allocation42_spill] sm:$0xff]  ;;  %v13307_v38 = vld [vmem:[#allocation16_spill] sm:$0xff] }
 0x1ee   : > { %v3109_v18 = vadd.f32 %v3108_v63, %v3107_v40  ;;  %v2952_v58 = vpop.f32.mrf.mxu0  ;;  %v2291_v40 = vadd.f32 %v13296_v59, %v2020_v60  ;;  %v1752_v63 = vadd.f32 %v13298_v56, %v1485_v49  ;;  %v13300_v60 = vld [vmem:[#allocation60_spill] sm:$0xff]  ;;  %v10502_v49 = vpop.f32.mrf.mxu1 }
 0x1ef   : > { %v10469_v36 = vadd.f32 %v2952_v58, %v2809_v46  ;;  %v2022_v46 = vadd.f32 %v13297_v5, %v1750_v9  ;;  %v3114_v50 = vsel %vm521_vm3, %v10467_v30, 0.0  ;;  %v1487_v1 = vadd.f32 %v13299_v37, %v1051_v39  ;;  %v13303_v9 = vld [vmem:[#allocation12_spill] sm:$0xff]  ;;  %v13311_v37 = vld [vmem:[#allocation15_spill] sm:$0xff] }
 0x1f0   : > { %v3111_v24 = vadd.f32 %v3110_v42, %v3109_v18  ;;  %v8245_v16 = vpop.f32.mrf.mxu0  ;;  %v2814_v18 = vadd.f32 %v10332_v25, %v13300_v60  ;;  %v2813_v58 = vadd.f32 %v10342_v0, %v2551_v12  ;;  %v2553_v15 = vadd.f32 %v13301_v43, %v2291_v40  ;;  %v13313_v43 = vld [vmem:[#allocation46_spill] sm:$0xff] }
 0x1f1   : > { %v3112_v17 = vsel %vm521_vm3, %v10469_v36, 0.0  ;;  %v10487_v27 = vadd.f32 %v8245_v16, %v2812_v10  ;;  %v1061_v48 = vadd.f32 %v13303_v9, %v13302_v3 }
 0x1f2   : > { %v3113_v47 = vadd.f32 %v3112_v17, %v3111_v24  ;;  %v2962_v4 = vpop.f32.mrf.mxu0  ;;  %v13304_v24 = vld [vmem:[#allocation44_spill] sm:$0xff]  ;;  %v13306_v17 = vld [vmem:[#allocation7_spill] sm:$0xff]  ;;  %v2815_v5 = vadd.f32 %v10366_v14, %v2553_v15  ;;  %v13314_v15 = vld [vmem:[#allocation13_spill] sm:$0xff] }
 0x1f3   : > { %v10489_v7 = vadd.f32 %v2962_v4, %v2811_v51  ;;  %v2024_v16 = vadd.f32 %v13304_v24, %v1752_v63  ;;  %v13305_v51 = vld [vmem:[#allocation41_spill] sm:$0xff]  ;;  %v3118_v25 = vsel %vm521_vm3, %v10487_v27, 0.0  ;;  %v1754_v21 = vadd.f32 %v13306_v17, %v1487_v1  ;;  %v2760_v1 = vpop.f32.mrf.mxu1 }
 0x1f4   : > { %v3115_v26 = vadd.f32 %v3114_v50, %v3113_v47  ;;  %v8248_v23 = vpop.f32.mrf.mxu0  ;;  %v2293_v62 = vadd.f32 %v13305_v51, %v2022_v46  ;;  %v1489_v39 = vadd.f32 %v13307_v38, %v1061_v48  ;;  %v13308_v47 = vld [vmem:[#allocation62_spill] sm:$0xff]  ;;  %v13309_v50 = vld [vmem:[#allocation65_spill] sm:$0xff]  ;;  %v13316_v51 = vld [vmem:[#allocation64_spill] sm:$0xff] }
 0x1f5   : > { %v3116_v42 = vsel %vm521_vm3, %v10489_v7, 0.0  ;;  %v10507_v0 = vadd.f32 %v8248_v23, %v2814_v18  ;;  %v2816_v4 = vadd.f32 %v10354_v55, %v13308_v47  ;;  %v13310_v63 = vld [vmem:[#allocation17_spill] sm:$0xff]  ;;  %v13312_v23 = vld [vmem:[#allocation43_spill] sm:$0xff]  ;;  %v13318_v38 = vld [vmem:[#allocation20_spill] sm:$0xff] }
 0x1f6   : > { %v3117_v34 = vadd.f32 %v3116_v42, %v3115_v26  ;;  %v2972_v10 = vpop.f32.mrf.mxu0  ;;  %v2555_v46 = vadd.f32 %v13309_v50, %v2293_v62  ;;  %v1071_v26 = vadd.f32 %v13311_v37, %v13310_v63  ;;  %v2295_v60 = vadd.f32 %v13312_v23, %v2024_v16  ;;  %v13315_v48 = vld [vmem:[#allocation21_spill] sm:$0xff]  ;;  %v13320_v47 = vld [vmem:[#allocation48_spill] sm:$0xff] }
 0x1f7   : > { %v10509_v12 = vadd.f32 %v2972_v10, %v2813_v58  ;;  %v2026_v42 = vadd.f32 %v13313_v43, %v1754_v21  ;;  %v3122_v55 = vsel %vm521_vm3, %v10507_v0, 0.0  ;;  %v1756_v9 = vadd.f32 %v13314_v15, %v1489_v39  ;;  %v8216_v39 = vpop.f32.mrf.mxu1  ;;  %v13323_v23 = vld [vmem:[#allocation25_spill] sm:$0xff]  ;;  %v13324_v43 = vld [vmem:[#allocation66_spill] sm:$0xff] }
 0x1f8   : > { %v3119_v59 = vadd.f32 %v3118_v25, %v3117_v34  ;;  %v8251_v40 = vpop.f32.mrf.mxu0  ;;  %v1491_v24 = vadd.f32 %v13315_v48, %v1071_v26  ;;  %v2818_v16 = vadd.f32 %v10383_v11, %v13316_v51  ;;  %v2817_v62 = vadd.f32 %v10401_v35, %v2555_v46  ;;  %v13317_v25 = vld [vmem:[#allocation67_spill] sm:$0xff] }
 0x1f9   : > { %v3120_v56 = vsel %vm521_vm3, %v10509_v12, 0.0  ;;  %v10525_v3 = vadd.f32 %v8251_v40, %v2816_v4  ;;  %v2557_v17 = vadd.f32 %v13317_v25, %v2295_v60  ;;  %v2028_v4 = vadd.f32 %v13320_v47, %v1756_v9  ;;  %v13322_v46 = vld [vmem:[#allocation19_spill] sm:$0xff]  ;;  %v13325_v9 = vld [vmem:[#allocation69_spill] sm:$0xff] }
 0x1fa   : > { %v3121_v18 = vadd.f32 %v3120_v56, %v3119_v59  ;;  %v2982_v58 = vpop.f32.mrf.mxu0  ;;  %v13319_v59 = vld [vmem:[#allocation18_spill] sm:$0xff]  ;;  %v13321_v56 = vld [vmem:[#allocation45_spill] sm:$0xff]  ;;  %v1758_v26 = vadd.f32 %v13322_v46, %v1491_v24  ;;  %v2770_v24 = vpop.f32.mrf.mxu1 }
 0x1fb   : > { %v10527_v14 = vadd.f32 %v2982_v58, %v2815_v5  ;;  %v1081_v40 = vadd.f32 %v13319_v59, %v13318_v38  ;;  %v2297_v63 = vadd.f32 %v13321_v56, %v2026_v42  ;;  %v3126_v11 = vsel %vm521_vm3, %v10525_v3, 0.0  ;;  %v13329_v38 = vld [vmem:[#allocation50_spill] sm:$0xff] }
 0x1fc   : > { %v3123_v34 = vadd.f32 %v3122_v55, %v3121_v18  ;;  %v8254_v10 = vpop.f32.mrf.mxu0  ;;  %v2820_v55 = vadd.f32 %v10421_v52, %v13324_v43  ;;  %v2819_v15 = vadd.f32 %v10442_v33, %v2557_v17  ;;  %v2030_v59 = vadd.f32 %v13329_v38, %v1758_v26  ;;  %v13330_v17 = vld [vmem:[#allocation23_spill] sm:$0xff] }
 0x1fd   : > { %v3124_v21 = vsel %vm521_vm3, %v10527_v14, 0.0  ;;  %v10543_v37 = vadd.f32 %v8254_v10, %v2818_v16  ;;  %v1493_v60 = vadd.f32 %v13323_v23, %v1081_v40  ;;  %v2559_v42 = vadd.f32 %v13325_v9, %v2297_v63  ;;  %v13327_v10 = vld [vmem:[#allocation22_spill] sm:$0xff]  ;;  %v13328_v16 = vld [vmem:[#allocation47_spill] sm:$0xff] }
 0x1fe   : > { %v3125_v5 = vadd.f32 %v3124_v21, %v3123_v34  ;;  %v2992_v50 = vpop.f32.mrf.mxu0  ;;  %v13326_v34 = vld [vmem:[#allocation24_spill] sm:$0xff]  ;;  %v13333_v23 = vld [vmem:[#allocation71_spill] sm:$0xff] }
 0x1ff   : > { %v10545_v35 = vadd.f32 %v2992_v50, %v2817_v62  ;;  %v1091_v51 = vadd.f32 %v13327_v10, %v13326_v34  ;;  %v2299_v62 = vadd.f32 %v13328_v16, %v2028_v4  ;;  %v3130_v52 = vsel %vm521_vm3, %v10543_v37, 0.0 }
 0x200   : > { %v3127_v18 = vadd.f32 %v3126_v11, %v3125_v5  ;;  %v8257_v58 = vpop.f32.mrf.mxu0  ;;  %v1760_v47 = vadd.f32 %v13330_v17, %v1493_v60  ;;  %v13331_v5 = vld [vmem:[#allocation29_spill] sm:$0xff]  ;;  %v13332_v11 = vld [vmem:[#allocation68_spill] sm:$0xff]  ;;  %v2821_v46 = vadd.f32 %v10482_v13, %v2559_v42  ;;  %v13336_v13 = vld [vmem:[#allocation27_spill] sm:$0xff] }
 0x201   : > { %v3128_v48 = vsel %vm521_vm3, %v10545_v35, 0.0  ;;  %v10561_v40 = vadd.f32 %v8257_v58, %v2820_v55  ;;  %v1495_v50 = vadd.f32 %v13331_v5, %v1091_v51  ;;  %v2822_v4 = vadd.f32 %v10462_v32, %v13332_v11  ;;  %v13334_v58 = vld [vmem:[#allocation52_spill] sm:$0xff]  ;;  %v8219_v55 = vpop.f32.mrf.mxu1  ;;  %v13335_v60 = vld [vmem:[#allocation49_spill] sm:$0xff] }
 0x202   : > { %v3129_v25 = vadd.f32 %v3128_v48, %v3127_v18  ;;  %v3002_v21 = vpop.f32.mrf.mxu0  ;;  %v2561_v26 = vadd.f32 %v13333_v23, %v2299_v62  ;;  %v2032_v43 = vadd.f32 %v13334_v58, %v1760_v47  ;;  %v2301_v48 = vadd.f32 %v13335_v60, %v2030_v59  ;;  %v13337_v62 = vld [vmem:[#allocation70_spill] sm:$0xff] }
 0x203   : > { %v10563_v33 = vadd.f32 %v3002_v21, %v2819_v15  ;;  %v3134_v34 = vsel %vm521_vm3, %v10561_v40, 0.0  ;;  %v1762_v42 = vadd.f32 %v13336_v13, %v1495_v50  ;;  %v2780_v47 = vpop.f32.mrf.mxu1 }
 0x204   : > { %v3131_v56 = vadd.f32 %v3130_v52, %v3129_v25  ;;  %v8260_v63 = vpop.f32.mrf.mxu0  ;;  %v2824_v25 = vadd.f32 %v10502_v49, %v13337_v62  ;;  %v2823_v21 = vadd.f32 %v2760_v1, %v2561_v26  ;;  %v2563_v38 = vadd.f32 %v10334_v2, %v2301_v48  ;;  %v13338_v52 = vld [vmem:[#allocation51_spill] sm:$0xff] }
 0x205   : > { %v3132_v18 = vsel %vm521_vm3, %v10563_v33, 0.0  ;;  %v10577_v10 = vadd.f32 %v8260_v63, %v2822_v4  ;;  %v2303_v17 = vadd.f32 %v13338_v52, %v2032_v43  ;;  %v13339_v63 = vld [vmem:[#allocation54_spill] sm:$0xff]  ;;  %v2826_v2 = vadd.f32 %v8216_v39, %v10330_v45  ;;  %v8222_v58 = vpop.f32.mrf.mxu1 }
 0x206   : > { %v3133_v15 = vadd.f32 %v3132_v18, %v3131_v56  ;;  %v3012_v9 = vpop.f32.mrf.mxu0  ;;  %v2034_v11 = vadd.f32 %v13339_v63, %v1762_v42  ;;  %v2825_v23 = vadd.f32 %v2770_v24, %v2563_v38 }
 0x207   : > { %v10579_v32 = vadd.f32 %v3012_v9, %v2821_v46  ;;  %v3138_v50 = vsel %vm521_vm3, %v10577_v10, 0.0  ;;  %v2565_v26 = vadd.f32 %v10344_v29, %v2303_v17  ;;  %v13340_v9 = vld [vmem:[#allocation53_spill] sm:$0xff]  ;;  %v2790_v24 = vpop.f32.mrf.mxu1 }
 0x208   : > { %v3135_v51 = vadd.f32 %v3134_v34, %v3133_v15  ;;  %v8263_v16 = vpop.f32.mrf.mxu0  ;;  %v2305_v60 = vadd.f32 %v13340_v9, %v2034_v11 }
 0x209   : > { %v3136_v59 = vsel %vm521_vm3, %v10579_v32, 0.0  ;;  %v10591_v4 = vadd.f32 %v8263_v16, %v2824_v25  ;;  %v2828_v16 = vadd.f32 %v8219_v55, %v10340_v53  ;;  %v2827_v45 = vadd.f32 %v2780_v47, %v2565_v26 }
 0x20a   : > { %v3137_v5 = vadd.f32 %v3136_v59, %v3135_v51  ;;  %v3022_v56 = vpop.f32.mrf.mxu0  ;;  %v2567_v39 = vadd.f32 %v10356_v8, %v2305_v60 }
 0x20b   : > { %v3085_v46 = vadd.f32 %v3022_v56, %v2823_v21  ;;  %v3142_v48 = vsel %vm521_vm3, %v10591_v4, 0.0 }
 0x20c   : > { %v3139_v49 = vadd.f32 %v3138_v50, %v3137_v5  ;;  %v8266_v1 = vpop.f32.mrf.mxu0  ;;  %v2830_v5 = vadd.f32 %v8222_v58, %v10352_v6  ;;  %v2829_v56 = vadd.f32 %v2790_v24, %v2567_v39 }
 0x20d   : > { %v3140_v18 = vsel %vm521_vm3, %v3085_v46, 0.0  ;;  %v3088_v34 = vadd.f32 %v8266_v1, %v2826_v2 }
 0x20e   : > { %v3141_v43 = vadd.f32 %v3140_v18, %v3139_v49  ;;  %v3032_v15 = vpop.f32.mrf.mxu0 }
 0x20f   : > { %v3087_v13 = vadd.f32 %v3032_v15, %v2825_v23  ;;  %v3146_v21 = vsel %vm521_vm3, %v3088_v34, 0.0 }
 0x210   : > { %v3143_v42 = vadd.f32 %v3142_v48, %v3141_v43  ;;  %v8269_v51 = vpop.f32.mrf.mxu0 }
 0x211   : > { %v3144_v29 = vsel %vm521_vm3, %v3087_v13, 0.0  ;;  %v3090_v38 = vadd.f32 %v8269_v51, %v2828_v16 }
 0x212   : > { %v3145_v62 = vadd.f32 %v3144_v29, %v3143_v42  ;;  %v3042_v25 = vpop.f32.mrf.mxu0 }
 0x213   : > { %v3089_v59 = vadd.f32 %v3042_v25, %v2827_v45  ;;  %v3150_v8 = vsel %vm521_vm3, %v3090_v38, 0.0 }
 0x214   : > { %v3147_v52 = vadd.f32 %v3146_v21, %v3145_v62  ;;  %v8272_v17 = vpop.f32.mrf.mxu0 }
 0x215   : > { %v3148_v63 = vsel %vm521_vm3, %v3089_v59, 0.0  ;;  %v3092_v47 = vadd.f32 %v8272_v17, %v2830_v5 }
 0x216   : > { %v3149_v53 = vadd.f32 %v3148_v63, %v3147_v52  ;;  %v3052_v55 = vpop.f32.mrf.mxu0 }
 0x217   : > { %v3091_v11 = vadd.f32 %v3052_v55, %v2829_v56  ;;  %v3154_v2 = vsel %vm521_vm3, %v3092_v47, 0.0 }
 0x218   : > { %v3151_v50 = vadd.f32 %v3150_v8, %v3149_v53  ;;  %v10720_v53 = vld [vmem:[%s12934_s2 + $0x8] sm:$0xf] }
 0x219   : > { %v3152_v49 = vsel %vm521_vm3, %v3091_v11, 0.0 }
 0x21a   : > { %v3153_v1 = vadd.f32 %v3152_v49, %v3151_v50 }
 0x21c   : > { %v3155_v23 = vadd.f32 %v3154_v2, %v3153_v1 }
 0x21e   : > { %v3156_v26 = vrot.slane %v3155_v23, 4 }
 0x220   : > { %v3157_v18 = vadd.f32 %v3156_v26, %v3155_v23 }
 0x222   : > { %v3158_v43 = vrot.slane %v3157_v18, 2 }
 0x224   : > { %v3159_v6 = vadd.f32 %v3158_v43, %v3157_v18 }
 0x226   : > { %v3160_v58 = vrot.slane %v3159_v6, 1 }
 0x228   : > { %v3161_v15 = vadd.f32 %v3160_v58, %v3159_v6 }
 0x22a   : > { %v3163_v9 = vmul.f32 0.00390625, %v3161_v15 }
 0x22c   : > { %v10609_v60 = vsub.f32 %v10469_v36, %v3163_v9  ;;  %v10612_v48 = vsub.f32 %v10467_v30, %v3163_v9  ;;  %v10615_v42 = vsub.f32 %v10489_v7, %v3163_v9  ;;  %v10618_v51 = vsub.f32 %v10487_v27, %v3163_v9 }
 0x22d   : > { %v10621_v16 = vsub.f32 %v10509_v12, %v3163_v9  ;;  %v10624_v45 = vsub.f32 %v10507_v0, %v3163_v9  ;;  %v10627_v39 = vsub.f32 %v10527_v14, %v3163_v9  ;;  %v10630_v36 = vsub.f32 %v10525_v3, %v3163_v9 }
 0x22e   : > { %v10633_v30 = vsub.f32 %v10545_v35, %v3163_v9  ;;  %v10636_v7 = vsub.f32 %v10543_v37, %v3163_v9  ;;  %v10639_v27 = vsub.f32 %v10563_v33, %v3163_v9  ;;  %v10642_v12 = vsub.f32 %v10561_v40, %v3163_v9 }
 0x22f   : > { %v10645_v0 = vsub.f32 %v10579_v32, %v3163_v9  ;;  %v10648_v14 = vsub.f32 %v10577_v10, %v3163_v9  ;;  %v10650_v3 = vsub.f32 %v3085_v46, %v3163_v9  ;;  %v10653_v35 = vsub.f32 %v10591_v4, %v3163_v9 }
 0x230   : > { %v10655_v29 = vsub.f32 %v3087_v13, %v3163_v9  ;;  %v10657_v37 = vsub.f32 %v3088_v34, %v3163_v9  ;;  %v10659_v33 = vsub.f32 %v3089_v59, %v3163_v9  ;;  %v10661_v24 = vsub.f32 %v3090_v38, %v3163_v9  ;;  %v6920_v38 = vld [vmem:[%s12934_s2 + $0x4] sm:$0xf] }
 0x231   : > { %v10663_v40 = vsub.f32 %v3091_v11, %v3163_v9  ;;  %v10665_v32 = vsub.f32 %v3092_v47, %v3163_v9  ;;  %v10668_v10 = vsub.f32 %v10372_v19, %v3163_v9  ;;  %v10671_v46 = vsub.f32 %v10370_v28, %v3163_v9  ;;  %8273 = vmatprep.subr.msk.mxu1 %vm582_vm0, %v6920_v38 }
 0x232   : > { %v10674_v4 = vsub.f32 %v10390_v31, %v3163_v9  ;;  %v10677_v34 = vsub.f32 %v10388_v61, %v3163_v9  ;;  %v10684_v25 = vsub.f32 %v10408_v57, %v3163_v9  ;;  %v10689_v28 = vsub.f32 %v10406_v22, %v3163_v9  ;;  %v3572_v57 = vld [vmem:[%s12934_s2] sm:$0xf]  ;;  %8274 = vmatpush3.msk.msra.mxu1 %vm582_vm0, %v6920_v38 }
 0x233   : > { %v3196_v13 = vmul.f32 %v10668_v10, %v10668_v10  ;;  %v3197_v62 = vmul.f32 %v10671_v46, %v10671_v46  ;;  %v10703_v22 = vsub.f32 %v10428_v41, %v3163_v9  ;;  %8323 = vmatprep.subr.msk.mxu0 %vm582_vm0, %v3572_v57  ;;  %v10712_v56 = vsub.f32 %v10426_v20, %v3163_v9 }
 0x234   : > { %v3198_v19 = vmul.f32 %v10674_v4, %v10674_v4  ;;  %v3199_v31 = vmul.f32 %v10677_v34, %v10677_v34  ;;  %v3200_v52 = vmul.f32 %v10684_v25, %v10684_v25  ;;  %8324 = vmatpush3.msk.msra.mxu0 %vm582_vm0, %v3572_v57  ;;  %v3201_v63 = vmul.f32 %v10689_v28, %v10689_v28 }
 0x235   : > { %v3228_v61 = vsel %vm521_vm3, %v3196_v13, 0.0  ;;  %v3229_v21 = vsel %vm521_vm3, %v3197_v62, 0.0  ;;  %8373 = vmatprep.subr.msk.mxu1 %vm582_vm0, %v10720_v53  ;;  %v10725_v8 = vsub.f32 %v10449_v44, %v3163_v9  ;;  %v3202_v20 = vmul.f32 %v10703_v22, %v10703_v22 }
 0x236   : > { %v3230_v59 = vadd.f32 %v3229_v21, %v3228_v61  ;;  %v3231_v17 = vsel %vm521_vm3, %v3198_v19, 0.0  ;;  %v3233_v41 = vsel %vm521_vm3, %v3199_v31, 0.0  ;;  %v3235_v47 = vsel %vm521_vm3, %v3200_v52, 0.0 }
 0x237   : > { %v10731_v50 = vsub.f32 %v10447_v54, %v3163_v9  ;;  %v3203_v49 = vmul.f32 %v10712_v56, %v10712_v56  ;;  %v3237_v1 = vsel %vm521_vm3, %v3201_v63, 0.0  ;;  %v3204_v23 = vmul.f32 %v10725_v8, %v10725_v8 }
 0x238   : > { %v3232_v5 = vadd.f32 %v3231_v17, %v3230_v59  ;;  %v3239_v44 = vsel %vm521_vm3, %v3202_v20, 0.0  ;;  %v3206_v54 = vmul.f32 %v10609_v60, %v10609_v60  ;;  %v3207_v9 = vmul.f32 %v10612_v48, %v10612_v48 }
 0x239   : > { %v3205_v18 = vmul.f32 %v10731_v50, %v10731_v50  ;;  %v3241_v43 = vsel %vm521_vm3, %v3203_v49, 0.0  ;;  %v3243_v58 = vsel %vm521_vm3, %v3204_v23, 0.0  ;;  %v3208_v19 = vmul.f32 %v10615_v42, %v10615_v42 }
 0x23a   : > { %v3234_v55 = vadd.f32 %v3233_v41, %v3232_v5  ;;  %v3247_v31 = vsel %vm521_vm3, %v3206_v54, 0.0  ;;  %v3209_v21 = vmul.f32 %v10618_v51, %v10618_v51  ;;  %v3249_v38 = vsel %vm521_vm3, %v3207_v9, 0.0 }
 0x23b   : > { %v3245_v13 = vsel %vm521_vm3, %v3205_v18, 0.0  ;;  %v3210_v57 = vmul.f32 %v10621_v16, %v10621_v16  ;;  %v3251_v52 = vsel %vm521_vm3, %v3208_v19, 0.0  ;;  %v3211_v5 = vmul.f32 %v10624_v45, %v10624_v45 }
 0x23c   : > { %v3236_v11 = vadd.f32 %v3235_v47, %v3234_v55  ;;  %v3253_v63 = vsel %vm521_vm3, %v3209_v21, 0.0  ;;  %v3212_v55 = vmul.f32 %v10627_v39, %v10627_v39 }
 0x23d   : > { %v3255_v20 = vsel %vm521_vm3, %v3210_v57, 0.0  ;;  %v3257_v49 = vsel %vm521_vm3, %v3211_v5, 0.0 }
 0x23e   : > { %v3238_v2 = vadd.f32 %v3237_v1, %v3236_v11  ;;  %v3213_v11 = vmul.f32 %v10630_v36, %v10630_v36  ;;  %v3259_v23 = vsel %vm521_vm3, %v3212_v55, 0.0 }
 0x240   : > { %v3240_v26 = vadd.f32 %v3239_v44, %v3238_v2  ;;  %v3214_v2 = vmul.f32 %v10633_v30, %v10633_v30  ;;  %v3261_v18 = vsel %vm521_vm3, %v3213_v11, 0.0 }
 0x242   : > { %v3242_v6 = vadd.f32 %v3241_v43, %v3240_v26  ;;  %v3215_v26 = vmul.f32 %v10636_v7, %v10636_v7  ;;  %v3263_v54 = vsel %vm521_vm3, %v3214_v2, 0.0 }
 0x244   : > { %v3244_v15 = vadd.f32 %v3243_v58, %v3242_v6  ;;  %v3216_v6 = vmul.f32 %v10639_v27, %v10639_v27  ;;  %v3265_v9 = vsel %vm521_vm3, %v3215_v26, 0.0 }
 0x246   : > { %v3246_v62 = vadd.f32 %v3245_v13, %v3244_v15  ;;  %v3217_v15 = vmul.f32 %v10642_v12, %v10642_v12  ;;  %v3267_v19 = vsel %vm521_vm3, %v3216_v6, 0.0 }
 0x248   : > { %v3248_v61 = vadd.f32 %v3247_v31, %v3246_v62  ;;  %v3218_v62 = vmul.f32 %v10645_v0, %v10645_v0  ;;  %v3269_v21 = vsel %vm521_vm3, %v3217_v15, 0.0 }
 0x24a   : > { %v3250_v59 = vadd.f32 %v3249_v38, %v3248_v61  ;;  %v3219_v61 = vmul.f32 %v10648_v14, %v10648_v14  ;;  %v3271_v57 = vsel %vm521_vm3, %v3218_v62, 0.0 }
 0x24c   : > { %v3252_v17 = vadd.f32 %v3251_v52, %v3250_v59  ;;  %v3220_v59 = vmul.f32 %v10650_v3, %v10650_v3  ;;  %v3273_v5 = vsel %vm521_vm3, %v3219_v61, 0.0 }
 0x24e   : > { %v3254_v41 = vadd.f32 %v3253_v63, %v3252_v17  ;;  %v3221_v17 = vmul.f32 %v10653_v35, %v10653_v35  ;;  %v3275_v55 = vsel %vm521_vm3, %v3220_v59, 0.0 }
 0x250   : > { %v3256_v47 = vadd.f32 %v3255_v20, %v3254_v41  ;;  %v3222_v41 = vmul.f32 %v10655_v29, %v10655_v29  ;;  %v3277_v11 = vsel %vm521_vm3, %v3221_v17, 0.0 }
 0x252   : > { %v3258_v1 = vadd.f32 %v3257_v49, %v3256_v47  ;;  %v3223_v47 = vmul.f32 %v10657_v37, %v10657_v37  ;;  %v3279_v2 = vsel %vm521_vm3, %v3222_v41, 0.0 }
 0x254   : > { %v3260_v44 = vadd.f32 %v3259_v23, %v3258_v1  ;;  %v3224_v1 = vmul.f32 %v10659_v33, %v10659_v33  ;;  %v3281_v26 = vsel %vm521_vm3, %v3223_v47, 0.0 }
 0x256   : > { %v3262_v43 = vadd.f32 %v3261_v18, %v3260_v44  ;;  %v3225_v44 = vmul.f32 %v10661_v24, %v10661_v24  ;;  %v3283_v6 = vsel %vm521_vm3, %v3224_v1, 0.0 }
 0x258   : > { %v3264_v58 = vadd.f32 %v3263_v54, %v3262_v43  ;;  %v3226_v43 = vmul.f32 %v10663_v40, %v10663_v40 }
 0x25a   : > { %v3266_v13 = vadd.f32 %v3265_v9, %v3264_v58  ;;  %v3285_v58 = vsel %vm521_vm3, %v3225_v44, 0.0  ;;  %v3227_v9 = vmul.f32 %v10665_v32, %v10665_v32 }
 0x25c   : > { %v3268_v31 = vadd.f32 %v3267_v19, %v3266_v13  ;;  %v3287_v13 = vsel %vm521_vm3, %v3226_v43, 0.0  ;;  %v3289_v19 = vsel %vm521_vm3, %v3227_v9, 0.0 }
 0x25e   : > { %v3270_v38 = vadd.f32 %v3269_v21, %v3268_v31  ;;  %v7021_v31 = vld [vmem:[%s12934_s2 + $0xc] sm:$0xf] }
 0x25f   : > { %8423 = vmatprep.subr.msk.mxu0 %vm582_vm0, %v7021_v31 }
 0x260   : > { %v3272_v52 = vadd.f32 %v3271_v57, %v3270_v38 }
 0x262   : > { %v3274_v63 = vadd.f32 %v3273_v5, %v3272_v52 }
 0x264   : > { %v3276_v20 = vadd.f32 %v3275_v55, %v3274_v63 }
 0x266   : > { %v3278_v49 = vadd.f32 %v3277_v11, %v3276_v20 }
 0x268   : > { %v3280_v23 = vadd.f32 %v3279_v2, %v3278_v49 }
 0x26a   : > { %v3282_v18 = vadd.f32 %v3281_v26, %v3280_v23 }
 0x26c   : > { %v3284_v54 = vadd.f32 %v3283_v6, %v3282_v18 }
 0x26e   : > { %v3286_v15 = vadd.f32 %v3285_v58, %v3284_v54 }
 0x270   : > { %v3288_v62 = vadd.f32 %v3287_v13, %v3286_v15 }
 0x272   : > { %v3290_v61 = vadd.f32 %v3289_v19, %v3288_v62 }
 0x274   : > { %v3291_v21 = vrot.slane %v3290_v61, 4 }
 0x276   : > { %v3292_v38 = vadd.f32 %v3291_v21, %v3290_v61  ;;  %v10855_v61 = vld [vmem:[%s12934_s2 + $0x14] sm:$0xf] }
 0x278   : > { %v3293_v59 = vrot.slane %v3292_v38, 2 }
 0x27a   : > { %v3294_v57 = vadd.f32 %v3293_v59, %v3292_v38 }
 0x27c   : > { %v3295_v52 = vrot.slane %v3294_v57, 1 }
 0x27e   : > { %v3296_v17 = vadd.f32 %v3295_v52, %v3294_v57 }
 0x280   : > { %v3297_v5 = vmul.f32 0.00390625, %v3296_v17 }
 0x282   : > { %v3298_v63 = vadd.f32 1e-05, %v3297_v5 }
 0x284   : > { %8731 = vrsqrt.f32 %v3298_v63 }
 0x291   : > { %v10814_v41 = vpop.eup %8731 }
 0x292   : > { %v3302_v55 = vmul.f32 %v10814_v41, %v10674_v4  ;;  %v3303_v20 = vmul.f32 %v10814_v41, %v10677_v34  ;;  %v3301_v47 = vmul.f32 %v10814_v41, %v10671_v46  ;;  %v3300_v1 = vmul.f32 %v10814_v41, %v10668_v10 }
 0x293   : > { %v3304_v2 = vmul.f32 %v10814_v41, %v10684_v25  ;;  %v3305_v44 = vmul.f32 %v10814_v41, %v10689_v28  ;;  %v3306_v4 = vmul.f32 %v10814_v41, %v10703_v22  ;;  %v3307_v46 = vmul.f32 %v10814_v41, %v10712_v56 }
 0x294   : > { %v3334_v11 = vmax.f32 %v3302_v55, 0.0  ;;  %v3335_v49 = vmax.f32 %v3303_v20, 0.0  ;;  %v3333_v23 = vmax.f32 %v3301_v47, 0.0  ;;  %v3332_v6 = vmax.f32 %v3300_v1, 0.0 }
 0x295   : > { %v3336_v54 = vmax.f32 %v3304_v2, 0.0  ;;  %v10834_v25 = vmul.f32 %v10814_v41, %v10725_v8  ;;  %v10838_v28 = vmul.f32 %v10814_v41, %v10731_v50  ;;  %v3337_v22 = vmax.f32 %v3305_v44, 0.0  ;;  %v10894_v2 = vld [vmem:[%s12934_s2 + $0x10] sm:$0xf] }
 0x296   : > { %v3380_v26 = vrot.slane %v3334_v11, 1  ;;  %v3428_v34 = vrot.slane %v3334_v11, 7  ;;  %v3429_v18 = vrot.slane %v3335_v49, 7  ;;  %v3508_v43 = vrot.slane %v3335_v49, 5 }
 0x297   : > { %v3432_v10 = vrot.slane %v3333_v23, 7  ;;  %v3509_v58 = vrot.slane %v3333_v23, 5  ;;  %v3338_v15 = vmax.f32 %v3306_v4, 0.0  ;;  %v3339_v62 = vmax.f32 %v3307_v46, 0.0 }
 0x298   : > { %v10841_v9 = vsel %vm267_vm1, %v3429_v18, %v3508_v43  ;;  %v10844_v13 = vsel %vm267_vm1, %v3380_v26, %v3428_v34  ;;  %v10847_v56 = vsel %vm267_vm1, %v3428_v34, %v3429_v18  ;;  %v3381_v8 = vrot.slane %v3332_v6, 1 }
 0x299   : > { %v3606_v19 = vrot.slane %v10841_v9, 1  ;;  %8325 = vmatprep.mubr.msk.f32.mxu0 %vm521_vm3, %v10844_v13  ;;  %v3431_v50 = vrot.slane %v3332_v6, 7  ;;  %v3382_v21 = vrot.slane %v3336_v54, 1  ;;  %v3603_v38 = vrot.slane %v10844_v13, 1 }
 0x29a   : > { %8326 = vmatmul.mubr.msk.f32.vlgmr.msra.gmra.mxu0 %vm521_vm3, %v10847_v56  ;;  %v3604_v59 = vrot.slane %v10847_v56, 1  ;;  %v10862_v57 = vsel %vm267_vm1, %v3432_v10, %v3509_v58  ;;  %v3434_v52 = vrot.slane %v3336_v54, 7  ;;  %v3435_v17 = vrot.slane %v3337_v22, 7 }
 0x29b   : > { %v10865_v5 = vsel %vm267_vm1, %v3381_v8, %v3431_v50  ;;  %v10868_v63 = vsel %vm267_vm1, %v3431_v50, %v3432_v10  ;;  %8424 = vmatpush3.msk.msra.mxu0 %vm582_vm0, %v7021_v31  ;;  %v3310_v55 = vmul.f32 %v10814_v41, %v10609_v60  ;;  %v3311_v31 = vmul.f32 %v10814_v41, %v10612_v48 }
 0x29c   : > { %v3608_v20 = vrot.slane %v10865_v5, 1  ;;  %8328 = vmatprep.mubr.msk.f32.mxu0 %vm521_vm3, %v10865_v5  ;;  %v10877_v47 = vsel %vm443_vm2, %v3603_v38, %v3604_v59  ;;  %v10880_v11 = vsel %vm443_vm2, %v3604_v59, %v3606_v19  ;;  %8523 = vmatprep.subr.msk.mxu0 %vm582_vm0, %v10855_v61  ;;  %v3340_v49 = vmax.f32 %v10834_v25, 0.0 }
 0x29d   : > { %13341 = vst [vmem:[#allocation35_spill] sm:$0xff] %v10877_v47  ;;  %13342 = vst [vmem:[#allocation31_spill] sm:$0xff] %v10880_v11  ;;  %8275 = vmatprep.mubr.msk.f32.mxu1 %vm521_vm3, %v10877_v47  ;;  %v3609_v60 = vrot.slane %v10868_v63, 1  ;;  %v3611_v1 = vrot.slane %v10862_v57, 1  ;;  %v3341_v23 = vmax.f32 %v10838_v28, 0.0  ;;  %v3383_v44 = vrot.slane %v3338_v15, 1 }
 0x29e   : > { %v3437_v4 = vrot.slane %v3338_v15, 7  ;;  %v3510_v26 = vrot.slane %v3337_v22, 5  ;;  %8276 = vmatmul.mubr.msk.f32.vlgmr.msra.gmra.mxu1 %vm521_vm3, %v10880_v11  ;;  %8329 = vmatmul.mubr.msk.f32.gmra.mxu0 %vm521_vm3, %v10868_v63  ;;  %v10902_v48 = vsel %vm267_vm1, %v3434_v52, %v3435_v17  ;;  %v3438_v34 = vrot.slane %v3339_v62, 7 }
 0x29f   : > { %8374 = vmatpush3.msk.msra.mxu1 %vm582_vm0, %v10720_v53  ;;  %v10907_v18 = vsel %vm443_vm2, %v3608_v20, %v3609_v60  ;;  %8331 = vmatprep.mubr.msk.f32.mxu0 %vm521_vm3, %v10844_v13  ;;  %v10912_v43 = vsel %vm267_vm1, %v3382_v21, %v3434_v52  ;;  %v3312_v46 = vmul.f32 %v10814_v41, %v10615_v42  ;;  %v3342_v53 = vmax.f32 %v3310_v55, 0.0 }
 0x2a0   : > { %13343 = vst [vmem:[#allocation28_spill] sm:$0xff] %v10907_v18  ;;  %v10918_v6 = vmul.f32 %v10814_v41, %v10618_v51  ;;  %8278 = vmatprep.mubr.msk.f32.mxu1 %vm521_vm3, %v10907_v18  ;;  %8473 = vmatprep.subr.msk.mxu1 %vm582_vm0, %v10894_v2  ;;  %v3343_v54 = vmax.f32 %v3311_v31, 0.0  ;;  %v3384_v10 = vrot.slane %v3340_v49, 1  ;;  %v10925_v58 = vsel %vm443_vm2, %v3609_v60, %v3611_v1 }
 0x2a1   : > { %13344 = vst [vmem:[#allocation26_spill] sm:$0xff] %v10925_v58  ;;  %v3511_v25 = vrot.slane %v3339_v62, 5  ;;  %v3613_v42 = vrot.slane %v10912_v43, 1  ;;  %v3614_v51 = vrot.slane %v10902_v48, 1  ;;  %v10934_v28 = vsel %vm267_vm1, %v3435_v17, %v3510_v26 }
 0x2a2   : > { %8279 = vmatmul.mubr.msk.f32.gmra.mxu1 %vm521_vm3, %v10925_v58  ;;  %8332 = vmatmul.mubr.msk.f32.gmra.mxu0 %vm521_vm3, %v10847_v56  ;;  %v10937_v22 = vsel %vm267_vm1, %v3437_v4, %v3438_v34  ;;  %v3440_v15 = vrot.slane %v3340_v49, 7  ;;  %v3441_v19 = vrot.slane %v3341_v23, 7  ;;  %v10944_v62 = vsel %vm267_vm1, %v3383_v44, %v3437_v4 }
 0x2a3   : > { %13345 = vst [vmem:[#allocation32_spill] sm:$0xff] %v10937_v22  ;;  %8281 = vmatprep.mubr.msk.f32.mxu1 %vm521_vm3, %v10877_v47  ;;  %8334 = vmatprep.mubr.msk.f32.mxu0 %vm521_vm3, %v10912_v43  ;;  %v3314_v8 = vmul.f32 %v10814_v41, %v10621_v16  ;;  %v10950_v50 = vmul.f32 %v10814_v41, %v10624_v45  ;;  %v3344_v21 = vmax.f32 %v3312_v46, 0.0  ;;  %v3345_v38 = vmax.f32 %v10918_v6, 0.0 }
 0x2a4   : > { %v3385_v59 = vrot.slane %v3342_v53, 1  ;;  %v3512_v52 = vrot.slane %v3341_v23, 5  ;;  %v3616_v17 = vrot.slane %v10934_v28, 1  ;;  %v10957_v55 = vsel %vm443_vm2, %v3613_v42, %v3614_v51 }
 0x2a5   : > { %13346 = vst [vmem:[#allocation55_spill] sm:$0xff] %v10957_v55  ;;  %v3618_v16 = vrot.slane %v10944_v62, 1  ;;  %v3619_v45 = vrot.slane %v10937_v22, 1  ;;  %v10964_v20 = vsel %vm267_vm1, %v3438_v34, %v3511_v25  ;;  %v10967_v31 = vsel %vm267_vm1, %v3440_v15, %v3441_v19 }
 0x2a6   : > { %8282 = vmatmul.mubr.msk.f32.gmra.mxu1 %vm521_vm3, %v10880_v11  ;;  %8335 = vmatmul.mubr.msk.f32.gmra.mxu0 %vm521_vm3, %v10902_v48  ;;  %13347 = vst [vmem:[#allocation57_spill] sm:$0xff] %v10967_v31  ;;  %v3443_v49 = vrot.slane %v3342_v53, 7  ;;  %v3444_v60 = vrot.slane %v3343_v54, 7  ;;  %v10974_v1 = vsel %vm267_vm1, %v3384_v10, %v3440_v15  ;;  %v3316_v23 = vmul.f32 %v10814_v41, %v10627_v39 }
 0x2a7   : > { %8284 = vmatprep.mubr.msk.f32.mxu1 %vm521_vm3, %v10957_v55  ;;  %8337 = vmatprep.mubr.msk.f32.mxu0 %vm521_vm3, %v10944_v62  ;;  %v10980_v44 = vmul.f32 %v10814_v41, %v10630_v36  ;;  %v3346_v4 = vmax.f32 %v3314_v8, 0.0  ;;  %v3347_v26 = vmax.f32 %v10950_v50, 0.0  ;;  %v3386_v34 = vrot.slane %v3344_v21, 1 }
 0x2a8   : > { %v3513_v46 = vrot.slane %v3343_v54, 5  ;;  %v10984_v6 = vsel %vm443_vm2, %v3614_v51, %v3616_v17  ;;  %v3621_v53 = vrot.slane %v10964_v20, 1  ;;  %v10990_v10 = vsel %vm443_vm2, %v3618_v16, %v3619_v45 }
 0x2a9   : > { %13348 = vst [vmem:[#allocation3_spill] sm:$0xff] %v10984_v6  ;;  %13349 = vst [vmem:[#allocation2_spill] sm:$0xff] %v10990_v10  ;;  %v3623_v39 = vrot.slane %v10974_v1, 1  ;;  %v3624_v36 = vrot.slane %v10967_v31, 1  ;;  %v10997_v54 = vsel %vm267_vm1, %v3441_v19, %v3512_v52  ;;  %v11000_v25 = vsel %vm267_vm1, %v3443_v49, %v3444_v60 }
 0x2aa   : > { %8285 = vmatmul.mubr.msk.f32.gmra.mxu1 %vm521_vm3, %v10984_v6  ;;  %8338 = vmatmul.mubr.msk.f32.gmra.mxu0 %vm521_vm3, %v10937_v22  ;;  %13350 = vst [vmem:[#allocation34_spill] sm:$0xff] %v11000_v25  ;;  %v3446_v42 = vrot.slane %v3344_v21, 7  ;;  %v3447_v51 = vrot.slane %v3345_v38, 7  ;;  %v11007_v15 = vsel %vm267_vm1, %v3385_v59, %v3443_v49  ;;  %v3318_v8 = vmul.f32 %v10814_v41, %v10633_v30 }
 0x2ab   : > { %8287 = vmatprep.mubr.msk.f32.mxu1 %vm521_vm3, %v10990_v10  ;;  %8340 = vmatprep.mubr.msk.f32.mxu0 %vm521_vm3, %v10974_v1  ;;  %v11013_v19 = vmul.f32 %v10814_v41, %v10636_v7  ;;  %v3348_v50 = vmax.f32 %v3316_v23, 0.0  ;;  %v3349_v21 = vmax.f32 %v10980_v44, 0.0  ;;  %v3387_v52 = vrot.slane %v3346_v4, 1 }
 0x2ac   : > { %v3514_v17 = vrot.slane %v3345_v38, 5  ;;  %v11017_v16 = vsel %vm443_vm2, %v3619_v45, %v3621_v53  ;;  %v3626_v10 = vrot.slane %v10997_v54, 1  ;;  %v11023_v59 = vsel %vm443_vm2, %v3623_v39, %v3624_v36 }
 0x2ad   : > { %13351 = vst [vmem:[#allocation38_spill] sm:$0xff] %v11017_v16  ;;  %13352 = vst [vmem:[#allocation30_spill] sm:$0xff] %v11023_v59  ;;  %v3628_v30 = vrot.slane %v11007_v15, 1  ;;  %v3629_v7 = vrot.slane %v11000_v25, 1  ;;  %v11030_v38 = vsel %vm267_vm1, %v3444_v60, %v3513_v46  ;;  %v11033_v45 = vsel %vm267_vm1, %v3446_v42, %v3447_v51 }
 0x2ae   : > { %8288 = vmatmul.mubr.msk.f32.gmra.mxu1 %vm521_vm3, %v11017_v16  ;;  %8341 = vmatmul.mubr.msk.f32.gmra.mxu0 %vm521_vm3, %v10967_v31  ;;  %13353 = vst [vmem:[#allocation36_spill] sm:$0xff] %v11033_v45  ;;  %v3449_v49 = vrot.slane %v3346_v4, 7  ;;  %v3450_v23 = vrot.slane %v3347_v26, 7  ;;  %v11040_v44 = vsel %vm267_vm1, %v3386_v34, %v3446_v42  ;;  %v3320_v53 = vmul.f32 %v10814_v41, %v10639_v27 }
 0x2af   : > { %8290 = vmatprep.mubr.msk.f32.mxu1 %vm521_vm3, %v11023_v59  ;;  %8343 = vmatprep.mubr.msk.f32.mxu0 %vm521_vm3, %v11007_v15  ;;  %v11046_v60 = vmul.f32 %v10814_v41, %v10642_v12  ;;  %v3350_v46 = vmax.f32 %v3318_v8, 0.0  ;;  %v3351_v4 = vmax.f32 %v11013_v19, 0.0  ;;  %v3388_v39 = vrot.slane %v3348_v50, 1 }
 0x2b0   : > { %v3515_v16 = vrot.slane %v3347_v26, 5  ;;  %v11050_v59 = vsel %vm443_vm2, %v3624_v36, %v3626_v10  ;;  %v3631_v6 = vrot.slane %v11030_v38, 1  ;;  %v11056_v34 = vsel %vm443_vm2, %v3628_v30, %v3629_v7 }
 0x2b1   : > { %13354 = vst [vmem:[#allocation56_spill] sm:$0xff] %v11050_v59  ;;  %13355 = vst [vmem:[#allocation59_spill] sm:$0xff] %v11056_v34  ;;  %v3633_v27 = vrot.slane %v11040_v44, 1  ;;  %v3634_v12 = vrot.slane %v11033_v45, 1  ;;  %v11063_v26 = vsel %vm267_vm1, %v3447_v51, %v3514_v17  ;;  %v11066_v10 = vsel %vm267_vm1, %v3449_v49, %v3450_v23 }
 0x2b2   : > { %8291 = vmatmul.mubr.msk.f32.gmra.mxu1 %vm521_vm3, %v11050_v59  ;;  %8344 = vmatmul.mubr.msk.f32.gmra.mxu0 %vm521_vm3, %v11000_v25  ;;  %13356 = vst [vmem:[#allocation8_spill] sm:$0xff] %v11066_v10  ;;  %v3452_v36 = vrot.slane %v3348_v50, 7  ;;  %v3453_v42 = vrot.slane %v3349_v21, 7  ;;  %v11073_v8 = vsel %vm267_vm1, %v3387_v52, %v3449_v49  ;;  %v3322_v19 = vmul.f32 %v10814_v41, %v10645_v0 }
 0x2b3   : > { %8293 = vmatprep.mubr.msk.f32.mxu1 %vm521_vm3, %v11056_v34  ;;  %8346 = vmatprep.mubr.msk.f32.mxu0 %vm521_vm3, %v11040_v44  ;;  %v11079_v51 = vmul.f32 %v10814_v41, %v10648_v14  ;;  %v3352_v17 = vmax.f32 %v3320_v53, 0.0  ;;  %v3353_v50 = vmax.f32 %v11046_v60, 0.0  ;;  %v3389_v30 = vrot.slane %v3350_v46, 1 }
 0x2b4   : > { %v3516_v59 = vrot.slane %v3349_v21, 5  ;;  %v11083_v34 = vsel %vm443_vm2, %v3629_v7, %v3631_v6  ;;  %v3636_v55 = vrot.slane %v11063_v26, 1  ;;  %v11089_v52 = vsel %vm443_vm2, %v3633_v27, %v3634_v12 }
 0x2b5   : > { %13357 = vst [vmem:[#allocation6_spill] sm:$0xff] %v11083_v34  ;;  %13358 = vst [vmem:[#allocation40_spill] sm:$0xff] %v11089_v52  ;;  %v3638_v0 = vrot.slane %v11073_v8, 1  ;;  %v3639_v14 = vrot.slane %v11066_v10, 1  ;;  %v11096_v21 = vsel %vm267_vm1, %v3450_v23, %v3515_v16  ;;  %v11099_v6 = vsel %vm267_vm1, %v3452_v36, %v3453_v42 }
 0x2b6   : > { %8294 = vmatmul.mubr.msk.f32.gmra.mxu1 %vm521_vm3, %v11083_v34  ;;  %8347 = vmatmul.mubr.msk.f32.gmra.mxu0 %vm521_vm3, %v11033_v45  ;;  %13359 = vst [vmem:[#allocation37_spill] sm:$0xff] %v11099_v6  ;;  %v3455_v7 = vrot.slane %v3350_v46, 7  ;;  %v3456_v49 = vrot.slane %v3351_v4, 7  ;;  %v11106_v53 = vsel %vm267_vm1, %v3388_v39, %v3452_v36  ;;  %v3324_v60 = vmul.f32 %v10814_v41, %v10650_v3 }
 0x2b7   : > { %8296 = vmatprep.mubr.msk.f32.mxu1 %vm521_vm3, %v11089_v52  ;;  %8349 = vmatprep.mubr.msk.f32.mxu0 %vm521_vm3, %v11073_v8  ;;  %v3325_v16 = vmul.f32 %v10814_v41, %v10653_v35  ;;  %v3354_v23 = vmax.f32 %v3322_v19, 0.0  ;;  %v3355_v27 = vmax.f32 %v11079_v51, 0.0  ;;  %v3390_v46 = vrot.slane %v3352_v17, 1 }
 0x2b8   : > { %v3517_v34 = vrot.slane %v3351_v4, 5  ;;  %v11114_v11 = vsel %vm443_vm2, %v3634_v12, %v3636_v55  ;;  %v3641_v52 = vrot.slane %v11096_v21, 1  ;;  %v11120_v39 = vsel %vm443_vm2, %v3638_v0, %v3639_v14 }
 0x2b9   : > { %13360 = vst [vmem:[#allocation33_spill] sm:$0xff] %v11114_v11  ;;  %13361 = vst [vmem:[#allocation5_spill] sm:$0xff] %v11120_v39  ;;  %v3643_v3 = vrot.slane %v11106_v53, 1  ;;  %v3644_v35 = vrot.slane %v11099_v6, 1  ;;  %v11127_v4 = vsel %vm267_vm1, %v3453_v42, %v3516_v59  ;;  %v11130_v55 = vsel %vm267_vm1, %v3455_v7, %v3456_v49 }
 0x2ba   : > { %8297 = vmatmul.mubr.msk.f32.gmra.mxu1 %vm521_vm3, %v11114_v11  ;;  %8350 = vmatmul.mubr.msk.f32.gmra.mxu0 %vm521_vm3, %v11066_v10  ;;  %13362 = vst [vmem:[#allocation58_spill] sm:$0xff] %v11130_v55  ;;  %v3458_v12 = vrot.slane %v3352_v17, 7  ;;  %v3459_v36 = vrot.slane %v3353_v50, 7  ;;  %v11137_v19 = vsel %vm267_vm1, %v3389_v30, %v3455_v7  ;;  %v3326_v51 = vmul.f32 %v10814_v41, %v10655_v29 }
 0x2bb   : > { %8299 = vmatprep.mubr.msk.f32.mxu1 %vm521_vm3, %v11120_v39  ;;  %8352 = vmatprep.mubr.msk.f32.mxu0 %vm521_vm3, %v11106_v53  ;;  %v3327_v59 = vmul.f32 %v10814_v41, %v10657_v37  ;;  %v3356_v42 = vmax.f32 %v3324_v60, 0.0  ;;  %v3357_v0 = vmax.f32 %v3325_v16, 0.0  ;;  %v3391_v11 = vrot.slane %v3354_v23, 1 }
 0x2bc   : > { %v3518_v17 = vrot.slane %v3353_v50, 5  ;;  %v11144_v47 = vsel %vm443_vm2, %v3639_v14, %v3641_v52  ;;  %v3646_v39 = vrot.slane %v11127_v4, 1  ;;  %v11150_v30 = vsel %vm443_vm2, %v3643_v3, %v3644_v35 }
 0x2bd   : > { %13363 = vst [vmem:[#allocation61_spill] sm:$0xff] %v11144_v47  ;;  %13364 = vst [vmem:[#allocation11_spill] sm:$0xff] %v11150_v30  ;;  %v3648_v29 = vrot.slane %v11137_v19, 1  ;;  %v3649_v37 = vrot.slane %v11130_v55, 1  ;;  %v11157_v50 = vsel %vm267_vm1, %v3456_v49, %v3517_v34  ;;  %v11160_v52 = vsel %vm267_vm1, %v3458_v12, %v3459_v36 }
 0x2be   : > { %8300 = vmatmul.mubr.msk.f32.gmra.mxu1 %vm521_vm3, %v11144_v47  ;;  %8353 = vmatmul.mubr.msk.f32.gmra.mxu0 %vm521_vm3, %v11099_v6  ;;  %13365 = vst [vmem:[#allocation9_spill] sm:$0xff] %v11160_v52  ;;  %v3461_v14 = vrot.slane %v3354_v23, 7  ;;  %v3462_v7 = vrot.slane %v3355_v27, 7  ;;  %v11167_v60 = vsel %vm267_vm1, %v3390_v46, %v3458_v12  ;;  %v3328_v16 = vmul.f32 %v10814_v41, %v10659_v33 }
 0x2bf   : > { %8302 = vmatprep.mubr.msk.f32.mxu1 %vm521_vm3, %v11150_v30  ;;  %8355 = vmatprep.mubr.msk.f32.mxu0 %vm521_vm3, %v11137_v19  ;;  %13366 = vst [vmem:[#allocation39_spill] sm:$0xff] %v11167_v60  ;;  %v3329_v34 = vmul.f32 %v10814_v41, %v10661_v24  ;;  %v3358_v49 = vmax.f32 %v3326_v51, 0.0  ;;  %v3359_v3 = vmax.f32 %v3327_v59, 0.0  ;;  %v3392_v47 = vrot.slane %v3356_v42, 1 }
 0x2c0   : > { %v3519_v23 = vrot.slane %v3355_v27, 5  ;;  %v11174_v58 = vsel %vm443_vm2, %v3644_v35, %v3646_v39  ;;  %v3651_v30 = vrot.slane %v11157_v50, 1  ;;  %v11180_v46 = vsel %vm443_vm2, %v3648_v29, %v3649_v37 }
 0x2c1   : > { %13367 = vst [vmem:[#allocation42_spill] sm:$0xff] %v11174_v58  ;;  %13368 = vst [vmem:[#allocation4_spill] sm:$0xff] %v11180_v46  ;;  %v3653_v33 = vrot.slane %v11167_v60, 1  ;;  %v3654_v24 = vrot.slane %v11160_v52, 1  ;;  %v11187_v27 = vsel %vm267_vm1, %v3459_v36, %v3518_v17  ;;  %v11190_v39 = vsel %vm267_vm1, %v3461_v14, %v3462_v7 }
 0x2c2   : > { %8303 = vmatmul.mubr.msk.f32.gmra.mxu1 %vm521_vm3, %v11174_v58  ;;  %8356 = vmatmul.mubr.msk.f32.gmra.mxu0 %vm521_vm3, %v11130_v55  ;;  %13369 = vst [vmem:[#allocation10_spill] sm:$0xff] %v11190_v39  ;;  %v3464_v35 = vrot.slane %v3356_v42, 7  ;;  %v3465_v12 = vrot.slane %v3357_v0, 7  ;;  %v11197_v51 = vsel %vm267_vm1, %v3391_v11, %v3461_v14  ;;  %v3360_v59 = vmax.f32 %v3328_v16, 0.0 }
 0x2c3   : > { %8305 = vmatprep.mubr.msk.f32.mxu1 %vm521_vm3, %v11180_v46  ;;  %8358 = vmatprep.mubr.msk.f32.mxu0 %vm521_vm3, %v11167_v60  ;;  %v3361_v29 = vmax.f32 %v3329_v34, 0.0  ;;  %v3393_v58 = vrot.slane %v3358_v49, 1  ;;  %v3520_v18 = vrot.slane %v3357_v0, 5  ;;  %v11200_v36 = vsel %vm443_vm2, %v3649_v37, %v3651_v30 }
 0x2c4   : > { %13370 = vst [vmem:[#allocation60_spill] sm:$0xff] %v11200_v36  ;;  %v3656_v17 = vrot.slane %v11187_v27, 1  ;;  %v11206_v42 = vsel %vm443_vm2, %v3653_v33, %v3654_v24  ;;  %v3658_v11 = vrot.slane %v11197_v51, 1  ;;  %v3659_v14 = vrot.slane %v11190_v39, 1 }
 0x2c5   : > { %13371 = vst [vmem:[#allocation63_spill] sm:$0xff] %v11206_v42  ;;  %v11213_v0 = vsel %vm267_vm1, %v3462_v7, %v3519_v23  ;;  %v11216_v30 = vsel %vm267_vm1, %v3464_v35, %v3465_v12  ;;  %v3467_v37 = vrot.slane %v3358_v49, 7  ;;  %v3468_v16 = vrot.slane %v3359_v3, 7 }
 0x2c6   : > { %8306 = vmatmul.mubr.msk.f32.gmra.mxu1 %vm521_vm3, %v11200_v36  ;;  %8359 = vmatmul.mubr.msk.f32.gmra.mxu0 %vm521_vm3, %v11160_v52  ;;  %13372 = vst [vmem:[#allocation14_spill] sm:$0xff] %v11216_v30  ;;  %v11223_v34 = vsel %vm267_vm1, %v3392_v47, %v3464_v35  ;;  %v3394_v33 = vrot.slane %v3360_v59, 1  ;;  %v3521_v36 = vrot.slane %v3359_v3, 5  ;;  %v11226_v46 = vsel %vm443_vm2, %v3654_v24, %v3656_v17 }
 0x2c7   : > { %8308 = vmatprep.mubr.msk.f32.mxu1 %vm521_vm3, %v11206_v42  ;;  %8361 = vmatprep.mubr.msk.f32.mxu0 %vm521_vm3, %v11197_v51  ;;  %13373 = vst [vmem:[#allocation12_spill] sm:$0xff] %v11226_v46  ;;  %v3661_v7 = vrot.slane %v11213_v0, 1  ;;  %v11232_v49 = vsel %vm443_vm2, %v3658_v11, %v3659_v14  ;;  %v3663_v23 = vrot.slane %v11223_v34, 1  ;;  %v3664_v47 = vrot.slane %v11216_v30, 1 }
 0x2c8   : > { %v11239_v3 = vsel %vm267_vm1, %v3465_v12, %v3520_v18  ;;  %v11242_v24 = vsel %vm267_vm1, %v3467_v37, %v3468_v16  ;;  %v3470_v35 = vrot.slane %v3360_v59, 7  ;;  %v3471_v17 = vrot.slane %v3361_v29, 7 }
 0x2c9   : > { %13374 = vst [vmem:[#allocation44_spill] sm:$0xff] %v11242_v24  ;;  %v11249_v11 = vsel %vm267_vm1, %v3393_v58, %v3467_v37  ;;  %v11252_v42 = vsel %vm443_vm2, %v3659_v14, %v3661_v7  ;;  %v3666_v18 = vrot.slane %v11239_v3, 1  ;;  %v11258_v12 = vsel %vm443_vm2, %v3663_v23, %v3664_v47 }
 0x2ca   : > { %8309 = vmatmul.mubr.msk.f32.gmra.mxu1 %vm521_vm3, %v11226_v46  ;;  %8362 = vmatmul.mubr.msk.f32.gmra.mxu0 %vm521_vm3, %v11190_v39  ;;  %13375 = vst [vmem:[#allocation41_spill] sm:$0xff] %v11249_v11  ;;  %v3522_v46 = vrot.slane %v3361_v29, 5  ;;  %13376 = vst [vmem:[#allocation7_spill] sm:$0xff] %v11258_v12  ;;  %v3668_v59 = vrot.slane %v11249_v11, 1  ;;  %v3669_v58 = vrot.slane %v11242_v24, 1  ;;  %v11265_v29 = vsel %vm267_vm1, %v3468_v16, %v3521_v36 }
 0x2cb   : > { %8311 = vmatprep.mubr.msk.f32.mxu1 %vm521_vm3, %v11232_v49  ;;  %8364 = vmatprep.mubr.msk.f32.mxu0 %vm521_vm3, %v11223_v34  ;;  %v11268_v14 = vsel %vm267_vm1, %v3470_v35, %v3471_v17  ;;  %v11275_v37 = vsel %vm267_vm1, %v3394_v33, %v3470_v35  ;;  %v11278_v7 = vsel %vm443_vm2, %v3664_v47, %v3666_v18  ;;  %v3671_v23 = vrot.slane %v11265_v29, 1 }
 0x2cc   : > { %v11284_v36 = vsel %vm443_vm2, %v3668_v59, %v3669_v58  ;;  %v3673_v16 = vrot.slane %v11275_v37, 1  ;;  %v11291_v33 = vsel %vm267_vm1, %v3471_v17, %v3522_v46  ;;  %v4256_v46 = vrot.slane %v10844_v13, 2 }
 0x2cd   : > { %v11298_v47 = vsel %vm443_vm2, %v3669_v58, %v3671_v23  ;;  %v3676_v35 = vrot.slane %v11291_v33, 1  ;;  %v4257_v17 = vrot.slane %v10847_v56, 2  ;;  %v4259_v59 = vrot.slane %v10841_v9, 2  ;;  %v11330_v9 = vld [vmem:[%s12934_s2 + $0x1c] sm:$0xf] }
 0x2ce   : > { %8312 = vmatmul.mubr.msk.f32.gmra.mxu1 %vm521_vm3, %v11252_v42  ;;  %8365 = vmatmul.mubr.msk.f32.gmra.mxu0 %vm521_vm3, %v11216_v30  ;;  %v4261_v23 = vrot.slane %v10865_v5, 2 }
 0x2cf   : > { %8314 = vmatprep.mubr.msk.f32.mxu1 %vm521_vm3, %v11258_v12  ;;  %8367 = vmatprep.mubr.msk.f32.mxu0 %vm521_vm3, %v11249_v11  ;;  %v3674_v12 = vrot.slane %v11268_v14, 1 }
 0x2d1   : > { %v11304_v18 = vsel %vm443_vm2, %v3673_v16, %v3674_v12  ;;  %v11316_v58 = vsel %vm443_vm2, %v3674_v12, %v3676_v35  ;;  %v11322_v16 = vsel %vm1099_vm4, %v4256_v46, %v4257_v17  ;;  %v4264_v12 = vrot.slane %v10862_v57, 2 }
 0x2d2   : > { %8315 = vmatmul.mubr.msk.f32.gmra.mxu1 %vm521_vm3, %v11278_v7  ;;  %8368 = vmatmul.mubr.msk.f32.gmra.mxu0 %vm521_vm3, %v11242_v24  ;;  %13377 = vst [vmem:[#allocation16_spill] sm:$0xff] %v11304_v18  ;;  %v4266_v57 = vrot.slane %v10912_v43, 2  ;;  %v4269_v46 = vrot.slane %v10934_v28, 2 }
 0x2d3   : > { %8317 = vmatprep.mubr.msk.f32.mxu1 %vm521_vm3, %v11284_v36  ;;  %8370 = vmatprep.mubr.msk.f32.mxu0 %vm521_vm3, %v11275_v37 }
 0x2d6   : > { %8318 = vmatmul.mubr.msk.f32.gmra.mxu1 %vm521_vm3, %v11298_v47  ;;  %8371 = vmatmul.mubr.msk.f32.gmra.mxu0 %vm521_vm3, %v11268_v14 }
 0x2d7   : > { %8320 = vmatprep.mubr.msk.f32.mxu1 %vm521_vm3, %v11304_v18  ;;  %8425 = vmatprep.mubr.msk.f32.mxu0 %vm521_vm3, %v10865_v5  ;;  %v4262_v18 = vrot.slane %v10868_v63, 2  ;;  %v11339_v5 = vsel %vm1099_vm4, %v4257_v17, %v4259_v59  ;;  %v4271_v17 = vrot.slane %v10944_v62, 2  ;;  %v4272_v59 = vrot.slane %v10937_v22, 2 }
 0x2d9   : > { %v11352_v35 = vsel %vm1099_vm4, %v4261_v23, %v4262_v18  ;;  %v4274_v23 = vrot.slane %v10964_v20, 2 }
 0x2da   : > { %8321 = vmatmul.mubr.msk.f32.gmra.mxu1 %vm521_vm3, %v11316_v58  ;;  %8426 = vmatmul.mubr.msk.f32.vlgmr.msra.gmra.mxu0 %vm521_vm3, %v10868_v63  ;;  %v11345_v63 = vld [vmem:[%s12934_s2 + $0x18] sm:$0xf] }
 0x2db   : > { %8375 = vmatprep.mubr.msk.f32.mxu1 %vm521_vm3, %v11322_v16  ;;  %8428 = vmatprep.mubr.msk.f32.mxu0 %vm521_vm3, %v10844_v13  ;;  %v11409_v20 = vsel %vm1099_vm4, %v4272_v59, %v4274_v23 }
 0x2dc   : > { %8524 = vmatpush3.msk.msra.mxu0 %vm582_vm0, %v10855_v61  ;;  %v11365_v61 = vsel %vm1099_vm4, %v4262_v18, %v4264_v12  ;;  %v11398_v12 = vsel %vm1099_vm4, %v4271_v17, %v4272_v59  ;;  %v4281_v17 = vrot.slane %v11007_v15, 2  ;;  %v4284_v59 = vrot.slane %v11030_v38, 2 }
 0x2dd   : > { %8623 = vmatprep.subr.msk.mxu0 %vm582_vm0, %v11330_v9  ;;  %v4289_v38 = vrot.slane %v11063_v26, 2  ;;  %v4294_v26 = vrot.slane %v11096_v21, 2  ;;  %v4299_v21 = vrot.slane %v11127_v4, 2  ;;  %v4304_v4 = vrot.slane %v11157_v50, 2 }
 0x2de   : > { %8376 = vmatmul.mubr.msk.f32.vlgmr.msra.gmra.mxu1 %vm521_vm3, %v11339_v5  ;;  %8429 = vmatmul.mubr.msk.f32.gmra.mxu0 %vm521_vm3, %v10847_v56  ;;  %v4309_v50 = vrot.slane %v11187_v27, 2  ;;  %v4314_v27 = vrot.slane %v11213_v0, 2  ;;  %v4321_v0 = vrot.slane %v11249_v11, 2 }
 0x2df   : > { %8474 = vmatpush3.msk.msra.mxu1 %vm582_vm0, %v10894_v2  ;;  %8378 = vmatprep.mubr.msk.f32.mxu1 %vm521_vm3, %v11352_v35  ;;  %v4267_v2 = vrot.slane %v10902_v48, 2 }
 0x2e0   : > { %8431 = vmatprep.mubr.msk.f32.mxu0 %vm521_vm3, %v10912_v43  ;;  %8573 = vmatprep.subr.msk.mxu1 %vm582_vm0, %v11345_v63 }
 0x2e1   : > { %v11381_v18 = vsel %vm1099_vm4, %v4266_v57, %v4267_v2  ;;  %v11392_v28 = vsel %vm1099_vm4, %v4267_v2, %v4269_v46  ;;  %v4276_v57 = vrot.slane %v10974_v1, 2  ;;  %v4279_v2 = vrot.slane %v10997_v54, 2 }
 0x2e2   : > { %8379 = vmatmul.mubr.msk.f32.gmra.mxu1 %vm521_vm3, %v11365_v61  ;;  %8432 = vmatmul.mubr.msk.f32.gmra.mxu0 %vm521_vm3, %v10902_v48 }
 0x2e3   : > { %8381 = vmatprep.mubr.msk.f32.mxu1 %vm521_vm3, %v11322_v16  ;;  %8434 = vmatprep.mubr.msk.f32.mxu0 %vm521_vm3, %v10944_v62 }
 0x2e6   : > { %8382 = vmatmul.mubr.msk.f32.gmra.mxu1 %vm521_vm3, %v11339_v5  ;;  %8435 = vmatmul.mubr.msk.f32.gmra.mxu0 %vm521_vm3, %v10937_v22  ;;  %v4277_v22 = vrot.slane %v10967_v31, 2 }
 0x2e7   : > { %8384 = vmatprep.mubr.msk.f32.mxu1 %vm521_vm3, %v11381_v18  ;;  %8437 = vmatprep.mubr.msk.f32.mxu0 %vm521_vm3, %v10974_v1 }
 0x2e8   : > { %v11415_v46 = vsel %vm1099_vm4, %v4276_v57, %v4277_v22  ;;  %v11426_v54 = vsel %vm1099_vm4, %v4277_v22, %v4279_v2  ;;  %v4286_v57 = vrot.slane %v11040_v44, 2 }
 0x2e9   : > { %13378 = vst [vmem:[#allocation62_spill] sm:$0xff] %v11426_v54 }
 0x2ea   : > { %8385 = vmatmul.mubr.msk.f32.gmra.mxu1 %vm521_vm3, %v11392_v28  ;;  %8438 = vmatmul.mubr.msk.f32.gmra.mxu0 %vm521_vm3, %v10967_v31  ;;  %v4282_v31 = vrot.slane %v11000_v25, 2 }
 0x2eb   : > { %8387 = vmatprep.mubr.msk.f32.mxu1 %vm521_vm3, %v11398_v12  ;;  %8440 = vmatprep.mubr.msk.f32.mxu0 %vm521_vm3, %v11007_v15 }
 0x2ec   : > { %v11432_v23 = vsel %vm1099_vm4, %v4281_v17, %v4282_v31  ;;  %v11443_v22 = vsel %vm1099_vm4, %v4282_v31, %v4284_v59  ;;  %v4291_v17 = vrot.slane %v11073_v8, 2 }
 0x2ed   : > { %13379 = vst [vmem:[#allocation65_spill] sm:$0xff] %v11432_v23  ;;  %13380 = vst [vmem:[#allocation17_spill] sm:$0xff] %v11443_v22 }
 0x2ee   : > { %8388 = vmatmul.mubr.msk.f32.gmra.mxu1 %vm521_vm3, %v11409_v20  ;;  %8441 = vmatmul.mubr.msk.f32.gmra.mxu0 %vm521_vm3, %v11000_v25  ;;  %v4287_v25 = vrot.slane %v11033_v45, 2 }
 0x2ef   : > { %8390 = vmatprep.mubr.msk.f32.mxu1 %vm521_vm3, %v11415_v46  ;;  %8443 = vmatprep.mubr.msk.f32.mxu0 %vm521_vm3, %v11040_v44 }
 0x2f0   : > { %v11449_v2 = vsel %vm1099_vm4, %v4286_v57, %v4287_v25  ;;  %v11460_v31 = vsel %vm1099_vm4, %v4287_v25, %v4289_v38  ;;  %v4296_v57 = vrot.slane %v11106_v53, 2 }
 0x2f1   : > { %13381 = vst [vmem:[#allocation15_spill] sm:$0xff] %v11449_v2  ;;  %13382 = vst [vmem:[#allocation43_spill] sm:$0xff] %v11460_v31 }
 0x2f2   : > { %8391 = vmatmul.mubr.msk.f32.gmra.mxu1 %vm521_vm3, %v11426_v54  ;;  %8444 = vmatmul.mubr.msk.f32.gmra.mxu0 %vm521_vm3, %v11033_v45  ;;  %v4292_v45 = vrot.slane %v11066_v10, 2 }
 0x2f3   : > { %8393 = vmatprep.mubr.msk.f32.mxu1 %vm521_vm3, %v11432_v23  ;;  %8446 = vmatprep.mubr.msk.f32.mxu0 %vm521_vm3, %v11073_v8 }
 0x2f4   : > { %v11466_v59 = vsel %vm1099_vm4, %v4291_v17, %v4292_v45  ;;  %v11477_v25 = vsel %vm1099_vm4, %v4292_v45, %v4294_v26  ;;  %v4301_v17 = vrot.slane %v11137_v19, 2 }
 0x2f5   : > { %13383 = vst [vmem:[#allocation46_spill] sm:$0xff] %v11466_v59  ;;  %13384 = vst [vmem:[#allocation13_spill] sm:$0xff] %v11477_v25 }
 0x2f6   : > { %8394 = vmatmul.mubr.msk.f32.gmra.mxu1 %vm521_vm3, %v11443_v22  ;;  %8447 = vmatmul.mubr.msk.f32.gmra.mxu0 %vm521_vm3, %v11066_v10  ;;  %v4297_v10 = vrot.slane %v11099_v6, 2 }
 0x2f7   : > { %8396 = vmatprep.mubr.msk.f32.mxu1 %vm521_vm3, %v11449_v2  ;;  %8449 = vmatprep.mubr.msk.f32.mxu0 %vm521_vm3, %v11106_v53 }
 0x2f8   : > { %v11483_v38 = vsel %vm1099_vm4, %v4296_v57, %v4297_v10  ;;  %v11494_v45 = vsel %vm1099_vm4, %v4297_v10, %v4299_v21  ;;  %v4306_v57 = vrot.slane %v11167_v60, 2  ;;  %v3330_v21 = vmul.f32 %v10814_v41, %v10663_v40 }
 0x2f9   : > { %13385 = vst [vmem:[#allocation21_spill] sm:$0xff] %v11483_v38  ;;  %13386 = vst [vmem:[#allocation64_spill] sm:$0xff] %v11494_v45  ;;  %v11531_v40 = vmul.f32 %v10814_v41, %v10665_v32  ;;  %v4317_v32 = vrot.slane %v11216_v30, 2 }
 0x2fa   : > { %8397 = vmatmul.mubr.msk.f32.gmra.mxu1 %vm521_vm3, %v11460_v31  ;;  %8450 = vmatmul.mubr.msk.f32.gmra.mxu0 %vm521_vm3, %v11099_v6  ;;  %v4302_v6 = vrot.slane %v11130_v55, 2 }
 0x2fb   : > { %8399 = vmatprep.mubr.msk.f32.mxu1 %vm521_vm3, %v11466_v59  ;;  %8452 = vmatprep.mubr.msk.f32.mxu0 %vm521_vm3, %v11137_v19 }
 0x2fc   : > { %v11500_v26 = vsel %vm1099_vm4, %v4301_v17, %v4302_v6  ;;  %v11511_v10 = vsel %vm1099_vm4, %v4302_v6, %v4304_v4  ;;  %v3362_v4 = vmax.f32 %v3330_v21, 0.0  ;;  %v4322_v21 = vrot.slane %v11242_v24, 2 }
 0x2fd   : > { %13387 = vst [vmem:[#allocation67_spill] sm:$0xff] %v11500_v26 }
 0x2fe   : > { %8400 = vmatmul.mubr.msk.f32.gmra.mxu1 %vm521_vm3, %v11477_v25  ;;  %8453 = vmatmul.mubr.msk.f32.gmra.mxu0 %vm521_vm3, %v11130_v55  ;;  %v4307_v55 = vrot.slane %v11160_v52, 2  ;;  %v3473_v41 = vrot.slane %v3362_v4, 7 }
 0x2ff   : > { %8402 = vmatprep.mubr.msk.f32.mxu1 %vm521_vm3, %v11483_v38  ;;  %8455 = vmatprep.mubr.msk.f32.mxu0 %vm521_vm3, %v11167_v60  ;;  %v4312_v60 = vrot.slane %v11190_v39, 2 }
 0x300   : > { %v11519_v17 = vsel %vm1099_vm4, %v4306_v57, %v4307_v55  ;;  %v11534_v6 = vsel %vm1099_vm4, %v4307_v55, %v4309_v50 }
 0x301   : > { %13388 = vst [vmem:[#allocation20_spill] sm:$0xff] %v11519_v17  ;;  %13389 = vst [vmem:[#allocation18_spill] sm:$0xff] %v11534_v6  ;;  %v11552_v55 = vsel %vm1099_vm4, %v4312_v60, %v4314_v27  ;;  %v4324_v27 = vrot.slane %v11265_v29, 2 }
 0x302   : > { %8403 = vmatmul.mubr.msk.f32.gmra.mxu1 %vm521_vm3, %v11494_v45  ;;  %8456 = vmatmul.mubr.msk.f32.gmra.mxu0 %vm521_vm3, %v11160_v52  ;;  %v4311_v52 = vrot.slane %v11197_v51, 2  ;;  %13391 = vst [vmem:[#allocation45_spill] sm:$0xff] %v11552_v55 }
 0x303   : > { %8405 = vmatprep.mubr.msk.f32.mxu1 %vm521_vm3, %v11500_v26  ;;  %8458 = vmatprep.mubr.msk.f32.mxu0 %vm521_vm3, %v11197_v51  ;;  %v11593_v29 = vsel %vm1099_vm4, %v4322_v21, %v4324_v27  ;;  %v13406_v27 = vld [vmem:[#allocation38_spill] sm:$0xff] }
 0x304   : > { %v11540_v57 = vsel %vm1099_vm4, %v4311_v52, %v4312_v60  ;;  %v4319_v52 = vrot.slane %v11239_v3, 2  ;;  %v13393_v60 = vmax.f32 %v11531_v40, 0.0  ;;  %13396 = vst [vmem:[#allocation69_spill] sm:$0xff] %v11593_v29 }
 0x305   : > { %13390 = vst [vmem:[#allocation48_spill] sm:$0xff] %v11540_v57 }
 0x306   : > { %8406 = vmatmul.mubr.msk.f32.gmra.mxu1 %vm521_vm3, %v11511_v10  ;;  %8459 = vmatmul.mubr.msk.f32.gmra.mxu0 %vm521_vm3, %v11190_v39  ;;  %v4316_v39 = vrot.slane %v11223_v34, 2  ;;  %v11570_v3 = vrot.slane %v13393_v60, 7  ;;  %v4326_v60 = vrot.slane %v11275_v37, 2 }
 0x307   : > { %8408 = vmatprep.mubr.msk.f32.mxu1 %vm521_vm3, %v11519_v17  ;;  %8461 = vmatprep.mubr.msk.f32.mxu0 %vm521_vm3, %v11223_v34 }
 0x308   : > { %v11559_v50 = vsel %vm1099_vm4, %v4316_v39, %v4317_v32  ;;  %v11573_v39 = vsel %vm1099_vm4, %v4317_v32, %v4319_v52  ;;  %v11597_v32 = vsel %vm267_vm1, %v3473_v41, %v11570_v3 }
 0x309   : > { %13392 = vst [vmem:[#allocation19_spill] sm:$0xff] %v11559_v50  ;;  %13394 = vst [vmem:[#allocation25_spill] sm:$0xff] %v11573_v39 }
 0x30a   : > { %8409 = vmatmul.mubr.msk.f32.gmra.mxu1 %vm521_vm3, %v11534_v6  ;;  %8462 = vmatmul.mubr.msk.f32.gmra.mxu0 %vm521_vm3, %v11216_v30  ;;  %v3395_v30 = vrot.slane %v3362_v4, 1  ;;  %v11579_v4 = vsel %vm1099_vm4, %v4321_v0, %v4322_v21  ;;  %v13403_v0 = vld [vmem:[#allocation55_spill] sm:$0xff]  ;;  %v13405_v21 = vld [vmem:[#allocation2_spill] sm:$0xff] }
 0x30b   : > { %8411 = vmatprep.mubr.msk.f32.mxu1 %vm521_vm3, %v11540_v57  ;;  %8464 = vmatprep.mubr.msk.f32.mxu0 %vm521_vm3, %v11249_v11  ;;  %13395 = vst [vmem:[#allocation66_spill] sm:$0xff] %v11579_v4  ;;  %v4327_v11 = vrot.slane %v11268_v14, 2 }
 0x30d   : > { %v11603_v52 = vsel %vm1099_vm4, %v4326_v60, %v4327_v11  ;;  %v13407_v60 = vld [vmem:[#allocation30_spill] sm:$0xff] }
 0x30e   : > { %8412 = vmatmul.mubr.msk.f32.gmra.mxu1 %vm521_vm3, %v11552_v55  ;;  %8465 = vmatmul.mubr.msk.f32.gmra.mxu0 %vm521_vm3, %v11242_v24  ;;  %v11584_v24 = vsel %vm267_vm1, %v3395_v30, %v3473_v41  ;;  %v4329_v30 = vrot.slane %v11291_v33, 2  ;;  %13397 = vst [vmem:[#allocation24_spill] sm:$0xff] %v11603_v52  ;;  %v13399_v33 = vld [vmem:[#allocation28_spill] sm:$0xff] }
 0x30f   : > { %8414 = vmatprep.mubr.msk.f32.mxu1 %vm521_vm3, %v11559_v50  ;;  %8467 = vmatprep.mubr.msk.f32.mxu0 %vm521_vm3, %v11275_v37 }
 0x310   : > { %v11612_v41 = vsel %vm1099_vm4, %v4327_v11, %v4329_v30  ;;  %v11627_v11 = vld [vmem:[%s12934_s2 + $0x20] sm:$0xf]  ;;  %v13408_v30 = vld [vmem:[#allocation56_spill] sm:$0xff] }
 0x311   : > { %13398 = vst [vmem:[#allocation22_spill] sm:$0xff] %v11612_v41 }
 0x312   : > { %8415 = vmatmul.mubr.msk.f32.gmra.mxu1 %vm521_vm3, %v11573_v39  ;;  %8468 = vmatmul.mubr.msk.f32.gmra.mxu0 %vm521_vm3, %v11268_v14 }
 0x313   : > { %8417 = vmatprep.mubr.msk.f32.mxu1 %vm521_vm3, %v11579_v4  ;;  %8470 = vmatprep.mubr.msk.f32.mxu0 %vm521_vm3, %v11584_v24 }
 0x316   : > { %8418 = vmatmul.mubr.msk.f32.gmra.mxu1 %vm521_vm3, %v11593_v29  ;;  %8471 = vmatmul.mubr.msk.f32.gmra.mxu0 %vm521_vm3, %v11597_v32 }
 0x317   : > { %8420 = vmatprep.mubr.msk.f32.mxu1 %vm521_vm3, %v11603_v52  ;;  %8525 = vmatprep.mubr.msk.f32.mxu0 %vm521_vm3, %v11352_v35  ;;  %v13400_v35 = vld [vmem:[#allocation26_spill] sm:$0xff] }
 0x31a   : > { %8421 = vmatmul.mubr.msk.f32.gmra.mxu1 %vm521_vm3, %v11612_v41  ;;  %8526 = vmatmul.mubr.msk.f32.vlgmr.msra.gmra.mxu0 %vm521_vm3, %v11365_v61  ;;  %v13401_v61 = vld [vmem:[#allocation35_spill] sm:$0xff] }
 0x31b   : > { %8475 = vmatprep.mubr.msk.f32.mxu1 %vm521_vm3, %v13399_v33  ;;  %8528 = vmatprep.mubr.msk.f32.mxu0 %vm521_vm3, %v11322_v16  ;;  %v13409_v33 = vld [vmem:[#allocation59_spill] sm:$0xff] }
 0x31c   : > { %8624 = vmatpush3.msk.msra.mxu0 %vm582_vm0, %v11330_v9  ;;  %v13402_v9 = vld [vmem:[#allocation31_spill] sm:$0xff] }
 0x31e   : > { %8476 = vmatmul.mubr.msk.f32.vlgmr.msra.gmra.mxu1 %vm521_vm3, %v13400_v35  ;;  %8529 = vmatmul.mubr.msk.f32.gmra.mxu0 %vm521_vm3, %v11339_v5  ;;  %v13410_v35 = vld [vmem:[#allocation6_spill] sm:$0xff] }
 0x31f   : > { %8574 = vmatpush3.msk.msra.mxu1 %vm582_vm0, %v11345_v63  ;;  %8478 = vmatprep.mubr.msk.f32.mxu1 %vm521_vm3, %v13401_v61  ;;  %v13404_v63 = vld [vmem:[#allocation3_spill] sm:$0xff] }
 0x320   : > { %8531 = vmatprep.mubr.msk.f32.mxu0 %vm521_vm3, %v11381_v18  ;;  %8673 = vmatprep.subr.msk.mxu1 %vm582_vm0, %v11627_v11 }
 0x322   : > { %8479 = vmatmul.mubr.msk.f32.gmra.mxu1 %vm521_vm3, %v13402_v9  ;;  %8532 = vmatmul.mubr.msk.f32.gmra.mxu0 %vm521_vm3, %v11392_v28 }
 0x323   : > { %8481 = vmatprep.mubr.msk.f32.mxu1 %vm521_vm3, %v13403_v0  ;;  %8534 = vmatprep.mubr.msk.f32.mxu0 %vm521_vm3, %v11398_v12 }
 0x326   : > { %8482 = vmatmul.mubr.msk.f32.gmra.mxu1 %vm521_vm3, %v13404_v63  ;;  %8535 = vmatmul.mubr.msk.f32.gmra.mxu0 %vm521_vm3, %v11409_v20 }
 0x327   : > { %8484 = vmatprep.mubr.msk.f32.mxu1 %vm521_vm3, %v13405_v21  ;;  %8537 = vmatprep.mubr.msk.f32.mxu0 %vm521_vm3, %v11415_v46 }
 0x32a   : > { %8485 = vmatmul.mubr.msk.f32.gmra.mxu1 %vm521_vm3, %v13406_v27  ;;  %8538 = vmatmul.mubr.msk.f32.gmra.mxu0 %vm521_vm3, %v11426_v54  ;;  %v13411_v54 = vld [vmem:[#allocation40_spill] sm:$0xff] }
 0x32b   : > { %8487 = vmatprep.mubr.msk.f32.mxu1 %vm521_vm3, %v13407_v60  ;;  %8540 = vmatprep.mubr.msk.f32.mxu0 %vm521_vm3, %v11432_v23  ;;  %v13412_v23 = vld [vmem:[#allocation33_spill] sm:$0xff] }
 0x32e   : > { %8488 = vmatmul.mubr.msk.f32.gmra.mxu1 %vm521_vm3, %v13408_v30  ;;  %8541 = vmatmul.mubr.msk.f32.gmra.mxu0 %vm521_vm3, %v11443_v22  ;;  %v13413_v22 = vld [vmem:[#allocation5_spill] sm:$0xff] }
 0x32f   : > { %8490 = vmatprep.mubr.msk.f32.mxu1 %vm521_vm3, %v13409_v33  ;;  %8543 = vmatprep.mubr.msk.f32.mxu0 %vm521_vm3, %v11449_v2  ;;  %v13414_v2 = vld [vmem:[#allocation61_spill] sm:$0xff] }
 0x332   : > { %8491 = vmatmul.mubr.msk.f32.gmra.mxu1 %vm521_vm3, %v13410_v35  ;;  %8544 = vmatmul.mubr.msk.f32.gmra.mxu0 %vm521_vm3, %v11460_v31  ;;  %v13415_v31 = vld [vmem:[#allocation11_spill] sm:$0xff] }
 0x333   : > { %8493 = vmatprep.mubr.msk.f32.mxu1 %vm521_vm3, %v13411_v54  ;;  %8546 = vmatprep.mubr.msk.f32.mxu0 %vm521_vm3, %v11466_v59  ;;  %v13416_v59 = vld [vmem:[#allocation42_spill] sm:$0xff] }
 0x336   : > { %8494 = vmatmul.mubr.msk.f32.gmra.mxu1 %vm521_vm3, %v13412_v23  ;;  %8547 = vmatmul.mubr.msk.f32.gmra.mxu0 %vm521_vm3, %v11477_v25  ;;  %v13417_v25 = vld [vmem:[#allocation4_spill] sm:$0xff] }
 0x337   : > { %8496 = vmatprep.mubr.msk.f32.mxu1 %vm521_vm3, %v13413_v22  ;;  %8549 = vmatprep.mubr.msk.f32.mxu0 %vm521_vm3, %v11483_v38  ;;  %v13418_v38 = vld [vmem:[#allocation60_spill] sm:$0xff] }
 0x33a   : > { %8497 = vmatmul.mubr.msk.f32.gmra.mxu1 %vm521_vm3, %v13414_v2  ;;  %8550 = vmatmul.mubr.msk.f32.gmra.mxu0 %vm521_vm3, %v11494_v45  ;;  %v13419_v45 = vld [vmem:[#allocation63_spill] sm:$0xff] }
 0x33b   : > { %8499 = vmatprep.mubr.msk.f32.mxu1 %vm521_vm3, %v13415_v31  ;;  %8552 = vmatprep.mubr.msk.f32.mxu0 %vm521_vm3, %v11500_v26  ;;  %v13420_v26 = vld [vmem:[#allocation12_spill] sm:$0xff] }
 0x33e   : > { %8500 = vmatmul.mubr.msk.f32.gmra.mxu1 %vm521_vm3, %v13416_v59  ;;  %8553 = vmatmul.mubr.msk.f32.gmra.mxu0 %vm521_vm3, %v11511_v10 }
 0x33f   : > { %8502 = vmatprep.mubr.msk.f32.mxu1 %vm521_vm3, %v13417_v25  ;;  %8555 = vmatprep.mubr.msk.f32.mxu0 %vm521_vm3, %v11519_v17 }
 0x342   : > { %8503 = vmatmul.mubr.msk.f32.gmra.mxu1 %vm521_vm3, %v13418_v38  ;;  %8556 = vmatmul.mubr.msk.f32.gmra.mxu0 %vm521_vm3, %v11534_v6  ;;  %v13421_v6 = vmax.f32 %v11531_v40, 0.0  ;;  %v5193_v40 = vrot.slane %v11597_v32, 2 }
 0x343   : > { %8505 = vmatprep.mubr.msk.f32.mxu1 %vm521_vm3, %v13419_v45  ;;  %8558 = vmatprep.mubr.msk.f32.mxu0 %vm521_vm3, %v11540_v57  ;;  %v13422_v57 = vld [vmem:[#allocation7_spill] sm:$0xff] }
 0x344   : > { %v3523_v17 = vrot.slane %v13421_v6, 5 }
 0x346   : > { %8506 = vmatmul.mubr.msk.f32.gmra.mxu1 %vm521_vm3, %v13420_v26  ;;  %8559 = vmatmul.mubr.msk.f32.gmra.mxu0 %vm521_vm3, %v11552_v55  ;;  %v5192_v55 = vrot.slane %v11584_v24, 2  ;;  %v3571_v6 = vsel %vm267_vm1, %v11570_v3, %v3523_v17  ;;  %v4922_v17 = vrot.slane %v11597_v32, 1  ;;  %v13423_v3 = vld [vmem:[#allocation16_spill] sm:$0xff] }
 0x347   : > { %8508 = vmatprep.mubr.msk.f32.mxu1 %vm521_vm3, %v11232_v49  ;;  %8561 = vmatprep.mubr.msk.f32.mxu0 %vm521_vm3, %v11559_v50  ;;  %v4924_v50 = vrot.slane %v3571_v6, 1 }
 0x34a   : > { %8509 = vmatmul.mubr.msk.f32.gmra.mxu1 %vm521_vm3, %v11252_v42  ;;  %8562 = vmatmul.mubr.msk.f32.gmra.mxu0 %vm521_vm3, %v11573_v39  ;;  %v4921_v39 = vrot.slane %v11584_v24, 1 }
 0x34b   : > { %8511 = vmatprep.mubr.msk.f32.mxu1 %vm521_vm3, %v13422_v57  ;;  %8564 = vmatprep.mubr.msk.f32.mxu0 %vm521_vm3, %v11579_v4  ;;  %v5195_v4 = vrot.slane %v3571_v6, 2 }
 0x34e   : > { %8512 = vmatmul.mubr.msk.f32.gmra.mxu1 %vm521_vm3, %v11278_v7  ;;  %8565 = vmatmul.mubr.msk.f32.gmra.mxu0 %vm521_vm3, %v11593_v29  ;;  %v11749_v29 = vsel %vm1099_vm4, %v5192_v55, %v5193_v40  ;;  %v11771_v55 = vsel %vm443_vm2, %v4922_v17, %v4924_v50 }
 0x34f   : > { %8514 = vmatprep.mubr.msk.f32.mxu1 %vm521_vm3, %v11284_v36  ;;  %8567 = vmatprep.mubr.msk.f32.mxu0 %vm521_vm3, %v11603_v52  ;;  %v11757_v52 = vsel %vm1099_vm4, %v5193_v40, %v5195_v4 }
 0x352   : > { %8515 = vmatmul.mubr.msk.f32.gmra.mxu1 %vm521_vm3, %v11298_v47  ;;  %8568 = vmatmul.mubr.msk.f32.gmra.mxu0 %vm521_vm3, %v11612_v41  ;;  %v11762_v41 = vsel %vm443_vm2, %v4921_v39, %v4922_v17 }
 0x353   : > { %8517 = vmatprep.mubr.msk.f32.mxu1 %vm521_vm3, %v13423_v3  ;;  %8570 = vmatprep.mubr.msk.f32.mxu0 %vm521_vm3, %v11749_v29 }
 0x356   : > { %8518 = vmatmul.mubr.msk.f32.gmra.mxu1 %vm521_vm3, %v11316_v58  ;;  %8571 = vmatmul.mubr.msk.f32.gmra.mxu0 %vm521_vm3, %v11757_v52 }
 0x357   : > { %8520 = vmatprep.mubr.msk.f32.mxu1 %vm521_vm3, %v11762_v41  ;;  %8625 = vmatprep.mubr.msk.f32.mxu0 %vm521_vm3, %v13401_v61 }
 0x35a   : > { %8521 = vmatmul.mubr.msk.f32.gmra.mxu1 %vm521_vm3, %v11771_v55  ;;  %v8327_v4 = vpop.f32.mrf.mxu0  ;;  %8626 = vmatmul.mubr.msk.f32.vlgmr.msra.gmra.mxu0 %vm521_vm3, %v13402_v9 }
 0x35b   : > { %8575 = vmatprep.mubr.msk.f32.mxu1 %vm521_vm3, %v10844_v13  ;;  %8628 = vmatprep.mubr.msk.f32.mxu0 %vm521_vm3, %v13403_v0 }
 0x35c   : > { %v4097_v39 = vpop.f32.mrf.mxu0 }
 0x35e   : > { %v8277_v40 = vpop.f32.mrf.mxu1  ;;  %8576 = vmatmul.mubr.msk.f32.vlgmr.msra.gmra.mxu1 %vm521_vm3, %v10847_v56  ;;  %v8330_v50 = vpop.f32.mrf.mxu0  ;;  %8629 = vmatmul.mubr.msk.f32.gmra.mxu0 %vm521_vm3, %v13404_v63 }
 0x35f   : > { %v11785_v61 = vadd.f32 %v8327_v4, %v8277_v40  ;;  %8674 = vmatpush3.msk.msra.mxu1 %vm582_vm0, %v11627_v11  ;;  %8578 = vmatprep.mubr.msk.f32.mxu1 %vm521_vm3, %v10912_v43  ;;  %v13424_v4 = vld [vmem:[#allocation32_spill] sm:$0xff] }
 0x360   : > { %v3809_v13 = vpop.f32.mrf.mxu1  ;;  %8631 = vmatprep.mubr.msk.f32.mxu0 %vm521_vm3, %v13405_v21  ;;  %v4107_v9 = vpop.f32.mrf.mxu0 }
 0x361   : > { %v11793_v0 = vadd.f32 %v4097_v39, %v3809_v13 }
 0x362   : > { %v8280_v56 = vpop.f32.mrf.mxu1  ;;  %8579 = vmatmul.mubr.msk.f32.gmra.mxu1 %vm521_vm3, %v10902_v48  ;;  %v8333_v63 = vpop.f32.mrf.mxu0  ;;  %8632 = vmatmul.mubr.msk.f32.gmra.mxu0 %vm521_vm3, %v13406_v27 }
 0x363   : > { %v11799_v6 = vadd.f32 %v8330_v50, %v8280_v56  ;;  %8581 = vmatprep.mubr.msk.f32.mxu1 %vm521_vm3, %v10944_v62  ;;  %8634 = vmatprep.mubr.msk.f32.mxu0 %vm521_vm3, %v13407_v60  ;;  %v13425_v50 = vld [vmem:[#allocation57_spill] sm:$0xff] }
 0x364   : > { %v3819_v43 = vpop.f32.mrf.mxu1  ;;  %v4117_v11 = vpop.f32.mrf.mxu0 }
 0x365   : > { %v11805_v21 = vadd.f32 %v4107_v9, %v3819_v43 }
 0x366   : > { %v8283_v17 = vpop.f32.mrf.mxu1  ;;  %8582 = vmatmul.mubr.msk.f32.gmra.mxu1 %vm521_vm3, %v13424_v4  ;;  %v8336_v48 = vpop.f32.mrf.mxu0  ;;  %8635 = vmatmul.mubr.msk.f32.gmra.mxu0 %vm521_vm3, %v13408_v30  ;;  %v13427_v4 = vld [vmem:[#allocation36_spill] sm:$0xff] }
 0x367   : > { %v11811_v27 = vadd.f32 %v8333_v63, %v8283_v17  ;;  %8584 = vmatprep.mubr.msk.f32.mxu1 %vm521_vm3, %v10974_v1  ;;  %8637 = vmatprep.mubr.msk.f32.mxu0 %vm521_vm3, %v13409_v33  ;;  %v13426_v63 = vld [vmem:[#allocation34_spill] sm:$0xff] }
 0x368   : > { %v3829_v62 = vpop.f32.mrf.mxu1  ;;  %v4127_v60 = vpop.f32.mrf.mxu0 }
 0x369   : > { %v11817_v39 = vadd.f32 %v4117_v11, %v3829_v62 }
 0x36a   : > { %v8286_v40 = vpop.f32.mrf.mxu1  ;;  %8585 = vmatmul.mubr.msk.f32.gmra.mxu1 %vm521_vm3, %v13425_v50  ;;  %v8339_v13 = vpop.f32.mrf.mxu0  ;;  %8638 = vmatmul.mubr.msk.f32.gmra.mxu0 %vm521_vm3, %v13410_v35 }
 0x36b   : > { %v11823_v30 = vadd.f32 %v8336_v48, %v8286_v40  ;;  %8587 = vmatprep.mubr.msk.f32.mxu1 %vm521_vm3, %v11007_v15  ;;  %8640 = vmatprep.mubr.msk.f32.mxu0 %vm521_vm3, %v13411_v54  ;;  %v13428_v40 = vld [vmem:[#allocation8_spill] sm:$0xff] }
 0x36c   : > { %v3839_v1 = vpop.f32.mrf.mxu1  ;;  %v4137_v33 = vpop.f32.mrf.mxu0 }
 0x36d   : > { %v11829_v9 = vadd.f32 %v4127_v60, %v3839_v1 }
 0x36e   : > { %v8289_v56 = vpop.f32.mrf.mxu1  ;;  %8588 = vmatmul.mubr.msk.f32.gmra.mxu1 %vm521_vm3, %v13426_v63  ;;  %v8342_v43 = vpop.f32.mrf.mxu0  ;;  %8641 = vmatmul.mubr.msk.f32.gmra.mxu0 %vm521_vm3, %v13412_v23 }
 0x36f   : > { %v11835_v35 = vadd.f32 %v8339_v13, %v8289_v56  ;;  %8590 = vmatprep.mubr.msk.f32.mxu1 %vm521_vm3, %v11040_v44  ;;  %8643 = vmatprep.mubr.msk.f32.mxu0 %vm521_vm3, %v13413_v22 }
 0x370   : > { %v3849_v15 = vpop.f32.mrf.mxu1  ;;  %v4147_v54 = vpop.f32.mrf.mxu0 }
 0x371   : > { %v11841_v11 = vadd.f32 %v4137_v33, %v3849_v15  ;;  %v13429_v33 = vld [vmem:[#allocation37_spill] sm:$0xff]  ;;  %v13430_v15 = vld [vmem:[#allocation58_spill] sm:$0xff] }
 0x372   : > { %v8292_v17 = vpop.f32.mrf.mxu1  ;;  %8591 = vmatmul.mubr.msk.f32.gmra.mxu1 %vm521_vm3, %v13427_v4  ;;  %v8345_v48 = vpop.f32.mrf.mxu0  ;;  %8644 = vmatmul.mubr.msk.f32.gmra.mxu0 %vm521_vm3, %v13414_v2 }
 0x373   : > { %v11847_v23 = vadd.f32 %v8342_v43, %v8292_v17  ;;  %8593 = vmatprep.mubr.msk.f32.mxu1 %vm521_vm3, %v11073_v8  ;;  %8646 = vmatprep.mubr.msk.f32.mxu0 %vm521_vm3, %v13415_v31  ;;  %v13431_v17 = vld [vmem:[#allocation39_spill] sm:$0xff] }
 0x374   : > { %v3859_v44 = vpop.f32.mrf.mxu1  ;;  %v4157_v22 = vpop.f32.mrf.mxu0 }
 0x375   : > { %v11853_v62 = vadd.f32 %v4147_v54, %v3859_v44  ;;  %v13432_v44 = vld [vmem:[#allocation9_spill] sm:$0xff] }
 0x376   : > { %v8295_v60 = vpop.f32.mrf.mxu1  ;;  %8594 = vmatmul.mubr.msk.f32.gmra.mxu1 %vm521_vm3, %v13428_v40  ;;  %v8348_v50 = vpop.f32.mrf.mxu0  ;;  %8647 = vmatmul.mubr.msk.f32.gmra.mxu0 %vm521_vm3, %v13416_v59 }
 0x377   : > { %v11859_v2 = vadd.f32 %v8345_v48, %v8295_v60  ;;  %8596 = vmatprep.mubr.msk.f32.mxu1 %vm521_vm3, %v11106_v53  ;;  %8649 = vmatprep.mubr.msk.f32.mxu0 %vm521_vm3, %v13417_v25 }
 0x378   : > { %v3869_v8 = vpop.f32.mrf.mxu1  ;;  %v4167_v31 = vpop.f32.mrf.mxu0 }
 0x379   : > { %v11865_v13 = vadd.f32 %v4157_v22, %v3869_v8  ;;  %v13433_v8 = vld [vmem:[#allocation10_spill] sm:$0xff] }
 0x37a   : > { %v8298_v1 = vpop.f32.mrf.mxu1  ;;  %8597 = vmatmul.mubr.msk.f32.gmra.mxu1 %vm521_vm3, %v13429_v33  ;;  %v8351_v56 = vpop.f32.mrf.mxu0  ;;  %8650 = vmatmul.mubr.msk.f32.gmra.mxu0 %vm521_vm3, %v13418_v38 }
 0x37b   : > { %v11871_v59 = vadd.f32 %v8348_v50, %v8298_v1  ;;  %8599 = vmatprep.mubr.msk.f32.mxu1 %vm521_vm3, %v11137_v19  ;;  %8652 = vmatprep.mubr.msk.f32.mxu0 %vm521_vm3, %v13419_v45 }
 0x37c   : > { %v3879_v53 = vpop.f32.mrf.mxu1  ;;  %v4177_v25 = vpop.f32.mrf.mxu0 }
 0x37d   : > { %v11877_v63 = vadd.f32 %v4167_v31, %v3879_v53 }
 0x37e   : > { %v8301_v43 = vpop.f32.mrf.mxu1  ;;  %8600 = vmatmul.mubr.msk.f32.gmra.mxu1 %vm521_vm3, %v13430_v15  ;;  %v8354_v54 = vpop.f32.mrf.mxu0  ;;  %8653 = vmatmul.mubr.msk.f32.gmra.mxu0 %vm521_vm3, %v13420_v26 }
 0x37f   : > { %v11883_v38 = vadd.f32 %v8351_v56, %v8301_v43  ;;  %8602 = vmatprep.mubr.msk.f32.mxu1 %vm521_vm3, %v13431_v17  ;;  %8655 = vmatprep.mubr.msk.f32.mxu0 %vm521_vm3, %v11232_v49  ;;  %v13434_v56 = vld [vmem:[#allocation14_spill] sm:$0xff] }
 0x380   : > { %v3889_v19 = vpop.f32.mrf.mxu1  ;;  %v4187_v45 = vpop.f32.mrf.mxu0 }
 0x381   : > { %v11889_v4 = vadd.f32 %v4177_v25, %v3889_v19  ;;  %v13435_v25 = vld [vmem:[#allocation41_spill] sm:$0xff] }
 0x382   : > { %v8304_v48 = vpop.f32.mrf.mxu1  ;;  %8603 = vmatmul.mubr.msk.f32.gmra.mxu1 %vm521_vm3, %v13432_v44  ;;  %v8357_v22 = vpop.f32.mrf.mxu0  ;;  %8656 = vmatmul.mubr.msk.f32.gmra.mxu0 %vm521_vm3, %v11252_v42 }
 0x383   : > { %v11895_v26 = vadd.f32 %v8354_v54, %v8304_v48  ;;  %8605 = vmatprep.mubr.msk.f32.mxu1 %vm521_vm3, %v11197_v51  ;;  %8658 = vmatprep.mubr.msk.f32.mxu0 %vm521_vm3, %v13422_v57  ;;  %v13436_v54 = vld [vmem:[#allocation44_spill] sm:$0xff] }
 0x384   : > { %v3899_v49 = vpop.f32.mrf.mxu1  ;;  %v4197_v60 = vpop.f32.mrf.mxu0 }
 0x385   : > { %v11901_v40 = vadd.f32 %v4187_v45, %v3899_v49 }
 0x386   : > { %v8307_v50 = vpop.f32.mrf.mxu1  ;;  %8606 = vmatmul.mubr.msk.f32.gmra.mxu1 %vm521_vm3, %v13433_v8  ;;  %v8360_v31 = vpop.f32.mrf.mxu0  ;;  %8659 = vmatmul.mubr.msk.f32.gmra.mxu0 %vm521_vm3, %v11278_v7 }
 0x387   : > { %v11907_v42 = vadd.f32 %v8357_v22, %v8307_v50  ;;  %8608 = vmatprep.mubr.msk.f32.mxu1 %vm521_vm3, %v11223_v34  ;;  %8661 = vmatprep.mubr.msk.f32.mxu0 %vm521_vm3, %v11284_v36 }
 0x388   : > { %v3909_v51 = vpop.f32.mrf.mxu1  ;;  %v4207_v57 = vpop.f32.mrf.mxu0 }
 0x389   : > { %v11913_v1 = vadd.f32 %v4197_v60, %v3909_v51 }
 0x38a   : > { %v8310_v33 = vpop.f32.mrf.mxu1  ;;  %8609 = vmatmul.mubr.msk.f32.gmra.mxu1 %vm521_vm3, %v13434_v56  ;;  %v8363_v53 = vpop.f32.mrf.mxu0  ;;  %8662 = vmatmul.mubr.msk.f32.gmra.mxu0 %vm521_vm3, %v11298_v47 }
 0x38b   : > { %v11919_v7 = vadd.f32 %v8360_v31, %v8310_v33  ;;  %8611 = vmatprep.mubr.msk.f32.mxu1 %vm521_vm3, %v13435_v25  ;;  %8664 = vmatprep.mubr.msk.f32.mxu0 %vm521_vm3, %v13423_v3 }
 0x38c   : > { %v3919_v34 = vpop.f32.mrf.mxu1  ;;  %v4217_v36 = vpop.f32.mrf.mxu0 }
 0x38d   : > { %v11925_v43 = vadd.f32 %v4207_v57, %v3919_v34 }
 0x38e   : > { %v8313_v15 = vpop.f32.mrf.mxu1  ;;  %8612 = vmatmul.mubr.msk.f32.gmra.mxu1 %vm521_vm3, %v13436_v54  ;;  %v8366_v17 = vpop.f32.mrf.mxu0  ;;  %8665 = vmatmul.mubr.msk.f32.gmra.mxu0 %vm521_vm3, %v11316_v58 }
 0x38f   : > { %v11931_v47 = vadd.f32 %v8363_v53, %v8313_v15  ;;  %8614 = vmatprep.mubr.msk.f32.mxu1 %vm521_vm3, %v11275_v37  ;;  %8667 = vmatprep.mubr.msk.f32.mxu0 %vm521_vm3, %v11762_v41 }
 0x390   : > { %v3929_v19 = vpop.f32.mrf.mxu1  ;;  %v4227_v45 = vpop.f32.mrf.mxu0 }
 0x391   : > { %v11937_v48 = vadd.f32 %v4217_v36, %v3929_v19 }
 0x392   : > { %v8316_v44 = vpop.f32.mrf.mxu1  ;;  %8615 = vmatmul.mubr.msk.f32.gmra.mxu1 %vm521_vm3, %v11268_v14  ;;  %v8369_v22 = vpop.f32.mrf.mxu0  ;;  %8668 = vmatmul.mubr.msk.f32.gmra.mxu0 %vm521_vm3, %v11771_v55 }
 0x393   : > { %v11943_v49 = vadd.f32 %v8366_v17, %v8316_v44  ;;  %8617 = vmatprep.mubr.msk.f32.mxu1 %vm521_vm3, %v11584_v24  ;;  %8670 = vmatprep.mubr.msk.f32.mxu0 %vm521_vm3, %v13423_v3 }
 0x394   : > { %v3939_v41 = vpop.f32.mrf.mxu1  ;;  %v4237_v60 = vpop.f32.mrf.mxu0 }
 0x395   : > { %v11949_v50 = vadd.f32 %v4227_v45, %v3939_v41 }
 0x396   : > { %v8319_v8 = vpop.f32.mrf.mxu1  ;;  %8618 = vmatmul.mubr.msk.f32.gmra.mxu1 %vm521_vm3, %v11597_v32  ;;  %v8372_v31 = vpop.f32.mrf.mxu0  ;;  %8671 = vmatmul.mubr.msk.f32.gmra.mxu0 %vm521_vm3, %v11316_v58 }
 0x397   : > { %v11955_v55 = vadd.f32 %v8369_v22, %v8319_v8  ;;  %8620 = vmatprep.mubr.msk.f32.mxu1 %vm521_vm3, %v11275_v37 }
 0x398   : > { %v3949_v24 = vpop.f32.mrf.mxu1  ;;  %v4247_v51 = vpop.f32.mrf.mxu0 }
 0x399   : > { %v11959_v3 = vadd.f32 %v4237_v60, %v3949_v24 }
 0x39a   : > { %v8322_v57 = vpop.f32.mrf.mxu1  ;;  %8621 = vmatmul.mubr.msk.f32.gmra.mxu1 %vm521_vm3, %v11268_v14  ;;  %v8427_v33 = vpop.f32.mrf.mxu0 }
 0x39b   : > { %v11963_v56 = vadd.f32 %v8372_v31, %v8322_v57  ;;  %8675 = vmatprep.mubr.msk.f32.mxu1 %vm521_vm3, %v11322_v16  ;;  %v13437_v31 = vld [vmem:[#allocation62_spill] sm:$0xff] }
 0x39c   : > { %v3959_v58 = vpop.f32.mrf.mxu1  ;;  %v4729_v32 = vpop.f32.mrf.mxu0 }
 0x39d   : > { %v11967_v53 = vadd.f32 %v4247_v51, %v3959_v58  ;;  %v13438_v51 = vld [vmem:[#allocation65_spill] sm:$0xff] }
 0x39e   : > { %v8377_v25 = vpop.f32.mrf.mxu1  ;;  %8676 = vmatmul.mubr.msk.f32.vlgmr.msra.gmra.mxu1 %vm521_vm3, %v11339_v5  ;;  %v8430_v37 = vpop.f32.mrf.mxu0 }
 0x39f   : > { %v4622_v34 = vadd.f32 %v8377_v25, %v11785_v61  ;;  %8678 = vmatprep.mubr.msk.f32.mxu1 %vm521_vm3, %v11381_v18 }
 0x3a0   : > { %v4462_v14 = vpop.f32.mrf.mxu1  ;;  %v4739_v36 = vpop.f32.mrf.mxu0 }
 0x3a1   : > { %v4621_v15 = vadd.f32 %v4462_v14, %v11793_v0  ;;  %v11975_v54 = vadd.f32 %v8427_v33, %v4622_v34  ;;  %v13440_v34 = vld [vmem:[#allocation15_spill] sm:$0xff] }
 0x3a2   : > { %v8380_v16 = vpop.f32.mrf.mxu1  ;;  %8679 = vmatmul.mubr.msk.f32.gmra.mxu1 %vm521_vm3, %v11392_v28  ;;  %v8433_v17 = vpop.f32.mrf.mxu0 }
 0x3a3   : > { %v4624_v19 = vadd.f32 %v8380_v16, %v11799_v6  ;;  %8681 = vmatprep.mubr.msk.f32.mxu1 %vm521_vm3, %v11398_v12  ;;  %v11982_v5 = vadd.f32 %v4729_v32, %v4621_v15  ;;  %v13439_v32 = vld [vmem:[#allocation17_spill] sm:$0xff] }
 0x3a4   : > { %v4472_v61 = vpop.f32.mrf.mxu1  ;;  %v4749_v18 = vpop.f32.mrf.mxu0 }
 0x3a5   : > { %v4623_v45 = vadd.f32 %v4472_v61, %v11805_v21  ;;  %v11985_v44 = vadd.f32 %v8430_v37, %v4624_v19 }
 0x3a6   : > { %v8383_v0 = vpop.f32.mrf.mxu1  ;;  %8682 = vmatmul.mubr.msk.f32.gmra.mxu1 %vm521_vm3, %v11409_v20  ;;  %v8436_v22 = vpop.f32.mrf.mxu0 }
 0x3a7   : > { %v4626_v28 = vadd.f32 %v8383_v0, %v11811_v27  ;;  %8684 = vmatprep.mubr.msk.f32.mxu1 %vm521_vm3, %v11415_v46  ;;  %v11992_v6 = vadd.f32 %v4739_v36, %v4623_v45 }
 0x3a8   : > { %v4482_v12 = vpop.f32.mrf.mxu1  ;;  %v4759_v41 = vpop.f32.mrf.mxu0 }
 0x3a9   : > { %v4625_v60 = vadd.f32 %v4482_v12, %v11817_v39  ;;  %v11995_v8 = vadd.f32 %v8433_v17, %v4626_v28  ;;  %v13441_v17 = vld [vmem:[#allocation43_spill] sm:$0xff]  ;;  %v13443_v12 = vld [vmem:[#allocation13_spill] sm:$0xff] }
 0x3aa   : > { %v8386_v21 = vpop.f32.mrf.mxu1  ;;  %8685 = vmatmul.mubr.msk.f32.gmra.mxu1 %vm521_vm3, %v13437_v31  ;;  %v8439_v24 = vpop.f32.mrf.mxu0 }
 0x3ab   : > { %v4628_v20 = vadd.f32 %v8386_v21, %v11823_v30  ;;  %8687 = vmatprep.mubr.msk.f32.mxu1 %vm521_vm3, %v13438_v51  ;;  %v12002_v27 = vadd.f32 %v4749_v18, %v4625_v60  ;;  %v13442_v18 = vld [vmem:[#allocation46_spill] sm:$0xff]  ;;  %v13444_v21 = vld [vmem:[#allocation21_spill] sm:$0xff] }
 0x3ac   : > { %v4492_v46 = vpop.f32.mrf.mxu1  ;;  %v4769_v57 = vpop.f32.mrf.mxu0 }
 0x3ad   : > { %v4627_v33 = vadd.f32 %v4492_v46, %v11829_v9  ;;  %v12005_v58 = vadd.f32 %v8436_v22, %v4628_v20  ;;  %v13445_v46 = vld [vmem:[#allocation64_spill] sm:$0xff] }
 0x3ae   : > { %v8389_v39 = vpop.f32.mrf.mxu1  ;;  %8688 = vmatmul.mubr.msk.f32.gmra.mxu1 %vm521_vm3, %v13439_v32  ;;  %v8442_v25 = vpop.f32.mrf.mxu0 }
 0x3af   : > { %v4630_v37 = vadd.f32 %v8389_v39, %v11835_v35  ;;  %8690 = vmatprep.mubr.msk.f32.mxu1 %vm521_vm3, %v13440_v34  ;;  %v12012_v30 = vadd.f32 %v4759_v41, %v4627_v33  ;;  %v13446_v39 = vld [vmem:[#allocation67_spill] sm:$0xff] }
 0x3b0   : > { %v4502_v14 = vpop.f32.mrf.mxu1  ;;  %v4779_v36 = vpop.f32.mrf.mxu0 }
 0x3b1   : > { %v4629_v15 = vadd.f32 %v4502_v14, %v11841_v11  ;;  %v12015_v16 = vadd.f32 %v8439_v24, %v4630_v37 }
 0x3b2   : > { %v8392_v9 = vpop.f32.mrf.mxu1  ;;  %8691 = vmatmul.mubr.msk.f32.gmra.mxu1 %vm521_vm3, %v13441_v17  ;;  %v8445_v19 = vpop.f32.mrf.mxu0 }
 0x3b3   : > { %v4632_v61 = vadd.f32 %v8392_v9, %v11847_v23  ;;  %8693 = vmatprep.mubr.msk.f32.mxu1 %vm521_vm3, %v13442_v18  ;;  %v12022_v35 = vadd.f32 %v4769_v57, %v4629_v15  ;;  %v13447_v15 = vld [vmem:[#allocation20_spill] sm:$0xff]  ;;  %v13448_v18 = vld [vmem:[#allocation18_spill] sm:$0xff] }
 0x3b4   : > { %v4512_v45 = vpop.f32.mrf.mxu1  ;;  %v4789_v0 = vpop.f32.mrf.mxu0 }
 0x3b5   : > { %v4631_v22 = vadd.f32 %v4512_v45, %v11853_v62  ;;  %v12025_v28 = vadd.f32 %v8442_v25, %v4632_v61 }
 0x3b6   : > { %v8395_v11 = vpop.f32.mrf.mxu1  ;;  %8694 = vmatmul.mubr.msk.f32.gmra.mxu1 %vm521_vm3, %v13443_v12  ;;  %v8448_v41 = vpop.f32.mrf.mxu0 }
 0x3b7   : > { %v4634_v60 = vadd.f32 %v8395_v11, %v11859_v2  ;;  %8696 = vmatprep.mubr.msk.f32.mxu1 %vm521_vm3, %v13444_v21  ;;  %v12032_v23 = vadd.f32 %v4779_v36, %v4631_v22 }
 0x3b8   : > { %v4522_v31 = vpop.f32.mrf.mxu1  ;;  %v4799_v24 = vpop.f32.mrf.mxu0 }
 0x3b9   : > { %v4633_v20 = vadd.f32 %v4522_v31, %v11865_v13  ;;  %v12035_v51 = vadd.f32 %v8445_v19, %v4634_v60  ;;  %v13450_v60 = vld [vmem:[#allocation45_spill] sm:$0xff] }
 0x3ba   : > { %v8398_v62 = vpop.f32.mrf.mxu1  ;;  %8697 = vmatmul.mubr.msk.f32.gmra.mxu1 %vm521_vm3, %v13445_v46  ;;  %v8451_v57 = vpop.f32.mrf.mxu0 }
 0x3bb   : > { %v4636_v33 = vadd.f32 %v8398_v62, %v11871_v59  ;;  %8699 = vmatprep.mubr.msk.f32.mxu1 %vm521_vm3, %v13446_v39  ;;  %v12042_v2 = vadd.f32 %v4789_v0, %v4633_v20  ;;  %v13449_v0 = vld [vmem:[#allocation48_spill] sm:$0xff] }
 0x3bc   : > { %v4532_v32 = vpop.f32.mrf.mxu1  ;;  %v4809_v25 = vpop.f32.mrf.mxu0 }
 0x3bd   : > { %v4635_v37 = vadd.f32 %v4532_v32, %v11877_v63  ;;  %v12045_v34 = vadd.f32 %v8448_v41, %v4636_v33  ;;  %v13452_v33 = vld [vmem:[#allocation25_spill] sm:$0xff] }
 0x3be   : > { %v8401_v13 = vpop.f32.mrf.mxu1  ;;  %8700 = vmatmul.mubr.msk.f32.gmra.mxu1 %vm521_vm3, %v11511_v10  ;;  %v8454_v14 = vpop.f32.mrf.mxu0 }
 0x3bf   : > { %v4638_v36 = vadd.f32 %v8401_v13, %v11883_v38  ;;  %8702 = vmatprep.mubr.msk.f32.mxu1 %vm521_vm3, %v13447_v15  ;;  %v12052_v59 = vadd.f32 %v4799_v24, %v4635_v37  ;;  %v13451_v24 = vld [vmem:[#allocation19_spill] sm:$0xff]  ;;  %v13454_v15 = vld [vmem:[#allocation69_spill] sm:$0xff] }
 0x3c0   : > { %v4542_v9 = vpop.f32.mrf.mxu1  ;;  %v4819_v17 = vpop.f32.mrf.mxu0 }
 0x3c1   : > { %v4637_v19 = vadd.f32 %v4542_v9, %v11889_v4  ;;  %v12055_v61 = vadd.f32 %v8451_v57, %v4638_v36 }
 0x3c2   : > { %v8404_v63 = vpop.f32.mrf.mxu1  ;;  %8703 = vmatmul.mubr.msk.f32.gmra.mxu1 %vm521_vm3, %v13448_v18  ;;  %v8457_v45 = vpop.f32.mrf.mxu0 }
 0x3c3   : > { %v4640_v10 = vadd.f32 %v8404_v63, %v11895_v26  ;;  %8705 = vmatprep.mubr.msk.f32.mxu1 %vm521_vm3, %v13449_v0  ;;  %v12062_v38 = vadd.f32 %v4809_v25, %v4637_v19  ;;  %v13453_v25 = vld [vmem:[#allocation66_spill] sm:$0xff]  ;;  %v13455_v19 = vld [vmem:[#allocation24_spill] sm:$0xff] }
 0x3c4   : > { %v4552_v22 = vpop.f32.mrf.mxu1  ;;  %v4829_v11 = vpop.f32.mrf.mxu0  ;;  %v13456_v0 = vld [vmem:[#allocation22_spill] sm:$0xff] }
 0x3c5   : > { %v4639_v12 = vadd.f32 %v4552_v22, %v11901_v40  ;;  %v12065_v41 = vadd.f32 %v8454_v14, %v4640_v10 }
 0x3c6   : > { %v8407_v4 = vpop.f32.mrf.mxu1  ;;  %8706 = vmatmul.mubr.msk.f32.gmra.mxu1 %vm521_vm3, %v13450_v60  ;;  %v8460_v21 = vpop.f32.mrf.mxu0 }
 0x3c7   : > { %v4642_v31 = vadd.f32 %v8407_v4, %v11907_v42  ;;  %8708 = vmatprep.mubr.msk.f32.mxu1 %vm521_vm3, %v13451_v24  ;;  %v12072_v26 = vadd.f32 %v4819_v17, %v4639_v12 }
 0x3c8   : > { %v4562_v20 = vpop.f32.mrf.mxu1  ;;  %v4839_v62 = vpop.f32.mrf.mxu0 }
 0x3c9   : > { %v4641_v46 = vadd.f32 %v4562_v20, %v11913_v1  ;;  %v12075_v57 = vadd.f32 %v8457_v45, %v4642_v31 }
 0x3ca   : > { %v8410_v40 = vpop.f32.mrf.mxu1  ;;  %8709 = vmatmul.mubr.msk.f32.gmra.mxu1 %vm521_vm3, %v13452_v33  ;;  %v8463_v39 = vpop.f32.mrf.mxu0 }
 0x3cb   : > { %v4644_v32 = vadd.f32 %v8410_v40, %v11919_v7  ;;  %8711 = vmatprep.mubr.msk.f32.mxu1 %vm521_vm3, %v13453_v25  ;;  %v12082_v42 = vadd.f32 %v4829_v11, %v4641_v46 }
 0x3cc   : > { %v4572_v37 = vpop.f32.mrf.mxu1  ;;  %v4849_v13 = vpop.f32.mrf.mxu0 }
 0x3cd   : > { %v4643_v14 = vadd.f32 %v4572_v37, %v11925_v43  ;;  %v12085_v36 = vadd.f32 %v8460_v21, %v4644_v32 }
 0x3ce   : > { %v8413_v1 = vpop.f32.mrf.mxu1  ;;  %8712 = vmatmul.mubr.msk.f32.gmra.mxu1 %vm521_vm3, %v13454_v15  ;;  %v8466_v9 = vpop.f32.mrf.mxu0 }
 0x3cf   : > { %v4646_v17 = vadd.f32 %v8413_v1, %v11931_v47  ;;  %8714 = vmatprep.mubr.msk.f32.mxu1 %vm521_vm3, %v13455_v19  ;;  %v12092_v7 = vadd.f32 %v4839_v62, %v4643_v14 }
 0x3d0   : > { %v4582_v63 = vpop.f32.mrf.mxu1  ;;  %v4859_v18 = vpop.f32.mrf.mxu0 }
 0x3d1   : > { %v4645_v45 = vadd.f32 %v4582_v63, %v11937_v48  ;;  %v12095_v10 = vadd.f32 %v8463_v39, %v4646_v17 }
 0x3d2   : > { %v8416_v43 = vpop.f32.mrf.mxu1  ;;  %8715 = vmatmul.mubr.msk.f32.gmra.mxu1 %vm521_vm3, %v13456_v0  ;;  %v8469_v22 = vpop.f32.mrf.mxu0 }
 0x3d3   : > { %v4648_v11 = vadd.f32 %v8416_v43, %v11943_v49  ;;  %8717 = vmatprep.mubr.msk.f32.mxu1 %vm521_vm3, %v11749_v29  ;;  %v12102_v47 = vadd.f32 %v4849_v13, %v4645_v45 }
 0x3d4   : > { %v4592_v12 = vpop.f32.mrf.mxu1  ;;  %v4869_v4 = vpop.f32.mrf.mxu0 }
 0x3d5   : > { %v4647_v60 = vadd.f32 %v4592_v12, %v11949_v50  ;;  %v12105_v21 = vadd.f32 %v8466_v9, %v4648_v11 }
 0x3d6   : > { %v8419_v48 = vpop.f32.mrf.mxu1  ;;  %8718 = vmatmul.mubr.msk.f32.gmra.mxu1 %vm521_vm3, %v11757_v52  ;;  %v8472_v31 = vpop.f32.mrf.mxu0 }
 0x3d7   : > { %v4650_v24 = vadd.f32 %v8419_v48, %v11955_v55  ;;  %8720 = vmatprep.mubr.msk.f32.mxu1 %vm521_vm3, %v13455_v19  ;;  %v12112_v49 = vadd.f32 %v4859_v18, %v4647_v60 }
 0x3d8   : > { %v4602_v29 = vpop.f32.mrf.mxu1  ;;  %v4879_v20 = vpop.f32.mrf.mxu0 }
 0x3d9   : > { %v4649_v62 = vadd.f32 %v4602_v29, %v11959_v3  ;;  %v12115_v46 = vadd.f32 %v8469_v22, %v4650_v24 }
 0x3da   : > { %v8422_v50 = vpop.f32.mrf.mxu1  ;;  %8721 = vmatmul.mubr.msk.f32.gmra.mxu1 %vm521_vm3, %v13456_v0  ;;  %v8527_v40 = vpop.f32.mrf.mxu0 }
 0x3db   : > { %v4652_v52 = vadd.f32 %v8422_v50, %v11963_v56  ;;  %v12120_v33 = vadd.f32 %v4869_v4, %v4649_v62 }
 0x3dc   : > { %v4612_v55 = vpop.f32.mrf.mxu1  ;;  %v12122_v39 = vpop.f32.mrf.mxu0 }
 0x3dd   : > { %v4651_v32 = vadd.f32 %v4612_v55, %v11967_v53  ;;  %v12125_v25 = vadd.f32 %v8472_v31, %v4652_v52 }
 0x3de   : > { %v8477_v37 = vpop.f32.mrf.mxu1  ;;  %v8530_v3 = vpop.f32.mrf.mxu0 }
 0x3df   : > { %v5161_v13 = vadd.f32 %v8477_v37, %v11975_v54  ;;  %v12128_v14 = vadd.f32 %v4879_v20, %v4651_v32 }
 0x3e0   : > { %v5001_v1 = vpop.f32.mrf.mxu1  ;;  %v12130_v15 = vpop.f32.mrf.mxu0 }
 0x3e1   : > { %v12133_v56 = vadd.f32 %v5001_v1, %v11982_v5  ;;  %v12135_v9 = vadd.f32 %v8527_v40, %v5161_v13 }
 0x3e2   : > { %v8480_v17 = vpop.f32.mrf.mxu1  ;;  %v8533_v19 = vpop.f32.mrf.mxu0 }
 0x3e3   : > { %v5163_v53 = vadd.f32 %v8480_v17, %v11985_v44 }
 0x3e4   : > { %v5011_v63 = vpop.f32.mrf.mxu1  ;;  %v12138_v18 = vpop.f32.mrf.mxu0 }
 0x3e5   : > { %v12141_v45 = vadd.f32 %v5011_v63, %v11992_v6  ;;  %v12143_v54 = vadd.f32 %v8530_v3, %v5163_v53 }
 0x3e6   : > { %v8483_v43 = vpop.f32.mrf.mxu1  ;;  %v8536_v0 = vpop.f32.mrf.mxu0 }
 0x3e7   : > { %v5165_v22 = vadd.f32 %v8483_v43, %v11995_v8 }
 0x3e8   : > { %v5021_v5 = vpop.f32.mrf.mxu1  ;;  %v12146_v11 = vpop.f32.mrf.mxu0 }
 0x3e9   : > { %v12149_v12 = vadd.f32 %v5021_v5, %v12002_v27  ;;  %v12151_v4 = vadd.f32 %v8533_v19, %v5165_v22 }
 0x3ea   : > { %v8486_v44 = vpop.f32.mrf.mxu1  ;;  %v8539_v60 = vpop.f32.mrf.mxu0 }
 0x3eb   : > { %v5167_v48 = vadd.f32 %v8486_v44, %v12005_v58 }
 0x3ec   : > { %v5031_v6 = vpop.f32.mrf.mxu1  ;;  %v12154_v31 = vpop.f32.mrf.mxu0 }
 0x3ed   : > { %v12157_v24 = vadd.f32 %v5031_v6, %v12012_v30  ;;  %v12159_v29 = vadd.f32 %v8536_v0, %v5167_v48 }
 0x3ee   : > { %v8489_v8 = vpop.f32.mrf.mxu1  ;;  %v8542_v20 = vpop.f32.mrf.mxu0 }
 0x3ef   : > { %v5169_v62 = vadd.f32 %v8489_v8, %v12015_v16 }
 0x3f0   : > { %v5041_v27 = vpop.f32.mrf.mxu1  ;;  %v12162_v50 = vpop.f32.mrf.mxu0 }
 0x3f1   : > { %v12165_v40 = vadd.f32 %v5041_v27, %v12022_v35  ;;  %v12167_v52 = vadd.f32 %v8539_v60, %v5169_v62 }
 0x3f2   : > { %v8492_v58 = vpop.f32.mrf.mxu1  ;;  %v8545_v55 = vpop.f32.mrf.mxu0 }
 0x3f3   : > { %v5171_v32 = vadd.f32 %v8492_v58, %v12025_v28 }
 0x3f4   : > { %v5051_v30 = vpop.f32.mrf.mxu1  ;;  %v12170_v37 = vpop.f32.mrf.mxu0 }
 0x3f5   : > { %v12173_v3 = vadd.f32 %v5051_v30, %v12032_v23  ;;  %v12175_v13 = vadd.f32 %v8542_v20, %v5171_v32 }
 0x3f6   : > { %v8495_v16 = vpop.f32.mrf.mxu1  ;;  %v8548_v1 = vpop.f32.mrf.mxu0 }
 0x3f7   : > { %v5173_v17 = vadd.f32 %v8495_v16, %v12035_v51 }
 0x3f8   : > { %v5061_v35 = vpop.f32.mrf.mxu1  ;;  %v12178_v19 = vpop.f32.mrf.mxu0 }
 0x3f9   : > { %v12181_v53 = vadd.f32 %v5061_v35, %v12042_v2  ;;  %v12183_v63 = vadd.f32 %v8545_v55, %v5173_v17 }
 0x3fa   : > { %v8498_v28 = vpop.f32.mrf.mxu1  ;;  %v8551_v43 = vpop.f32.mrf.mxu0 }
 0x3fb   : > { %v5175_v0 = vadd.f32 %v8498_v28, %v12045_v34 }
 0x3fc   : > { %v5071_v23 = vpop.f32.mrf.mxu1  ;;  %v12186_v22 = vpop.f32.mrf.mxu0 }
 0x3fd   : > { %v12189_v5 = vadd.f32 %v5071_v23, %v12052_v59  ;;  %v12191_v44 = vadd.f32 %v8548_v1, %v5175_v0 }
 0x3fe   : > { %v8501_v51 = vpop.f32.mrf.mxu1  ;;  %v8554_v60 = vpop.f32.mrf.mxu0 }
 0x3ff   : > { %v5177_v48 = vadd.f32 %v8501_v51, %v12055_v61 }
 0x400   : > { %v5081_v2 = vpop.f32.mrf.mxu1  ;;  %v12194_v6 = vpop.f32.mrf.mxu0 }
 0x401   : > { %13457 = vst [vmem:[#allocation47_spill] sm:$0xff] %v12194_v6  ;;  %v12197_v8 = vadd.f32 %v5081_v2, %v12062_v38  ;;  %v12199_v20 = vadd.f32 %v8551_v43, %v5177_v48 }
 0x402   : > { %v8504_v34 = vpop.f32.mrf.mxu1  ;;  %v8557_v62 = vpop.f32.mrf.mxu0 }
 0x403   : > { %v5179_v27 = vadd.f32 %v8504_v34, %v12065_v41 }
 0x404   : > { %v5091_v59 = vpop.f32.mrf.mxu1  ;;  %v12202_v58 = vpop.f32.mrf.mxu0 }
 0x405   : > { %13458 = vst [vmem:[#allocation50_spill] sm:$0xff] %v12202_v58  ;;  %v12205_v55 = vadd.f32 %v5091_v59, %v12072_v26  ;;  %v12207_v32 = vadd.f32 %v8554_v60, %v5179_v27 }
 0x406   : > { %v8507_v61 = vpop.f32.mrf.mxu1  ;;  %v8560_v30 = vpop.f32.mrf.mxu0 }
 0x407   : > { %v5181_v16 = vadd.f32 %v8507_v61, %v12075_v57 }
 0x408   : > { %v5101_v38 = vpop.f32.mrf.mxu1  ;;  %v12210_v1 = vpop.f32.mrf.mxu0 }
 0x409   : > { %13459 = vst [vmem:[#allocation23_spill] sm:$0xff] %v12210_v1  ;;  %v12213_v17 = vadd.f32 %v5101_v38, %v12082_v42  ;;  %v12215_v35 = vadd.f32 %v8557_v62, %v5181_v16 }
 0x40a   : > { %v8510_v41 = vpop.f32.mrf.mxu1  ;;  %v8563_v28 = vpop.f32.mrf.mxu0 }
 0x40b   : > { %13460 = vst [vmem:[#allocation29_spill] sm:$0xff] %v12213_v17  ;;  %v5183_v43 = vadd.f32 %v8510_v41, %v12085_v36 }
 0x40c   : > { %v5111_v26 = vpop.f32.mrf.mxu1  ;;  %v12218_v0 = vpop.f32.mrf.mxu0 }
 0x40d   : > { %13461 = vst [vmem:[#allocation68_spill] sm:$0xff] %v12218_v0  ;;  %v12221_v23 = vadd.f32 %v5111_v26, %v12092_v7  ;;  %v12223_v51 = vadd.f32 %v8560_v30, %v5183_v43 }
 0x40e   : > { %v8513_v57 = vpop.f32.mrf.mxu1  ;;  %v8566_v60 = vpop.f32.mrf.mxu0 }
 0x40f   : > { %13462 = vst [vmem:[#allocation71_spill] sm:$0xff] %v12221_v23  ;;  %v5185_v48 = vadd.f32 %v8513_v57, %v12095_v10 }
 0x410   : > { %v5121_v42 = vpop.f32.mrf.mxu1  ;;  %v12226_v2 = vpop.f32.mrf.mxu0 }
 0x411   : > { %13463 = vst [vmem:[#allocation52_spill] sm:$0xff] %v12226_v2  ;;  %v12229_v34 = vadd.f32 %v5121_v42, %v12102_v47  ;;  %v12231_v62 = vadd.f32 %v8563_v28, %v5185_v48 }
 0x412   : > { %v8516_v36 = vpop.f32.mrf.mxu1  ;;  %v8569_v27 = vpop.f32.mrf.mxu0 }
 0x413   : > { %13464 = vst [vmem:[#allocation49_spill] sm:$0xff] %v12229_v34  ;;  %v5187_v59 = vadd.f32 %v8516_v36, %v12105_v21 }
 0x414   : > { %v5131_v7 = vpop.f32.mrf.mxu1  ;;  %v12234_v61 = vpop.f32.mrf.mxu0 }
 0x415   : > { %13465 = vst [vmem:[#allocation27_spill] sm:$0xff] %v12234_v61  ;;  %v12237_v30 = vadd.f32 %v5131_v7, %v12112_v49  ;;  %v12239_v16 = vadd.f32 %v8566_v60, %v5187_v59 }
 0x416   : > { %v8519_v10 = vpop.f32.mrf.mxu1  ;;  %v8572_v38 = vpop.f32.mrf.mxu0 }
 0x417   : > { %13466 = vst [vmem:[#allocation70_spill] sm:$0xff] %v12237_v30  ;;  %v5189_v41 = vadd.f32 %v8519_v10, %v12115_v46 }
 0x418   : > { %v5141_v47 = vpop.f32.mrf.mxu1  ;;  %v12247_v26 = vpop.f32.mrf.mxu0 }
 0x419   : > { %v12243_v28 = vadd.f32 %v5141_v47, %v12120_v33  ;;  %v12245_v43 = vadd.f32 %v8569_v27, %v5189_v41  ;;  %13468 = vst [vmem:[#allocation54_spill] sm:$0xff] %v12247_v26 }
 0x41a   : > { %v8522_v21 = vpop.f32.mrf.mxu1  ;;  %v12255_v42 = vpop.f32.mrf.mxu0 }
 0x41b   : > { %13467 = vst [vmem:[#allocation51_spill] sm:$0xff] %v12243_v28  ;;  %v5191_v57 = vadd.f32 %v8522_v21, %v12125_v25 }
 0x41c   : > { %v5151_v48 = vpop.f32.mrf.mxu1  ;;  %v12260_v27 = vpop.f32.mrf.mxu0 }
 0x41d   : > { %v12251_v49 = vadd.f32 %v5151_v48, %v12128_v14  ;;  %v12253_v60 = vadd.f32 %v8572_v38, %v5191_v57 }
 0x41e   : > { %v8577_v46 = vpop.f32.mrf.mxu1  ;;  %v12265_v10 = vpop.f32.mrf.mxu0 }
 0x41f   : > { %13469 = vst [vmem:[#allocation53_spill] sm:$0xff] %v12251_v49  ;;  %v12258_v36 = vadd.f32 %v8577_v46, %v12135_v9 }
 0x420   : > { %v5534_v33 = vpop.f32.mrf.mxu1  ;;  %v12272_v47 = vpop.f32.mrf.mxu0 }
 0x422   : > { %v8580_v59 = vpop.f32.mrf.mxu1  ;;  %v12279_v48 = vpop.f32.mrf.mxu0 }
 0x423   : > { %v12263_v7 = vadd.f32 %v8580_v59, %v12143_v54 }
 0x424   : > { %v5544_v25 = vpop.f32.mrf.mxu1 }
 0x426   : > { %v8583_v14 = vpop.f32.mrf.mxu1 }
 0x427   : > { %v12268_v38 = vadd.f32 %v8583_v14, %v12151_v4  ;;  %v12286_v4 = vpop.f32.mrf.mxu0 }
 0x428   : > { %v12270_v41 = vpop.f32.mrf.mxu1 }
 0x42a   : > { %v8586_v9 = vpop.f32.mrf.mxu1 }
 0x42b   : > { %v12275_v21 = vadd.f32 %v8586_v9, %v12159_v29  ;;  %v12293_v29 = vpop.f32.mrf.mxu0 }
 0x42c   : > { %v12277_v57 = vpop.f32.mrf.mxu1 }
 0x42e   : > { %v8589_v54 = vpop.f32.mrf.mxu1 }
 0x42f   : > { %v12282_v46 = vadd.f32 %v8589_v54, %v12167_v52  ;;  %v12300_v52 = vpop.f32.mrf.mxu0 }
 0x430   : > { %v12284_v59 = vpop.f32.mrf.mxu1 }
 0x432   : > { %v8592_v14 = vpop.f32.mrf.mxu1 }
 0x433   : > { %v12289_v26 = vadd.f32 %v8592_v14, %v12175_v13  ;;  %v12307_v13 = vpop.f32.mrf.mxu0 }
 0x434   : > { %v12291_v49 = vpop.f32.mrf.mxu1 }
 0x436   : > { %v8595_v9 = vpop.f32.mrf.mxu1 }
 0x437   : > { %v12296_v61 = vadd.f32 %v8595_v9, %v12183_v63  ;;  %v12314_v63 = vpop.f32.mrf.mxu0 }
 0x438   : > { %v12298_v28 = vpop.f32.mrf.mxu1 }
 0x43a   : > { %v8598_v54 = vpop.f32.mrf.mxu1 }
 0x43b   : > { %v12303_v2 = vadd.f32 %v8598_v54, %v12191_v44  ;;  %v12321_v44 = vpop.f32.mrf.mxu0 }
 0x43c   : > { %v12305_v30 = vpop.f32.mrf.mxu1 }
 0x43e   : > { %v8601_v14 = vpop.f32.mrf.mxu1 }
 0x43f   : > { %v12310_v0 = vadd.f32 %v8601_v14, %v12199_v20  ;;  %v12328_v20 = vpop.f32.mrf.mxu0 }
 0x440   : > { %v12312_v34 = vpop.f32.mrf.mxu1 }
 0x441   : > { %13470 = vst [vmem:[#allocation28_spill] sm:$0xff] %v12310_v0 }
 0x442   : > { %v8604_v9 = vpop.f32.mrf.mxu1 }
 0x443   : > { %v12317_v1 = vadd.f32 %v8604_v9, %v12207_v32  ;;  %v12335_v32 = vpop.f32.mrf.mxu0 }
 0x444   : > { %v12319_v23 = vpop.f32.mrf.mxu1 }
 0x445   : > { %13471 = vst [vmem:[#allocation26_spill] sm:$0xff] %v12317_v1  ;;  %13472 = vst [vmem:[#allocation35_spill] sm:$0xff] %v12319_v23 }
 0x446   : > { %v8607_v54 = vpop.f32.mrf.mxu1 }
 0x447   : > { %v12324_v58 = vadd.f32 %v8607_v54, %v12215_v35  ;;  %v12342_v35 = vpop.f32.mrf.mxu0 }
 0x448   : > { %v12326_v17 = vpop.f32.mrf.mxu1 }
 0x449   : > { %13473 = vst [vmem:[#allocation31_spill] sm:$0xff] %v12324_v58  ;;  %13474 = vst [vmem:[#allocation55_spill] sm:$0xff] %v12326_v17 }
 0x44a   : > { %v8610_v14 = vpop.f32.mrf.mxu1 }
 0x44b   : > { %v12331_v0 = vadd.f32 %v8610_v14, %v12223_v51  ;;  %v12349_v51 = vpop.f32.mrf.mxu0 }
 0x44c   : > { %v12333_v6 = vpop.f32.mrf.mxu1 }
 0x44d   : > { %13475 = vst [vmem:[#allocation3_spill] sm:$0xff] %v12331_v0  ;;  %13476 = vst [vmem:[#allocation2_spill] sm:$0xff] %v12333_v6 }
 0x44e   : > { %v8613_v9 = vpop.f32.mrf.mxu1 }
 0x44f   : > { %v12338_v1 = vadd.f32 %v8613_v9, %v12231_v62  ;;  %v5431_v62 = vadd.f32 %v12122_v39, %v12133_v56  ;;  %v12358_v9 = vpop.f32.mrf.mxu0 }
 0x450   : > { %v12340_v23 = vpop.f32.mrf.mxu1 }
 0x451   : > { %13477 = vst [vmem:[#allocation38_spill] sm:$0xff] %v12338_v1  ;;  %13478 = vst [vmem:[#allocation30_spill] sm:$0xff] %v12340_v23  ;;  %v5693_v23 = vadd.f32 %v5534_v33, %v5431_v62  ;;  %v5435_v33 = vadd.f32 %v12138_v18, %v12149_v12  ;;  %v5437_v18 = vadd.f32 %v12146_v11, %v12157_v24 }
 0x452   : > { %v8616_v54 = vpop.f32.mrf.mxu1 }
 0x453   : > { %v12345_v58 = vadd.f32 %v8616_v54, %v12239_v16  ;;  %v5955_v39 = vadd.f32 %v12260_v27, %v5693_v23 }
 0x454   : > { %v12347_v17 = vpop.f32.mrf.mxu1 }
 0x455   : > { %13479 = vst [vmem:[#allocation56_spill] sm:$0xff] %v12345_v58  ;;  %13480 = vst [vmem:[#allocation59_spill] sm:$0xff] %v12347_v17  ;;  %v5433_v58 = vadd.f32 %v12130_v15, %v12141_v45  ;;  %v12367_v17 = vpop.f32.mrf.mxu0  ;;  %v5697_v45 = vadd.f32 %v12270_v41, %v5435_v33 }
 0x456   : > { %v8619_v14 = vpop.f32.mrf.mxu1 }
 0x457   : > { %v12352_v0 = vadd.f32 %v8619_v14, %v12245_v43  ;;  %v5695_v14 = vadd.f32 %v5544_v25, %v5433_v58  ;;  %v12378_v62 = vpop.f32.mrf.mxu0  ;;  %v5959_v11 = vadd.f32 %v12286_v4, %v5697_v45  ;;  %v5962_v4 = vadd.f32 %v12293_v29, %v12275_v21 }
 0x458   : > { %v12354_v6 = vpop.f32.mrf.mxu1 }
 0x459   : > { %13481 = vst [vmem:[#allocation6_spill] sm:$0xff] %v12352_v0  ;;  %v5956_v0 = vadd.f32 %v12255_v42, %v12258_v36  ;;  %v5958_v42 = vadd.f32 %v12265_v10, %v12263_v7  ;;  %v5957_v23 = vadd.f32 %v12272_v47, %v5695_v14  ;;  %v12394_v25 = vpop.f32.mrf.mxu0  ;;  %v5960_v10 = vadd.f32 %v12279_v48, %v12268_v38 }
 0x45a   : > { %v8622_v1 = vpop.f32.mrf.mxu1  ;;  %v5439_v14 = vadd.f32 %v12154_v31, %v12165_v40 }
 0x45b   : > { %v12361_v16 = vadd.f32 %v8622_v1, %v12253_v60 }
 0x45c   : > { %v12363_v54 = vpop.f32.mrf.mxu1  ;;  %v5701_v38 = vadd.f32 %v12284_v59, %v5439_v14 }
 0x45e   : > { %v8677_v43 = vpop.f32.mrf.mxu1 }
 0x45f   : > { %v12374_v1 = vadd.f32 %v8677_v43, %v5956_v0 }
 0x460   : > { %v6058_v56 = vpop.f32.mrf.mxu1 }
 0x461   : > { %v12376_v60 = vadd.f32 %v6058_v56, %v5955_v39  ;;  %v6250_v12 = vsel %vm521_vm3, %v12374_v1, 0.0  ;;  %v5699_v39 = vadd.f32 %v12277_v57, %v5437_v18  ;;  %v12410_v57 = vpop.f32.mrf.mxu0 }
 0x462   : > { %v8680_v15 = vpop.f32.mrf.mxu1 }
 0x463   : > { %v6249_v58 = vsel %vm521_vm3, %v12376_v60, 0.0  ;;  %v12390_v0 = vadd.f32 %v8680_v15, %v5958_v42  ;;  %v5961_v31 = vadd.f32 %v12300_v52, %v5699_v39  ;;  %v12426_v59 = vpop.f32.mrf.mxu0  ;;  %v5964_v52 = vadd.f32 %v12307_v13, %v12282_v46 }
 0x464   : > { %v6068_v36 = vpop.f32.mrf.mxu1  ;;  %v6251_v41 = vadd.f32 %v6250_v12, %v6249_v58 }
 0x465   : > { %v12392_v27 = vadd.f32 %v6068_v36, %v5957_v23  ;;  %v6254_v56 = vsel %vm521_vm3, %v12390_v0, 0.0  ;;  %v5441_v23 = vadd.f32 %v12162_v50, %v12173_v3  ;;  %v5963_v50 = vadd.f32 %v12314_v63, %v5701_v38 }
 0x466   : > { %v8683_v43 = vpop.f32.mrf.mxu1  ;;  %v5966_v63 = vadd.f32 %v12321_v44, %v12289_v26 }
 0x467   : > { %v6252_v7 = vsel %vm521_vm3, %v12392_v27, 0.0  ;;  %v12406_v33 = vadd.f32 %v8683_v43, %v5960_v10  ;;  %v5703_v21 = vadd.f32 %v12291_v49, %v5441_v23  ;;  %v12442_v49 = vpop.f32.mrf.mxu0 }
 0x468   : > { %v6253_v24 = vadd.f32 %v6252_v7, %v6251_v41  ;;  %v6078_v47 = vpop.f32.mrf.mxu1  ;;  %v5443_v7 = vadd.f32 %v12170_v37, %v12181_v53 }
 0x469   : > { %v12408_v15 = vadd.f32 %v6078_v47, %v5959_v11  ;;  %v6258_v36 = vsel %vm521_vm3, %v12406_v33, 0.0  ;;  %v5965_v37 = vadd.f32 %v12328_v20, %v5703_v21  ;;  %v5968_v20 = vadd.f32 %v12335_v32, %v12296_v61 }
 0x46a   : > { %v6255_v58 = vadd.f32 %v6254_v56, %v6253_v24  ;;  %v8686_v42 = vpop.f32.mrf.mxu1  ;;  %v5705_v46 = vadd.f32 %v12298_v28, %v5443_v7  ;;  %v12458_v28 = vpop.f32.mrf.mxu0  ;;  %v5970_v32 = vadd.f32 %v12349_v51, %v12303_v2  ;;  %v13484_v51 = vld [vmem:[#allocation28_spill] sm:$0xff] }
 0x46b   : > { %v6256_v48 = vsel %vm521_vm3, %v12408_v15, 0.0  ;;  %v12422_v18 = vadd.f32 %v8686_v42, %v5962_v4 }
 0x46c   : > { %v6257_v40 = vadd.f32 %v6256_v48, %v6255_v58  ;;  %v6088_v45 = vpop.f32.mrf.mxu1  ;;  %v5445_v58 = vadd.f32 %v12178_v19, %v12189_v5  ;;  %v5967_v19 = vadd.f32 %v12342_v35, %v5705_v46 }
 0x46d   : > { %v12424_v12 = vadd.f32 %v6088_v45, %v5961_v31  ;;  %v6262_v10 = vsel %vm521_vm3, %v12422_v18, 0.0  ;;  %v5447_v45 = vadd.f32 %v12186_v22, %v12197_v8 }
 0x46e   : > { %v6259_v41 = vadd.f32 %v6258_v36, %v6257_v40  ;;  %v8689_v43 = vpop.f32.mrf.mxu1  ;;  %v5707_v26 = vadd.f32 %v12305_v30, %v5445_v58  ;;  %v5906_v30 = vpop.f32.mrf.mxu0 }
 0x46f   : > { %v6260_v29 = vsel %vm521_vm3, %v12424_v12, 0.0  ;;  %v12438_v11 = vadd.f32 %v8689_v43, %v5964_v52  ;;  %v13482_v52 = vld [vmem:[#allocation47_spill] sm:$0xff] }
 0x470   : > { %v6261_v3 = vadd.f32 %v6260_v29, %v6259_v41  ;;  %v6098_v39 = vpop.f32.mrf.mxu1  ;;  %v5709_v29 = vadd.f32 %v12312_v34, %v5447_v45  ;;  %v5969_v22 = vadd.f32 %v12358_v9, %v5707_v26  ;;  %v8663_v34 = vpop.f32.mrf.mxu0  ;;  %v5972_v9 = vadd.f32 %v12367_v17, %v13484_v51  ;;  %v13494_v51 = vld [vmem:[#allocation68_spill] sm:$0xff] }
 0x471   : > { %v12440_v24 = vadd.f32 %v6098_v39, %v5963_v50  ;;  %v6266_v42 = vsel %vm521_vm3, %v12438_v11, 0.0  ;;  %v5449_v50 = vadd.f32 %v13482_v52, %v12205_v55 }
 0x472   : > { %v6263_v47 = vadd.f32 %v6262_v10, %v6261_v3  ;;  %v8692_v14 = vpop.f32.mrf.mxu1  ;;  %v5971_v55 = vadd.f32 %v12378_v62, %v5709_v29  ;;  %v13488_v62 = vld [vmem:[#allocation26_spill] sm:$0xff] }
 0x473   : > { %v6264_v13 = vsel %vm521_vm3, %v12440_v24, 0.0  ;;  %v12454_v38 = vadd.f32 %v8692_v14, %v5966_v63  ;;  %v13483_v14 = vld [vmem:[#allocation35_spill] sm:$0xff] }
 0x474   : > { %v6265_v53 = vadd.f32 %v6264_v13, %v6263_v47  ;;  %v6108_v56 = vpop.f32.mrf.mxu1  ;;  %v5711_v46 = vadd.f32 %v13483_v14, %v5449_v50  ;;  %v13491_v50 = vld [vmem:[#allocation2_spill] sm:$0xff] }
 0x475   : > { %v12456_v48 = vadd.f32 %v6108_v56, %v5965_v37  ;;  %v6270_v23 = vsel %vm521_vm3, %v12454_v38, 0.0  ;;  %v13485_v37 = vld [vmem:[#allocation29_spill] sm:$0xff] }
 0x476   : > { %v6267_v4 = vadd.f32 %v6266_v42, %v6265_v53  ;;  %v8695_v31 = vpop.f32.mrf.mxu1  ;;  %v13486_v53 = vld [vmem:[#allocation50_spill] sm:$0xff] }
 0x477   : > { %v6268_v44 = vsel %vm521_vm3, %v12456_v48, 0.0  ;;  %v12470_v36 = vadd.f32 %v8695_v31, %v5968_v20  ;;  %v5451_v56 = vadd.f32 %v13486_v53, %v13485_v37  ;;  %v5916_v31 = vpop.f32.mrf.mxu0  ;;  %v13487_v20 = vld [vmem:[#allocation55_spill] sm:$0xff] }
 0x478   : > { %v6269_v5 = vadd.f32 %v6268_v44, %v6267_v4  ;;  %v6118_v40 = vpop.f32.mrf.mxu1 }
 0x479   : > { %v12472_v41 = vadd.f32 %v6118_v40, %v5967_v19  ;;  %v6274_v3 = vsel %vm521_vm3, %v12470_v36, 0.0  ;;  %v5713_v19 = vadd.f32 %v13487_v20, %v5451_v56  ;;  %v5973_v40 = vadd.f32 %v12410_v57, %v5711_v46  ;;  %v13492_v57 = vld [vmem:[#allocation31_spill] sm:$0xff] }
 0x47a   : > { %v6271_v43 = vadd.f32 %v6270_v23, %v6269_v5  ;;  %v8698_v21 = vpop.f32.mrf.mxu1  ;;  %v5974_v5 = vadd.f32 %v12394_v25, %v13488_v62  ;;  %v13497_v62 = vld [vmem:[#allocation70_spill] sm:$0xff] }
 0x47b   : > { %v6272_v61 = vsel %vm521_vm3, %v12472_v41, 0.0  ;;  %v12484_v39 = vadd.f32 %v8698_v21, %v5970_v32  ;;  %v13490_v21 = vld [vmem:[#allocation23_spill] sm:$0xff] }
 0x47c   : > { %v6273_v8 = vadd.f32 %v6272_v61, %v6271_v43  ;;  %v6128_v35 = vpop.f32.mrf.mxu1  ;;  %v13489_v43 = vld [vmem:[#allocation71_spill] sm:$0xff] }
 0x47d   : > { %v12486_v7 = vadd.f32 %v6128_v35, %v5969_v22  ;;  %v6278_v58 = vsel %vm521_vm3, %v12484_v39, 0.0  ;;  %v5453_v29 = vadd.f32 %v13490_v21, %v13489_v43 }
 0x47e   : > { %v6275_v10 = vadd.f32 %v6274_v3, %v6273_v8  ;;  %v8701_v47 = vpop.f32.mrf.mxu1  ;;  %v8666_v8 = vpop.f32.mrf.mxu0 }
 0x47f   : > { %v6276_v2 = vsel %vm521_vm3, %v12486_v7, 0.0  ;;  %v12498_v42 = vadd.f32 %v8701_v47, %v5972_v9  ;;  %v5715_v3 = vadd.f32 %v13491_v50, %v5453_v29  ;;  %v5975_v47 = vadd.f32 %v12442_v49, %v5713_v19  ;;  %v13496_v49 = vld [vmem:[#allocation3_spill] sm:$0xff] }
 0x480   : > { %v6277_v13 = vadd.f32 %v6276_v2, %v6275_v10  ;;  %v6138_v63 = vpop.f32.mrf.mxu1  ;;  %v5976_v10 = vadd.f32 %v12426_v59, %v13492_v57  ;;  %v13493_v2 = vld [vmem:[#allocation49_spill] sm:$0xff]  ;;  %v5926_v37 = vpop.f32.mrf.mxu0 }
 0x481   : > { %v12500_v4 = vadd.f32 %v6138_v63, %v5971_v55  ;;  %v6282_v61 = vsel %vm521_vm3, %v12498_v42, 0.0  ;;  %v5455_v9 = vadd.f32 %v13494_v51, %v13493_v2  ;;  %v5977_v20 = vadd.f32 %v5906_v30, %v5715_v3  ;;  %v13500_v30 = vld [vmem:[#allocation38_spill] sm:$0xff] }
 0x482   : > { %v6279_v26 = vadd.f32 %v6278_v58, %v6277_v13  ;;  %v8704_v44 = vpop.f32.mrf.mxu1  ;;  %v13495_v58 = vld [vmem:[#allocation30_spill] sm:$0xff]  ;;  %v8669_v21 = vpop.f32.mrf.mxu0  ;;  %v5980_v50 = vadd.f32 %v8663_v34, %v13500_v30 }
 0x483   : > { %v6280_v17 = vsel %vm521_vm3, %v12500_v4, 0.0  ;;  %v12512_v32 = vadd.f32 %v8704_v44, %v5974_v5  ;;  %v5978_v44 = vadd.f32 %v12458_v28, %v13496_v49  ;;  %v13498_v5 = vld [vmem:[#allocation52_spill] sm:$0xff] }
 0x484   : > { %v6281_v45 = vadd.f32 %v6280_v17, %v6279_v26  ;;  %v6148_v23 = vpop.f32.mrf.mxu1  ;;  %v5717_v26 = vadd.f32 %v13495_v58, %v5455_v9  ;;  %v5936_v9 = vpop.f32.mrf.mxu0 }
 0x485   : > { %v12514_v22 = vadd.f32 %v6148_v23, %v5973_v40  ;;  %v6286_v55 = vsel %vm521_vm3, %v12512_v32, 0.0  ;;  %v5457_v40 = vadd.f32 %v13498_v5, %v13497_v62 }
 0x486   : > { %v6283_v35 = vadd.f32 %v6282_v61, %v6281_v45  ;;  %v8707_v52 = vpop.f32.mrf.mxu1  ;;  %v5979_v3 = vadd.f32 %v5916_v31, %v5717_v26  ;;  %v13503_v31 = vld [vmem:[#allocation56_spill] sm:$0xff] }
 0x487   : > { %v6284_v25 = vsel %vm521_vm3, %v12514_v22, 0.0  ;;  %v12526_v13 = vadd.f32 %v8707_v52, %v5976_v10  ;;  %v13501_v10 = vld [vmem:[#allocation51_spill] sm:$0xff]  ;;  %v5982_v58 = vadd.f32 %v8666_v8, %v13503_v31 }
 0x488   : > { %v6285_v14 = vadd.f32 %v6284_v25, %v6283_v35  ;;  %v6158_v46 = vpop.f32.mrf.mxu1  ;;  %v13499_v35 = vld [vmem:[#allocation59_spill] sm:$0xff] }
 0x489   : > { %v12528_v63 = vadd.f32 %v6158_v46, %v5975_v47  ;;  %v6290_v45 = vsel %vm521_vm3, %v12526_v13, 0.0  ;;  %v5719_v52 = vadd.f32 %v13499_v35, %v5457_v40  ;;  %v13502_v47 = vld [vmem:[#allocation27_spill] sm:$0xff]  ;;  %v8672_v40 = vpop.f32.mrf.mxu0  ;;  %v13506_v35 = vld [vmem:[#allocation6_spill] sm:$0xff] }
 0x48a   : > { %v6287_v53 = vadd.f32 %v6286_v55, %v6285_v14  ;;  %v8710_v56 = vpop.f32.mrf.mxu1  ;;  %v5459_v14 = vadd.f32 %v13502_v47, %v13501_v10  ;;  %v5984_v8 = vadd.f32 %v8669_v21, %v13506_v35 }
 0x48b   : > { %v6288_v59 = vsel %vm521_vm3, %v12528_v63, 0.0  ;;  %v12539_v23 = vadd.f32 %v8710_v56, %v5978_v44  ;;  %v5981_v26 = vadd.f32 %v5926_v37, %v5719_v52  ;;  %v13504_v44 = vld [vmem:[#allocation53_spill] sm:$0xff] }
 0x48c   : > { %v6289_v19 = vadd.f32 %v6288_v59, %v6287_v53  ;;  %v6168_v17 = vpop.f32.mrf.mxu1  ;;  %v5721_v56 = vadd.f32 %v12354_v6, %v5459_v14  ;;  %v5986_v14 = vadd.f32 %v8672_v40, %v12361_v16 }
 0x48d   : > { %v12541_v43 = vadd.f32 %v6168_v17, %v5977_v20  ;;  %v6294_v46 = vsel %vm521_vm3, %v12539_v23, 0.0  ;;  %v13505_v20 = vld [vmem:[#allocation54_spill] sm:$0xff] }
 0x48e   : > { %v6291_v29 = vadd.f32 %v6290_v45, %v6289_v19  ;;  %v8713_v61 = vpop.f32.mrf.mxu1  ;;  %v5461_v19 = vadd.f32 %v13505_v20, %v13504_v44  ;;  %v5983_v37 = vadd.f32 %v5936_v9, %v5721_v56 }
 0x48f   : > { %v6292_v28 = vsel %vm521_vm3, %v12541_v43, 0.0  ;;  %v12551_v2 = vadd.f32 %v8713_v61, %v5980_v50 }
 0x490   : > { %v6293_v25 = vadd.f32 %v6292_v28, %v6291_v29  ;;  %v6178_v57 = vpop.f32.mrf.mxu1  ;;  %v5723_v6 = vadd.f32 %v12363_v54, %v5461_v19 }
 0x491   : > { %v12553_v51 = vadd.f32 %v6178_v57, %v5979_v3  ;;  %v6298_v17 = vsel %vm521_vm3, %v12551_v2, 0.0 }
 0x492   : > { %v6295_v55 = vadd.f32 %v6294_v46, %v6293_v25  ;;  %v8716_v53 = vpop.f32.mrf.mxu1  ;;  %v5946_v25 = vpop.f32.mrf.mxu0 }
 0x493   : > { %v6296_v34 = vsel %vm521_vm3, %v12553_v51, 0.0  ;;  %v6244_v62 = vadd.f32 %v8716_v53, %v5982_v58  ;;  %v5985_v46 = vadd.f32 %v5946_v25, %v5723_v6 }
 0x494   : > { %v6297_v59 = vadd.f32 %v6296_v34, %v6295_v55  ;;  %v6188_v49 = vpop.f32.mrf.mxu1 }
 0x495   : > { %v6243_v5 = vadd.f32 %v6188_v49, %v5981_v26  ;;  %v6302_v30 = vsel %vm521_vm3, %v6244_v62, 0.0 }
 0x496   : > { %v6299_v45 = vadd.f32 %v6298_v17, %v6297_v59  ;;  %v8719_v29 = vpop.f32.mrf.mxu1 }
 0x497   : > { %v6300_v61 = vsel %vm521_vm3, %v6243_v5, 0.0  ;;  %v6246_v50 = vadd.f32 %v8719_v29, %v5984_v8 }
 0x498   : > { %v6301_v52 = vadd.f32 %v6300_v61, %v6299_v45  ;;  %v6198_v28 = vpop.f32.mrf.mxu1 }
 0x499   : > { %v6245_v3 = vadd.f32 %v6198_v28, %v5983_v37  ;;  %v6306_v53 = vsel %vm521_vm3, %v6246_v50, 0.0 }
 0x49a   : > { %v6303_v57 = vadd.f32 %v6302_v30, %v6301_v52  ;;  %v8722_v10 = vpop.f32.mrf.mxu1 }
 0x49b   : > { %v6304_v47 = vsel %vm521_vm3, %v6245_v3, 0.0  ;;  %v6248_v21 = vadd.f32 %v8722_v10, %v5986_v14 }
 0x49c   : > { %v6305_v54 = vadd.f32 %v6304_v47, %v6303_v57  ;;  %v6208_v55 = vpop.f32.mrf.mxu1 }
 0x49d   : > { %v6247_v9 = vadd.f32 %v6208_v55, %v5985_v46  ;;  %v6310_v58 = vsel %vm521_vm3, %v6248_v21, 0.0 }
 0x49e   : > { %v6307_v56 = vadd.f32 %v6306_v53, %v6305_v54 }
 0x49f   : > { %v6308_v34 = vsel %vm521_vm3, %v6247_v9, 0.0 }
 0x4a0   : > { %v6309_v31 = vadd.f32 %v6308_v34, %v6307_v56 }
 0x4a2   : > { %v6311_v26 = vadd.f32 %v6310_v58, %v6309_v31 }
 0x4a4   : > { %v6312_v59 = vrot.slane %v6311_v26, 4 }
 0x4a6   : > { %v6313_v49 = vadd.f32 %v6312_v59, %v6311_v26 }
 0x4a8   : > { %v6314_v44 = vrot.slane %v6313_v49, 2 }
 0x4aa   : > { %v6315_v20 = vadd.f32 %v6314_v44, %v6313_v49 }
 0x4ac   : > { %v6316_v19 = vrot.slane %v6315_v20, 1 }
 0x4ae   : > { %v6317_v16 = vadd.f32 %v6316_v19, %v6315_v20 }
 0x4b0   : > { %v6318_v17 = vmul.f32 0.00390625, %v6317_v16 }
 0x4b2   : > { %v12573_v40 = vsub.f32 %v12456_v48, %v6318_v17  ;;  %v12576_v45 = vsub.f32 %v12454_v38, %v6318_v17  ;;  %v12579_v29 = vsub.f32 %v12472_v41, %v6318_v17  ;;  %v12582_v6 = vsub.f32 %v12470_v36, %v6318_v17 }
 0x4b3   : > { %v12585_v61 = vsub.f32 %v12486_v7, %v6318_v17  ;;  %v12588_v35 = vsub.f32 %v12484_v39, %v6318_v17  ;;  %v12591_v8 = vsub.f32 %v12500_v4, %v6318_v17  ;;  %v12594_v48 = vsub.f32 %v12498_v42, %v6318_v17 }
 0x4b4   : > { %v12597_v38 = vsub.f32 %v12514_v22, %v6318_v17  ;;  %v12600_v41 = vsub.f32 %v12512_v32, %v6318_v17  ;;  %v12603_v36 = vsub.f32 %v12528_v63, %v6318_v17  ;;  %v12606_v7 = vsub.f32 %v12526_v13, %v6318_v17 }
 0x4b5   : > { %v12609_v39 = vsub.f32 %v12541_v43, %v6318_v17  ;;  %v12612_v4 = vsub.f32 %v12539_v23, %v6318_v17  ;;  %v12615_v42 = vsub.f32 %v12553_v51, %v6318_v17  ;;  %v12618_v22 = vsub.f32 %v12551_v2, %v6318_v17 }
 0x4b6   : > { %v12620_v32 = vsub.f32 %v6243_v5, %v6318_v17  ;;  %v12622_v37 = vsub.f32 %v6244_v62, %v6318_v17  ;;  %v12624_v63 = vsub.f32 %v6245_v3, %v6318_v17  ;;  %v12626_v13 = vsub.f32 %v6246_v50, %v6318_v17 }
 0x4b7   : > { %v12628_v52 = vsub.f32 %v6247_v9, %v6318_v17  ;;  %v12630_v43 = vsub.f32 %v6248_v21, %v6318_v17  ;;  %v12633_v23 = vsub.f32 %v12376_v60, %v6318_v17  ;;  %v12636_v51 = vsub.f32 %v12374_v1, %v6318_v17 }
 0x4b8   : > { %v12639_v2 = vsub.f32 %v12392_v27, %v6318_v17  ;;  %v12642_v62 = vsub.f32 %v12390_v0, %v6318_v17  ;;  %v12649_v30 = vsub.f32 %v12408_v15, %v6318_v17  ;;  %v12654_v1 = vsub.f32 %v12406_v33, %v6318_v17 }
 0x4b9   : > { %v6351_v5 = vmul.f32 %v12633_v23, %v12633_v23  ;;  %v6352_v28 = vmul.f32 %v12636_v51, %v12636_v51  ;;  %v12661_v25 = vsub.f32 %v12424_v12, %v6318_v17  ;;  %v12667_v33 = vsub.f32 %v12422_v18, %v6318_v17 }
 0x4ba   : > { %v6353_v60 = vmul.f32 %v12639_v2, %v12639_v2  ;;  %v6354_v27 = vmul.f32 %v12642_v62, %v12642_v62  ;;  %v6355_v15 = vmul.f32 %v12649_v30, %v12649_v30  ;;  %v6356_v47 = vmul.f32 %v12654_v1, %v12654_v1 }
 0x4bb   : > { %v6383_v0 = vsel %vm521_vm3, %v6351_v5, 0.0  ;;  %v6384_v50 = vsel %vm521_vm3, %v6352_v28, 0.0  ;;  %v12673_v54 = vsub.f32 %v12440_v24, %v6318_v17  ;;  %v6357_v12 = vmul.f32 %v12661_v25, %v12661_v25 }
 0x4bc   : > { %v6385_v3 = vadd.f32 %v6384_v50, %v6383_v0  ;;  %v6386_v57 = vsel %vm521_vm3, %v6353_v60, 0.0  ;;  %v6388_v14 = vsel %vm521_vm3, %v6354_v27, 0.0  ;;  %v6390_v55 = vsel %vm521_vm3, %v6355_v15, 0.0 }
 0x4bd   : > { %v12679_v21 = vsub.f32 %v12438_v11, %v6318_v17  ;;  %v6358_v18 = vmul.f32 %v12667_v33, %v12667_v33  ;;  %v6392_v9 = vsel %vm521_vm3, %v6356_v47, 0.0  ;;  %v6359_v34 = vmul.f32 %v12673_v54, %v12673_v54 }
 0x4be   : > { %v6387_v10 = vadd.f32 %v6386_v57, %v6385_v3  ;;  %v6394_v24 = vsel %vm521_vm3, %v6357_v12, 0.0  ;;  %v6361_v11 = vmul.f32 %v12573_v40, %v12573_v40  ;;  %v6362_v20 = vmul.f32 %v12576_v45, %v12576_v45 }
 0x4bf   : > { %v6360_v58 = vmul.f32 %v12679_v21, %v12679_v21  ;;  %v6396_v26 = vsel %vm521_vm3, %v6358_v18, 0.0  ;;  %v6398_v49 = vsel %vm521_vm3, %v6359_v34, 0.0  ;;  %v6363_v17 = vmul.f32 %v12579_v29, %v12579_v29 }
 0x4c0   : > { %v6389_v46 = vadd.f32 %v6388_v14, %v6387_v10  ;;  %v6402_v5 = vsel %vm521_vm3, %v6361_v11, 0.0  ;;  %v6364_v60 = vmul.f32 %v12582_v6, %v12582_v6  ;;  %v6404_v27 = vsel %vm521_vm3, %v6362_v20, 0.0 }
 0x4c1   : > { %v6400_v19 = vsel %vm521_vm3, %v6360_v58, 0.0  ;;  %v6365_v50 = vmul.f32 %v12585_v61, %v12585_v61  ;;  %v6406_v3 = vsel %vm521_vm3, %v6363_v17, 0.0  ;;  %v6366_v57 = vmul.f32 %v12588_v35, %v12588_v35 }
 0x4c2   : > { %v6391_v53 = vadd.f32 %v6390_v55, %v6389_v46  ;;  %v6408_v10 = vsel %vm521_vm3, %v6364_v60, 0.0  ;;  %v6367_v14 = vmul.f32 %v12591_v8, %v12591_v8  ;;  %v6368_v55 = vmul.f32 %v12594_v48, %v12594_v48 }
 0x4c3   : > { %v6410_v46 = vsel %vm521_vm3, %v6365_v50, 0.0 }
 0x4c4   : > { %v6393_v56 = vadd.f32 %v6392_v9, %v6391_v53  ;;  %v6412_v53 = vsel %vm521_vm3, %v6366_v57, 0.0  ;;  %v6369_v9 = vmul.f32 %v12597_v38, %v12597_v38 }
 0x4c6   : > { %v6395_v31 = vadd.f32 %v6394_v24, %v6393_v56  ;;  %v6414_v56 = vsel %vm521_vm3, %v6367_v14, 0.0  ;;  %v6370_v24 = vmul.f32 %v12600_v41, %v12600_v41 }
 0x4c8   : > { %v6397_v59 = vadd.f32 %v6396_v26, %v6395_v31  ;;  %v6416_v31 = vsel %vm521_vm3, %v6368_v55, 0.0  ;;  %v6371_v26 = vmul.f32 %v12603_v36, %v12603_v36 }
 0x4ca   : > { %v6399_v44 = vadd.f32 %v6398_v49, %v6397_v59  ;;  %v6418_v59 = vsel %vm521_vm3, %v6369_v9, 0.0  ;;  %v6372_v49 = vmul.f32 %v12606_v7, %v12606_v7 }
 0x4cc   : > { %v6401_v16 = vadd.f32 %v6400_v19, %v6399_v44  ;;  %v6420_v44 = vsel %vm521_vm3, %v6370_v24, 0.0  ;;  %v6373_v19 = vmul.f32 %v12609_v39, %v12609_v39 }
 0x4ce   : > { %v6403_v28 = vadd.f32 %v6402_v5, %v6401_v16  ;;  %v6422_v16 = vsel %vm521_vm3, %v6371_v26, 0.0  ;;  %v6374_v5 = vmul.f32 %v12612_v4, %v12612_v4 }
 0x4d0   : > { %v6405_v0 = vadd.f32 %v6404_v27, %v6403_v28  ;;  %v6424_v28 = vsel %vm521_vm3, %v6372_v49, 0.0  ;;  %v6375_v27 = vmul.f32 %v12615_v42, %v12615_v42 }
 0x4d2   : > { %v6407_v15 = vadd.f32 %v6406_v3, %v6405_v0  ;;  %v6426_v0 = vsel %vm521_vm3, %v6373_v19, 0.0  ;;  %v6376_v3 = vmul.f32 %v12618_v22, %v12618_v22 }
 0x4d4   : > { %v6409_v47 = vadd.f32 %v6408_v10, %v6407_v15  ;;  %v6428_v15 = vsel %vm521_vm3, %v6374_v5, 0.0  ;;  %v6377_v10 = vmul.f32 %v12620_v32, %v12620_v32 }
 0x4d6   : > { %v6411_v12 = vadd.f32 %v6410_v46, %v6409_v47  ;;  %v6430_v47 = vsel %vm521_vm3, %v6375_v27, 0.0  ;;  %v6378_v46 = vmul.f32 %v12622_v37, %v12622_v37 }
 0x4d8   : > { %v6413_v18 = vadd.f32 %v6412_v53, %v6411_v12  ;;  %v6432_v12 = vsel %vm521_vm3, %v6376_v3, 0.0  ;;  %v6379_v53 = vmul.f32 %v12624_v63, %v12624_v63 }
 0x4da   : > { %v6415_v34 = vadd.f32 %v6414_v56, %v6413_v18  ;;  %v6434_v18 = vsel %vm521_vm3, %v6377_v10, 0.0  ;;  %v6380_v56 = vmul.f32 %v12626_v13, %v12626_v13 }
 0x4dc   : > { %v6417_v58 = vadd.f32 %v6416_v31, %v6415_v34  ;;  %v6436_v34 = vsel %vm521_vm3, %v6378_v46, 0.0  ;;  %v6381_v31 = vmul.f32 %v12628_v52, %v12628_v52 }
 0x4de   : > { %v6419_v11 = vadd.f32 %v6418_v59, %v6417_v58  ;;  %v6438_v58 = vsel %vm521_vm3, %v6379_v53, 0.0  ;;  %v6382_v59 = vmul.f32 %v12630_v43, %v12630_v43 }
 0x4e0   : > { %v6421_v20 = vadd.f32 %v6420_v44, %v6419_v11  ;;  %v6440_v11 = vsel %vm521_vm3, %v6380_v56, 0.0  ;;  %v6442_v44 = vsel %vm521_vm3, %v6381_v31, 0.0  ;;  %v6444_v19 = vsel %vm521_vm3, %v6382_v59, 0.0  ;;  %v8739_v56 = vld [vmem:[%s8829_s25 + $0x20] sm:$0xff] }
 0x4e1   : > { %v8743_v59 = vld [vmem:[%s8829_s25 + $0x40] sm:$0xff] }
 0x4e2   : > { %v6423_v17 = vadd.f32 %v6422_v16, %v6421_v20 }
 0x4e4   : > { %v6425_v60 = vadd.f32 %v6424_v28, %v6423_v17 }
 0x4e6   : > { %v6427_v50 = vadd.f32 %v6426_v0, %v6425_v60 }
 0x4e8   : > { %v6429_v57 = vadd.f32 %v6428_v15, %v6427_v50 }
 0x4ea   : > { %v6431_v14 = vadd.f32 %v6430_v47, %v6429_v57 }
 0x4ec   : > { %v6433_v55 = vadd.f32 %v6432_v12, %v6431_v14 }
 0x4ee   : > { %v6435_v9 = vadd.f32 %v6434_v18, %v6433_v55 }
 0x4f0   : > { %v6437_v24 = vadd.f32 %v6436_v34, %v6435_v9  ;;  %v8740_v34 = vld [vmem:[%s8829_s25 + $0x28] sm:$0xff] }
 0x4f2   : > { %v6439_v26 = vadd.f32 %v6438_v58, %v6437_v24  ;;  %v8741_v24 = vld [vmem:[%s8829_s25 + $0x30] sm:$0xff]  ;;  %v8742_v58 = vld [vmem:[%s8829_s25 + $0x38] sm:$0xff] }
 0x4f4   : > { %v6441_v49 = vadd.f32 %v6440_v11, %v6439_v26 }
 0x4f6   : > { %v6443_v20 = vadd.f32 %v6442_v44, %v6441_v49  ;;  %v8744_v49 = vld [vmem:[%s8829_s25 + $0x48] sm:$0xff] }
 0x4f8   : > { %v6445_v16 = vadd.f32 %v6444_v19, %v6443_v20  ;;  %v8745_v20 = vld [vmem:[%s8829_s25 + $0x50] sm:$0xff] }
 0x4fa   : > { %v6446_v17 = vrot.slane %v6445_v16, 4 }
 0x4fc   : > { %v6447_v5 = vadd.f32 %v6446_v17, %v6445_v16  ;;  %v8746_v16 = vld [vmem:[%s8829_s25 + $0x58] sm:$0xff] }
 0x4fe   : > { %v6448_v28 = vrot.slane %v6447_v5, 2 }
 0x500   : > { %v6449_v60 = vadd.f32 %v6448_v28, %v6447_v5  ;;  %v8747_v5 = vld [vmem:[%s8829_s25 + $0x60] sm:$0xff] }
 0x502   : > { %v6450_v27 = vrot.slane %v6449_v60, 1 }
 0x504   : > { %v6451_v0 = vadd.f32 %v6450_v27, %v6449_v60  ;;  %v8748_v60 = vld [vmem:[%s8829_s25 + $0x68] sm:$0xff] }
 0x506   : > { %v6452_v50 = vmul.f32 0.00390625, %v6451_v0  ;;  %v8749_v0 = vld [vmem:[%s8829_s25 + $0x70] sm:$0xff] }
 0x508   : > { %v6453_v3 = vadd.f32 1e-05, %v6452_v50 }
 0x50a   : > { %8733 = vrsqrt.f32 %v6453_v3  ;;  %v8750_v3 = vld [vmem:[%s8829_s25 + $0x78] sm:$0xff] }
 0x517   : > { %v8734_v15 = vpop.eup %8733 }
 0x518   : > { %v6455_v57 = vmul.f32 %v8734_v15, %v12633_v23  ;;  %v6456_v10 = vmul.f32 %v8734_v15, %v12636_v51  ;;  %v6457_v47 = vmul.f32 %v8734_v15, %v12639_v2  ;;  %v6458_v14 = vmul.f32 %v8734_v15, %v12642_v62 }
 0x519   : > { %v6459_v46 = vmul.f32 %v8734_v15, %v12649_v30  ;;  %v6460_v12 = vmul.f32 %v8734_v15, %v12654_v1  ;;  %v6461_v55 = vmul.f32 %v8734_v15, %v12661_v25  ;;  %v6462_v53 = vmul.f32 %v8734_v15, %v12667_v33 }
 0x51a   : > { %v6463_v18 = vmul.f32 %v8734_v15, %v12673_v54  ;;  %v6464_v9 = vmul.f32 %v8734_v15, %v12679_v21  ;;  %v6465_v23 = vmul.f32 %v8734_v15, %v12573_v40  ;;  %v6466_v51 = vmul.f32 %v8734_v15, %v12576_v45  ;;  %v8738_v21 = vld [vmem:[%s8829_s25 + $0x18] sm:$0xff] }
 0x51b   : > { %v6467_v2 = vmul.f32 %v8734_v15, %v12579_v29  ;;  %v6468_v62 = vmul.f32 %v8734_v15, %v12582_v6  ;;  %v6469_v30 = vmul.f32 %v8734_v15, %v12585_v61  ;;  %v6470_v1 = vmul.f32 %v8734_v15, %v12588_v35 }
 0x51c   : > { %v6471_v25 = vmul.f32 %v8734_v15, %v12591_v8  ;;  %v6472_v33 = vmul.f32 %v8734_v15, %v12594_v48  ;;  %v6473_v54 = vmul.f32 %v8734_v15, %v12597_v38  ;;  %v6474_v40 = vmul.f32 %v8734_v15, %v12600_v41 }
 0x51d   : > { %v12779_v45 = vmul.f32 %v8734_v15, %v12603_v36  ;;  %v12782_v29 = vmul.f32 %v8734_v15, %v12606_v7  ;;  %v12785_v6 = vmul.f32 %v8734_v15, %v12609_v39  ;;  %v12788_v61 = vmul.f32 %v8734_v15, %v12612_v4  ;;  %v8735_v4 = vld [vmem:[%s8829_s25] sm:$0xff] }
 0x51e   : > { %v12791_v35 = vmul.f32 %v8734_v15, %v12615_v42  ;;  %v12794_v8 = vmul.f32 %v8734_v15, %v12618_v22  ;;  %v12797_v48 = vmul.f32 %v8734_v15, %v12620_v32  ;;  %v12800_v38 = vmul.f32 %v8734_v15, %v12622_v37  ;;  %v8736_v22 = vld [vmem:[%s8829_s25 + $0x8] sm:$0xff]  ;;  %v8737_v37 = vld [vmem:[%s8829_s25 + $0x10] sm:$0xff] }
 0x51f   : > { %v12810_v41 = vmul.f32 %v8734_v15, %v12624_v63  ;;  %v12813_v36 = vmul.f32 %v8734_v15, %v12626_v13  ;;  %v12816_v7 = vmul.f32 %v8734_v15, %v12628_v52  ;;  %v12819_v39 = vmul.f32 %v8734_v15, %v12630_v43 }
 0x520   : > { %v6487_v42 = vadd.f32 %v8735_v4, %v6455_v57  ;;  %v6488_v32 = vadd.f32 %v8736_v22, %v6456_v10  ;;  %v6489_v63 = vadd.f32 %v8737_v37, %v6457_v47  ;;  %v6490_v13 = vadd.f32 %v8738_v21, %v6458_v14  ;;  %v8751_v57 = vld [vmem:[%s8829_s25 + $0x80] sm:$0xff]  ;;  %v8752_v47 = vld [vmem:[%s8829_s25 + $0x88] sm:$0xff]  ;;  %v8765_v4 = vld [vmem:[%s8829_s25 + $0xf0] sm:$0xff] }
 0x521   : > { %v6491_v52 = vadd.f32 %v8739_v56, %v6459_v46  ;;  %v6492_v43 = vadd.f32 %v8740_v34, %v6460_v12  ;;  %v6493_v31 = vadd.f32 %v8741_v24, %v6461_v55  ;;  %v6494_v26 = vadd.f32 %v8742_v58, %v6462_v53  ;;  %v8753_v46 = vld [vmem:[%s8829_s25 + $0x90] sm:$0xff]  ;;  %v8754_v55 = vld [vmem:[%s8829_s25 + $0x98] sm:$0xff] }
 0x522   : > { %v6495_v11 = vadd.f32 %v8743_v59, %v6463_v18  ;;  %v6496_v44 = vadd.f32 %v8744_v49, %v6464_v9  ;;  %v6497_v19 = vadd.f32 %v8745_v20, %v6465_v23  ;;  %v6498_v17 = vadd.f32 %v8746_v16, %v6466_v51  ;;  %6519 = vst.msk [vmem:[%s12807_s6] sm:$0xff] %vm521_vm3, %v6487_v42  ;;  %v8755_v18 = vld [vmem:[%s8829_s25 + $0xa0] sm:$0xff]  ;;  %v8756_v23 = vld [vmem:[%s8829_s25 + $0xa8] sm:$0xff]  ;;  %v8766_v22 = vld [vmem:[%s8829_s25 + $0xf8] sm:$0xff] }
 0x523   : > { %6520 = vst.msk [vmem:[%s12807_s6 + $0x8] sm:$0xff] %vm521_vm3, %v6488_v32  ;;  %6521 = vst.msk [vmem:[%s12807_s6 + $0x10] sm:$0xff] %vm521_vm3, %v6489_v63  ;;  %v6499_v28 = vadd.f32 %v8747_v5, %v6467_v2  ;;  %v6500_v27 = vadd.f32 %v8748_v60, %v6468_v62  ;;  %v6501_v50 = vadd.f32 %v8749_v0, %v6469_v30  ;;  %v8757_v2 = vld [vmem:[%s8829_s25 + $0xb0] sm:$0xff]  ;;  %v8758_v30 = vld [vmem:[%s8829_s25 + $0xb8] sm:$0xff] }
 0x524   : > { %6522 = vst.msk [vmem:[%s12807_s6 + $0x18] sm:$0xff] %vm521_vm3, %v6490_v13  ;;  %v6502_v15 = vadd.f32 %v8750_v3, %v6470_v1  ;;  %6523 = vst.msk [vmem:[%s12807_s6 + $0x20] sm:$0xff] %vm521_vm3, %v6491_v52  ;;  %v6503_v10 = vadd.f32 %v8751_v57, %v6471_v25  ;;  %v6504_v14 = vadd.f32 %v8752_v47, %v6472_v33  ;;  %v8759_v25 = vld [vmem:[%s8829_s25 + $0xc0] sm:$0xff] }
 0x525   : > { %6524 = vst.msk [vmem:[%s12807_s6 + $0x28] sm:$0xff] %vm521_vm3, %v6492_v43  ;;  %6525 = vst.msk [vmem:[%s12807_s6 + $0x30] sm:$0xff] %vm521_vm3, %v6493_v31  ;;  %v6505_v12 = vadd.f32 %v8753_v46, %v6473_v54  ;;  %v6506_v53 = vadd.f32 %v8754_v55, %v6474_v40  ;;  %v6507_v9 = vadd.f32 %v8755_v18, %v12779_v45  ;;  %v8760_v54 = vld [vmem:[%s8829_s25 + $0xc8] sm:$0xff]  ;;  %v8761_v45 = vld [vmem:[%s8829_s25 + $0xd0] sm:$0xff] }
 0x526   : > { %6526 = vst.msk [vmem:[%s12807_s6 + $0x38] sm:$0xff] %vm521_vm3, %v6494_v26  ;;  %6527 = vst.msk [vmem:[%s12807_s6 + $0x40] sm:$0xff] %vm521_vm3, %v6495_v11  ;;  %v6508_v51 = vadd.f32 %v8756_v23, %v12782_v29  ;;  %v6509_v62 = vadd.f32 %v8757_v2, %v12785_v6  ;;  %v6510_v1 = vadd.f32 %v8758_v30, %v12788_v61  ;;  %v8762_v6 = vld [vmem:[%s8829_s25 + $0xd8] sm:$0xff] }
 0x527   : > { %6528 = vst.msk [vmem:[%s12807_s6 + $0x48] sm:$0xff] %vm521_vm3, %v6496_v44  ;;  %6529 = vst.msk [vmem:[%s12807_s6 + $0x50] sm:$0xff] %vm521_vm3, %v6497_v19  ;;  %v6511_v33 = vadd.f32 %v8759_v25, %v12791_v35  ;;  %v6512_v40 = vadd.f32 %v8760_v54, %v12794_v8  ;;  %v6513_v29 = vadd.f32 %v8761_v45, %v12797_v48  ;;  %v8763_v35 = vld [vmem:[%s8829_s25 + $0xe0] sm:$0xff]  ;;  %v8764_v48 = vld [vmem:[%s8829_s25 + $0xe8] sm:$0xff] }
 0x528   : > { %6530 = vst.msk [vmem:[%s12807_s6 + $0x58] sm:$0xff] %vm521_vm3, %v6498_v17  ;;  %6531 = vst.msk [vmem:[%s12807_s6 + $0x60] sm:$0xff] %vm521_vm3, %v6499_v28  ;;  %v6514_v61 = vadd.f32 %v8762_v6, %v12800_v38  ;;  %v6515_v8 = vadd.f32 %v8763_v35, %v12810_v41  ;;  %v6516_v38 = vadd.f32 %v8764_v48, %v12813_v36 }
 0x529   : > { %6532 = vst.msk [vmem:[%s12807_s6 + $0x68] sm:$0xff] %vm521_vm3, %v6500_v27  ;;  %6533 = vst.msk [vmem:[%s12807_s6 + $0x70] sm:$0xff] %vm521_vm3, %v6501_v50  ;;  %v6517_v42 = vadd.f32 %v8765_v4, %v12816_v7  ;;  %v6518_v32 = vadd.f32 %v8766_v22, %v12819_v39 }
 0x52a   : > { %6534 = vst.msk [vmem:[%s12807_s6 + $0x78] sm:$0xff] %vm521_vm3, %v6502_v15  ;;  %6535 = vst.msk [vmem:[%s12807_s6 + $0x80] sm:$0xff] %vm521_vm3, %v6503_v10 }
 0x52b   : > { %6536 = vst.msk [vmem:[%s12807_s6 + $0x88] sm:$0xff] %vm521_vm3, %v6504_v14  ;;  %6537 = vst.msk [vmem:[%s12807_s6 + $0x90] sm:$0xff] %vm521_vm3, %v6505_v12 }
 0x52c   : > { %6538 = vst.msk [vmem:[%s12807_s6 + $0x98] sm:$0xff] %vm521_vm3, %v6506_v53  ;;  %6539 = vst.msk [vmem:[%s12807_s6 + $0xa0] sm:$0xff] %vm521_vm3, %v6507_v9 }
 0x52d   : > { %6540 = vst.msk [vmem:[%s12807_s6 + $0xa8] sm:$0xff] %vm521_vm3, %v6508_v51  ;;  %6541 = vst.msk [vmem:[%s12807_s6 + $0xb0] sm:$0xff] %vm521_vm3, %v6509_v62 }
 0x52e   : > { %6542 = vst.msk [vmem:[%s12807_s6 + $0xb8] sm:$0xff] %vm521_vm3, %v6510_v1  ;;  %6543 = vst.msk [vmem:[%s12807_s6 + $0xc0] sm:$0xff] %vm521_vm3, %v6511_v33 }
 0x52f   : > { %6544 = vst.msk [vmem:[%s12807_s6 + $0xc8] sm:$0xff] %vm521_vm3, %v6512_v40  ;;  %6545 = vst.msk [vmem:[%s12807_s6 + $0xd0] sm:$0xff] %vm521_vm3, %v6513_v29 }
 0x530   : > { %6546 = vst.msk [vmem:[%s12807_s6 + $0xd8] sm:$0xff] %vm521_vm3, %v6514_v61  ;;  %6547 = vst.msk [vmem:[%s12807_s6 + $0xe0] sm:$0xff] %vm521_vm3, %v6515_v8 }
 0x531   : > { %6548 = vst.msk [vmem:[%s12807_s6 + $0xe8] sm:$0xff] %vm521_vm3, %v6516_v38  ;;  %6549 = vst.msk [vmem:[%s12807_s6 + $0xf0] sm:$0xff] %vm521_vm3, %v6517_v42 }
 0x532   : > { %6550 = vst.msk [vmem:[%s12807_s6 + $0xf8] sm:$0xff] %vm521_vm3, %v6518_v32 }
 0x533 PF: > { %s13_s12 = sadd.s32 1, %s8773_s12  }
 0x534   : > { %p10_p4 = scmp.ge.s32.totalorder %s13_s12, 4  }
 0x536   :  { %12 = sbr.rel (!%p10_p4) target bundleno = 1 (0x1), region = 78 }

</bundles_post_ra>
